<compile_context>
chip_gen: v5e
topology: v5e:2x2
jax: 0.10.0
libtpu: 0.0.40
codegen_flags: <defaults>
</compile_context>

<pallas_src>
import jax
import jax.numpy as jnp
import numpy as np
from jax.experimental import pallas as pl
from jax.experimental.pallas import tpu as pltpu


# bf16 MXU inputs, f32 accumulation; all gate math / state / outputs are f32.
MXU_DTYPE = jnp.bfloat16


# --------------------------------------------------------------------------
# Single fused kernel: LSTM recurrence over a block of TS time steps plus the
# vocab projection epilogue.  Gate pre-activations arrive as a lane-packed
# bf16 (bb, TS*4H) slab (input projection + both biases already folded in);
# only h @ W_hh and h_out @ W_out run inside the kernel.  Packed-sequence
# semantics: state frozen past `lengths`, logits past length == b_out
# (== Linear(0) on the zero-padded hs, exactly like pad_packed_sequence).
# --------------------------------------------------------------------------
def decoder_lstm_kernel(len_ref, gx_ref, h0_ref, c0_ref, whh_ref, wout_ref,
                        bout_ref, logits_ref, ht_ref, ct_ref):
    tb = pl.program_id(1)                      # time-block index (sequential)
    H = h0_ref.shape[-1]
    G = 4 * H
    V = bout_ref.shape[-1]
    TS = gx_ref.shape[-1] // G                 # time steps in this block

    @pl.when(tb == 0)
    def _():                                   # per-batch-block state init
        ht_ref[...] = h0_ref[...]
        ct_ref[...] = c0_ref[...]

    whh = whh_ref[...]                         # (H, 4H) bf16, resident
    wout = wout_ref[...]                       # (H, V)  bf16, resident
    bout = bout_ref[...]                       # (1, V)  f32
    lens = len_ref[...]                        # (bb, 1) int32
    t0 = tb * TS

    h = ht_ref[...]                            # f32 carry (resident out block)
    c = ct_ref[...]
    # TODO(synk): for large TS/H switch to lax.fori_loop(..., unroll=True) with
    # pl.ds(pl.multiple_of(s*G, 128), G) slices to bound vreg live ranges, and
    # hold W_hh in MXU weight regs via pltpu.matmul_push_rhs/acc_lhs/pop.
    for s in range(TS):                        # short fixed trip count
        # gates = hoisted input proj (bf16 slab) + h @ W_hh  (f32 acc)
        gates = (gx_ref[:, s * G:(s + 1) * G]
                 + jnp.dot(h.astype(MXU_DTYPE), whh,
                           preferred_element_type=jnp.float32))
        ifo = jax.nn.sigmoid(gates[:, :3 * H])     # one contiguous EUP slab
        g = jnp.tanh(gates[:, 3 * H:])
        c_new = ifo[:, H:2 * H] * c + ifo[:, :H] * g
        h_new = ifo[:, 2 * H:3 * H] * jnp.tanh(c_new)
        valid = (t0 + s) < lens                    # (bb, 1) packed-seq mask
        h = jnp.where(valid, h_new, h)             # freeze state past length
        c = jnp.where(valid, c_new, c)
        h_out = jnp.where(valid, h_new, 0.0)       # zero-pad like pad_packed
        # fused vocab projection epilogue; lane-dense store (V % 128 == 0)
        logits = jnp.dot(h_out.astype(MXU_DTYPE), wout,
                         preferred_element_type=jnp.float32) + bout
        logits_ref[:, s * V:(s + 1) * V] = logits.astype(logits_ref.dtype)

    ht_ref[...] = h                            # resident carry == final state
    ct_ref[...] = c
    # TODO(synk): scalar-prefetched lengths would allow @pl.when-skipping time
    # blocks fully past max(length) (writing broadcast b_out for those blocks).


def decoder_lstm(gx, h0, c0, lengths, w_hh_bf16, w_out_bf16, b_out, *,
                 time_block=8, batch_block=None):
    """gx: (B, T*4H) bf16 gate pre-activations.  Returns logits (B, T*V) f32,
    h_t (B, H) f32, c_t (B, H) f32."""
    B, H = h0.shape
    G = 4 * H
    T = gx.shape[1] // G
    V = w_out_bf16.shape[1]

    ts = max(1, min(time_block, T))
    while T % ts:                              # largest divisor <= time_block
        ts -= 1
    if batch_block is None:
        # v7x: give the parallel axis >= 2 blocks when B allows; keep bb a
        # multiple of 16 (bf16 sublane packing).  v6e prefers larger bb.
        batch_block = 16 if (B % 16 == 0 and B >= 32) else B
    bb = batch_block if B % batch_block == 0 else B
    len2d = lengths.reshape(B, 1).astype(jnp.int32)

    return pl.pallas_call(
        decoder_lstm_kernel,
        out_shape=(jax.ShapeDtypeStruct((B, T * V), jnp.float32),
                   jax.ShapeDtypeStruct((B, H), jnp.float32),
                   jax.ShapeDtypeStruct((B, H), jnp.float32)),
        grid_spec=pltpu.PrefetchScalarGridSpec(
            num_scalar_prefetch=0,
            grid=(B // bb, T // ts),
            in_specs=[pl.BlockSpec((bb, 1), lambda b, t: (b, 0)),
                      pl.BlockSpec((bb, ts * G), lambda b, t: (b, t)),
                      pl.BlockSpec((bb, H), lambda b, t: (b, 0)),
                      pl.BlockSpec((bb, H), lambda b, t: (b, 0)),
                      pl.BlockSpec((H, G), lambda b, t: (0, 0)),
                      pl.BlockSpec((H, V), lambda b, t: (0, 0)),
                      pl.BlockSpec((1, V), lambda b, t: (0, 0))],
            out_specs=(pl.BlockSpec((bb, ts * V), lambda b, t: (b, t)),
                       pl.BlockSpec((bb, H), lambda b, t: (b, 0)),
                       pl.BlockSpec((bb, H), lambda b, t: (b, 0)))),
        compiler_params=pltpu.CompilerParams(
            dimension_semantics=("parallel", "arbitrary"),
            # Tiny footprint here; re-derive when scaling tiles (v7x: 64 MiB
            # physical VMEM).  TODO(synk): pipeline_mode=pl.Buffered(3) on the
            # gx stream once blocks get large (v6e headroom).
            vmem_limit_bytes=32 * 1024 * 1024),
    )(len2d, gx, h0, c0, w_hh_bf16, w_out_bf16, b_out)


# --------------------------------------------------------------------------
# One-time weight preprocessing (cache/reuse across forward calls).
# --------------------------------------------------------------------------
def prepare_decoder_params(params):
    """- Fold embedding lookup + input projection + (b_ih + b_hh) into one
       projected table: emb_proj[v] = embedding[v] @ W_ih + b_gates.
       Since embedding[pad] == 0, padded tokens map exactly to the bias row.
     - Cast streamed weights to bf16 (MXU inputs); keep f32 output bias.
     Gate column order is [i, f, o, g]; PyTorch's [i, f, g, o] weights would
     be column-permuted here once."""
    emb_proj = (jnp.dot(params["embedding"], params["w_ih"],
                        preferred_element_type=jnp.float32)
                + params["b_gates"])
    return {
        "emb_proj": emb_proj.astype(MXU_DTYPE),        # (VOCAB, 4H) bf16
        "w_hh": params["w_hh"].astype(MXU_DTYPE),      # (H, 4H)    bf16
        "w_out": params["w_out"].astype(MXU_DTYPE),    # (H, V)     bf16
        "b_out": params["b_out"].astype(jnp.float32),  # (1, V)     f32
    }


# --------------------------------------------------------------------------
# Decoder forward (matches the PyTorch module's forward semantics, eval mode).
# --------------------------------------------------------------------------
def decoder_forward(tokens, h_0, c_0, lengths, prepared, *,
                    time_block=8, batch_block=None):
    """tokens: (B, T) int32; h_0, c_0: (1, B, H); lengths: (B,) int32.
    Returns (logits (B, T, V), (h_t (1,B,H), c_t (1,B,H)))."""
    B, T = tokens.shape
    H = prepared["w_hh"].shape[0]
    V = prepared["w_out"].shape[1]

    # Gate pre-activations for all (batch, time) positions via a single gather
    # of the projected table: no (B,T,D) activation, no input-proj matmul.
    # TODO(synk): plain XLA gather; a pl.Element row-gather kernel adds no
    # value at these sizes.
    gx = jnp.take(prepared["emb_proj"], tokens, axis=0).reshape(B, T * 4 * H)

    logits, h_t, c_t = decoder_lstm(gx, h_0[0], c_0[0], lengths,
                                    prepared["w_hh"], prepared["w_out"],
                                    prepared["b_out"],
                                    time_block=time_block,
                                    batch_block=batch_block)

    # Dropout(p=0.2): eval-mode identity.
    # TODO(synk): train-mode dropout would use pltpu.prng_seed/prng_random_bits.
    return logits.reshape(B, T, V), (h_t[None], c_t[None])


# --------------------------------------------------------------------------
# Pure-JAX reference (lax.scan) on the raw f32 params for the correctness check.
# --------------------------------------------------------------------------
def ref_decoder_forward(tokens, h_0, c_0, lengths, params):
    def mdot(a, b):
        return jnp.dot(a.astype(MXU_DTYPE), b.astype(MXU_DTYPE),
                       preferred_element_type=jnp.float32)

    emb = jnp.take(params["embedding"], tokens, axis=0)
    B, T, D = emb.shape
    H = params["w_hh"].shape[0]
    gx = (mdot(emb.reshape(B * T, D), params["w_ih"])
          + params["b_gates"]).reshape(B, T, 4 * H)

    def step(carry, inp):
        h, c = carry
        t, g_x = inp
        gates = g_x + mdot(h, params["w_hh"])
        i = jax.nn.sigmoid(gates[:, 0 * H:1 * H])
        f = jax.nn.sigmoid(gates[:, 1 * H:2 * H])
        o = jax.nn.sigmoid(gates[:, 2 * H:3 * H])
        g = jnp.tanh(gates[:, 3 * H:4 * H])
        c_new = f * c + i * g
        h_new = o * jnp.tanh(c_new)
        valid = (t < lengths)[:, None]
        h = jnp.where(valid, h_new, h)
        c = jnp.where(valid, c_new, c)
        return (h, c), jnp.where(valid, h_new, 0.0)

    (h_t, c_t), hs = jax.lax.scan(step, (h_0[0], c_0[0]),
                                  (jnp.arange(T), jnp.swapaxes(gx, 0, 1)))
    hs = jnp.swapaxes(hs, 0, 1)                            # (B, T, H)
    logits = (mdot(hs.reshape(B * T, H), params["w_out"])
              + params["b_out"]).reshape(B, T, -1)
    return logits, (h_t[None], c_t[None])


if __name__ == "__main__":
    VOCAB, PAD = 256, 0
    B, T, D, H = 32, 16, 128, 128       # small, vreg/lane-grain-friendly shapes

    key = jax.random.PRNGKey(0)
    ks = jax.random.split(key, 10)
    scale = 0.1
    emb_tab = scale * jax.random.normal(ks[0], (VOCAB, D), jnp.float32)
    emb_tab = emb_tab.at[PAD].set(0.0)   # padding_idx row is zero

    params = {
        "embedding": emb_tab,
        # weights stored transposed vs PyTorch so kernels do x @ W directly;
        # b_gates = b_ih + b_hh folded into one (1, 4H) bias; w_out = linear.weight.T
        # gate column order: [i, f, o, g]
        "w_ih": scale * jax.random.normal(ks[1], (D, 4 * H), jnp.float32),
        "w_hh": scale * jax.random.normal(ks[2], (H, 4 * H), jnp.float32),
        "b_gates": scale * jax.random.normal(ks[3], (1, 4 * H), jnp.float32),
        "w_out": scale * jax.random.normal(ks[4], (H, VOCAB), jnp.float32),
        "b_out": scale * jax.random.normal(ks[5], (1, VOCAB), jnp.float32),
    }

    lengths = jax.random.randint(ks[6], (B,), 4, T + 1, dtype=jnp.int32)
    lengths = lengths.at[0].set(T)       # at least one full-length sequence
    tokens = jax.random.randint(ks[7], (B, T), 1, VOCAB, dtype=jnp.int32)
    tokens = jnp.where(jnp.arange(T)[None, :] >= lengths[:, None], PAD, tokens)
    h_0 = scale * jax.random.normal(ks[8], (1, B, H), jnp.float32)
    c_0 = scale * jax.random.normal(ks[9], (1, B, H), jnp.float32)

    prepared = prepare_decoder_params(params)
    logits, (h_t, c_t) = decoder_forward(tokens, h_0, c_0, lengths, prepared)
    logits = jax.block_until_ready(logits)

    ref_logits, (ref_h, ref_c) = ref_decoder_forward(tokens, h_0, c_0,
                                                     lengths, params)
    np.testing.assert_allclose(np.asarray(logits), np.asarray(ref_logits),
                               rtol=2e-2, atol=2e-2)
    np.testing.assert_allclose(np.asarray(h_t), np.asarray(ref_h),
                               rtol=2e-2, atol=2e-2)
    np.testing.assert_allclose(np.asarray(c_t), np.asarray(ref_c),
                               rtol=2e-2, atol=2e-2)

    print("KERNEL_OK")
</pallas_src>

<mosaic_0001>
module attributes {stable_mosaic.version = 11 : i64} {
  func.func @decoder_lstm_kernel(%arg0: i32, %arg1: i32, %arg2: memref<16x1xi32, #tpu.memory_space<vmem>>, %arg3: memref<16x4096xbf16, #tpu.memory_space<vmem>>, %arg4: memref<16x128xf32, #tpu.memory_space<vmem>>, %arg5: memref<16x128xf32, #tpu.memory_space<vmem>>, %arg6: memref<128x512xbf16, #tpu.memory_space<vmem>>, %arg7: memref<128x256xbf16, #tpu.memory_space<vmem>>, %arg8: memref<1x256xf32, #tpu.memory_space<vmem>>, %arg9: memref<16x2048xf32, #tpu.memory_space<vmem>>, %arg10: memref<16x128xf32, #tpu.memory_space<vmem>>, %arg11: memref<16x128xf32, #tpu.memory_space<vmem>>) attributes {dimension_semantics = [#tpu.dimension_semantics<parallel>, #tpu.dimension_semantics<arbitrary>], iteration_bounds = array<i64: 2, 2>, scalar_prefetch = 0 : i64, scratch_operands = 0 : i64, tpu.core_type = #tpu.core_type<tc>, window_params = [{transform_indices = @transform_0, window_bounds = array<i64: 16, 1>}, {transform_indices = @transform_1, window_bounds = array<i64: 16, 4096>}, {transform_indices = @transform_2, window_bounds = array<i64: 16, 128>}, {transform_indices = @transform_3, window_bounds = array<i64: 16, 128>}, {pipeline_mode = #tpu.pipeline_mode<synchronous>, transform_indices = @transform_4, window_bounds = array<i64: 128, 512>}, {pipeline_mode = #tpu.pipeline_mode<synchronous>, transform_indices = @transform_5, window_bounds = array<i64: 128, 256>}, {pipeline_mode = #tpu.pipeline_mode<synchronous>, transform_indices = @transform_6, window_bounds = array<i64: 1, 256>}, {transform_indices = @transform_7, window_bounds = array<i64: 16, 2048>}, {transform_indices = @transform_8, window_bounds = array<i64: 16, 128>}, {transform_indices = @transform_9, window_bounds = array<i64: 16, 128>}]} {
    %c0_i32 = arith.constant 0 : i32
    %0 = arith.cmpi eq, %arg1, %c0_i32 : i32
    %1 = arith.extui %0 : i1 to i32
    %c0_i32_0 = arith.constant 0 : i32
    %2 = arith.cmpi ne, %1, %c0_i32_0 : i32
    scf.if %2 {
      %c0_69 = arith.constant 0 : index
      %c0_70 = arith.constant 0 : index
      %324 = vector.load %arg4[%c0_69, %c0_70] : memref<16x128xf32, #tpu.memory_space<vmem>>, vector<16x128xf32>
      %c0_71 = arith.constant 0 : index
      %c0_72 = arith.constant 0 : index
      %325 = vector.load %arg10[%c0_71, %c0_72] : memref<16x128xf32, #tpu.memory_space<vmem>>, vector<16x128xf32>
      tpu.vector_store %arg10[%c0_71, %c0_72], %324 {strides = array<i32>} : memref<16x128xf32, #tpu.memory_space<vmem>>, vector<16x128xf32>,
      %c0_73 = arith.constant 0 : index
      %c0_74 = arith.constant 0 : index
      %326 = vector.load %arg5[%c0_73, %c0_74] : memref<16x128xf32, #tpu.memory_space<vmem>>, vector<16x128xf32>
      %c0_75 = arith.constant 0 : index
      %c0_76 = arith.constant 0 : index
      %327 = vector.load %arg11[%c0_75, %c0_76] : memref<16x128xf32, #tpu.memory_space<vmem>>, vector<16x128xf32>
      tpu.vector_store %arg11[%c0_75, %c0_76], %326 {strides = array<i32>} : memref<16x128xf32, #tpu.memory_space<vmem>>, vector<16x128xf32>,
    } else {
    }
    %c0 = arith.constant 0 : index
    %c0_1 = arith.constant 0 : index
    %3 = vector.load %arg6[%c0, %c0_1] : memref<128x512xbf16, #tpu.memory_space<vmem>>, vector<128x512xbf16>
    %c0_2 = arith.constant 0 : index
    %c0_3 = arith.constant 0 : index
    %4 = vector.load %arg7[%c0_2, %c0_3] : memref<128x256xbf16, #tpu.memory_space<vmem>>, vector<128x256xbf16>
    %c0_4 = arith.constant 0 : index
    %c0_5 = arith.constant 0 : index
    %5 = vector.load %arg8[%c0_4, %c0_5] : memref<1x256xf32, #tpu.memory_space<vmem>>, vector<1x256xf32>
    %c0_6 = arith.constant 0 : index
    %c0_7 = arith.constant 0 : index
    %6 = vector.load %arg2[%c0_6, %c0_7] : memref<16x1xi32, #tpu.memory_space<vmem>>, vector<16x1xi32>
    %c8_i32 = arith.constant 8 : i32
    %7 = arith.muli %arg1, %c8_i32 : i32
    %c0_8 = arith.constant 0 : index
    %c0_9 = arith.constant 0 : index
    %8 = vector.load %arg10[%c0_8, %c0_9] : memref<16x128xf32, #tpu.memory_space<vmem>>, vector<16x128xf32>
    %c0_10 = arith.constant 0 : index
    %c0_11 = arith.constant 0 : index
    %9 = vector.load %arg11[%c0_10, %c0_11] : memref<16x128xf32, #tpu.memory_space<vmem>>, vector<16x128xf32>
    %c0_12 = arith.constant 0 : index
    %c0_13 = arith.constant 0 : index
    %10 = vector.load %arg3[%c0_12, %c0_13] : memref<16x4096xbf16, #tpu.memory_space<vmem>>, vector<16x512xbf16>
    %11 = arith.truncf %8 : vector<16x128xf32> to vector<16x128xbf16>
    %cst = arith.constant dense<0.000000e+00> : vector<16x512xf32>
    %12 = tpu.matmul %11, %3, %cst {dimension_numbers = #tpu.dot_dimension_numbers<[1], [0], [0], [1], [0, 0, 1, 1], [], []>} : vector<16x128xbf16>, vector<128x512xbf16>, vector<16x512xf32> -> vector<16x512xf32>
    %13 = arith.extf %10 : vector<16x512xbf16> to vector<16x512xf32>
    %14 = arith.addf %13, %12 : vector<16x512xf32>
    %15 = vector.extract_strided_slice %14 {offsets = [0, 0], sizes = [16, 384], strides = [1, 1]} : vector<16x512xf32> to vector<16x384xf32>
    %16 = arith.negf %15 : vector<16x384xf32>
    %17 = math.exp %16 : vector<16x384xf32>
    %cst_14 = arith.constant 1.000000e+00 : f32
    %18 = vector.broadcast %cst_14 : f32 to vector<16x384xf32>
    %19 = arith.addf %18, %17 : vector<16x384xf32>
    %20 = arith.divf %18, %19 : vector<16x384xf32>
    %21 = vector.extract_strided_slice %14 {offsets = [0, 384], sizes = [16, 128], strides = [1, 1]} : vector<16x512xf32> to vector<16x128xf32>
    %22 = math.tanh %21 : vector<16x128xf32>
    %23 = vector.extract_strided_slice %20 {offsets = [0, 128], sizes = [16, 128], strides = [1, 1]} : vector<16x384xf32> to vector<16x128xf32>
    %24 = arith.mulf %23, %9 : vector<16x128xf32>
    %25 = vector.extract_strided_slice %20 {offsets = [0, 0], sizes = [16, 128], strides = [1, 1]} : vector<16x384xf32> to vector<16x128xf32>
    %26 = arith.mulf %25, %22 : vector<16x128xf32>
    %27 = arith.addf %24, %26 : vector<16x128xf32>
    %28 = vector.extract_strided_slice %20 {offsets = [0, 256], sizes = [16, 128], strides = [1, 1]} : vector<16x384xf32> to vector<16x128xf32>
    %29 = math.tanh %27 : vector<16x128xf32>
    %30 = arith.mulf %28, %29 : vector<16x128xf32>
    %c0_i32_15 = arith.constant 0 : i32
    %31 = arith.addi %7, %c0_i32_15 : i32
    %32 = vector.broadcast %31 : i32 to vector<16x1xi32>
    %33 = arith.cmpi slt, %32, %6 : vector<16x1xi32>
    %34 = vector.shape_cast %33 : vector<16x1xi1> to vector<16x1xi1>
    %35 = vector.broadcast %34 : vector<16x1xi1> to vector<16x128xi1>
    %36 = arith.select %35, %30, %8 : vector<16x128xi1>, vector<16x128xf32>
    %37 = vector.shape_cast %33 : vector<16x1xi1> to vector<16x1xi1>
    %38 = vector.broadcast %37 : vector<16x1xi1> to vector<16x128xi1>
    %39 = arith.select %38, %27, %9 : vector<16x128xi1>, vector<16x128xf32>
    %cst_16 = arith.constant 0.000000e+00 : f32
    %40 = vector.shape_cast %33 : vector<16x1xi1> to vector<16x1xi1>
    %41 = vector.broadcast %40 : vector<16x1xi1> to vector<16x128xi1>
    %42 = vector.broadcast %cst_16 : f32 to vector<16x128xf32>
    %43 = arith.select %41, %30, %42 : vector<16x128xi1>, vector<16x128xf32>
    %44 = arith.truncf %43 : vector<16x128xf32> to vector<16x128xbf16>
    %cst_17 = arith.constant dense<0.000000e+00> : vector<16x256xf32>
    %45 = tpu.matmul %44, %4, %cst_17 {dimension_numbers = #tpu.dot_dimension_numbers<[1], [0], [0], [1], [0, 0, 1, 1], [], []>} : vector<16x128xbf16>, vector<128x256xbf16>, vector<16x256xf32> -> vector<16x256xf32>
    %46 = vector.broadcast %5 : vector<1x256xf32> to vector<16x256xf32>
    %47 = arith.addf %45, %46 : vector<16x256xf32>
    %c0_18 = arith.constant 0 : index
    %c0_19 = arith.constant 0 : index
    %48 = vector.load %arg9[%c0_18, %c0_19] : memref<16x2048xf32, #tpu.memory_space<vmem>>, vector<16x256xf32>
    tpu.vector_store %arg9[%c0_18, %c0_19], %47 {strides = array<i32>} : memref<16x2048xf32, #tpu.memory_space<vmem>>, vector<16x256xf32>,
    %c0_20 = arith.constant 0 : index
    %c512 = arith.constant 512 : index
    %49 = vector.load %arg3[%c0_20, %c512] : memref<16x4096xbf16, #tpu.memory_space<vmem>>, vector<16x512xbf16>
    %50 = arith.truncf %36 : vector<16x128xf32> to vector<16x128xbf16>
    %cst_21 = arith.constant dense<0.000000e+00> : vector<16x512xf32>
    %51 = tpu.matmul %50, %3, %cst_21 {dimension_numbers = #tpu.dot_dimension_numbers<[1], [0], [0], [1], [0, 0, 1, 1], [], []>} : vector<16x128xbf16>, vector<128x512xbf16>, vector<16x512xf32> -> vector<16x512xf32>
    %52 = arith.extf %49 : vector<16x512xbf16> to vector<16x512xf32>
    %53 = arith.addf %52, %51 : vector<16x512xf32>
    %54 = vector.extract_strided_slice %53 {offsets = [0, 0], sizes = [16, 384], strides = [1, 1]} : vector<16x512xf32> to vector<16x384xf32>
    %55 = arith.negf %54 : vector<16x384xf32>
    %56 = math.exp %55 : vector<16x384xf32>
    %cst_22 = arith.constant 1.000000e+00 : f32
    %57 = vector.broadcast %cst_22 : f32 to vector<16x384xf32>
    %58 = arith.addf %57, %56 : vector<16x384xf32>
    %59 = arith.divf %57, %58 : vector<16x384xf32>
    %60 = vector.extract_strided_slice %53 {offsets = [0, 384], sizes = [16, 128], strides = [1, 1]} : vector<16x512xf32> to vector<16x128xf32>
    %61 = math.tanh %60 : vector<16x128xf32>
    %62 = vector.extract_strided_slice %59 {offsets = [0, 128], sizes = [16, 128], strides = [1, 1]} : vector<16x384xf32> to vector<16x128xf32>
    %63 = arith.mulf %62, %39 : vector<16x128xf32>
    %64 = vector.extract_strided_slice %59 {offsets = [0, 0], sizes = [16, 128], strides = [1, 1]} : vector<16x384xf32> to vector<16x128xf32>
    %65 = arith.mulf %64, %61 : vector<16x128xf32>
    %66 = arith.addf %63, %65 : vector<16x128xf32>
    %67 = vector.extract_strided_slice %59 {offsets = [0, 256], sizes = [16, 128], strides = [1, 1]} : vector<16x384xf32> to vector<16x128xf32>
    %68 = math.tanh %66 : vector<16x128xf32>
    %69 = arith.mulf %67, %68 : vector<16x128xf32>
    %c1_i32 = arith.constant 1 : i32
    %70 = arith.addi %7, %c1_i32 : i32
    %71 = vector.broadcast %70 : i32 to vector<16x1xi32>
    %72 = arith.cmpi slt, %71, %6 : vector<16x1xi32>
    %73 = vector.shape_cast %72 : vector<16x1xi1> to vector<16x1xi1>
    %74 = vector.broadcast %73 : vector<16x1xi1> to vector<16x128xi1>
    %75 = arith.select %74, %69, %36 : vector<16x128xi1>, vector<16x128xf32>
    %76 = vector.shape_cast %72 : vector<16x1xi1> to vector<16x1xi1>
    %77 = vector.broadcast %76 : vector<16x1xi1> to vector<16x128xi1>
    %78 = arith.select %77, %66, %39 : vector<16x128xi1>, vector<16x128xf32>
    %cst_23 = arith.constant 0.000000e+00 : f32
    %79 = vector.shape_cast %72 : vector<16x1xi1> to vector<16x1xi1>
    %80 = vector.broadcast %79 : vector<16x1xi1> to vector<16x128xi1>
    %81 = vector.broadcast %cst_23 : f32 to vector<16x128xf32>
    %82 = arith.select %80, %69, %81 : vector<16x128xi1>, vector<16x128xf32>
    %83 = arith.truncf %82 : vector<16x128xf32> to vector<16x128xbf16>
    %cst_24 = arith.constant dense<0.000000e+00> : vector<16x256xf32>
    %84 = tpu.matmul %83, %4, %cst_24 {dimension_numbers = #tpu.dot_dimension_numbers<[1], [0], [0], [1], [0, 0, 1, 1], [], []>} : vector<16x128xbf16>, vector<128x256xbf16>, vector<16x256xf32> -> vector<16x256xf32>
    %85 = vector.broadcast %5 : vector<1x256xf32> to vector<16x256xf32>
    %86 = arith.addf %84, %85 : vector<16x256xf32>
    %c0_25 = arith.constant 0 : index
    %c256 = arith.constant 256 : index
    %87 = vector.load %arg9[%c0_25, %c256] : memref<16x2048xf32, #tpu.memory_space<vmem>>, vector<16x256xf32>
    tpu.vector_store %arg9[%c0_25, %c256], %86 {strides = array<i32>} : memref<16x2048xf32, #tpu.memory_space<vmem>>, vector<16x256xf32>,
    %c0_26 = arith.constant 0 : index
    %c1024 = arith.constant 1024 : index
    %88 = vector.load %arg3[%c0_26, %c1024] : memref<16x4096xbf16, #tpu.memory_space<vmem>>, vector<16x512xbf16>
    %89 = arith.truncf %75 : vector<16x128xf32> to vector<16x128xbf16>
    %cst_27 = arith.constant dense<0.000000e+00> : vector<16x512xf32>
    %90 = tpu.matmul %89, %3, %cst_27 {dimension_numbers = #tpu.dot_dimension_numbers<[1], [0], [0], [1], [0, 0, 1, 1], [], []>} : vector<16x128xbf16>, vector<128x512xbf16>, vector<16x512xf32> -> vector<16x512xf32>
    %91 = arith.extf %88 : vector<16x512xbf16> to vector<16x512xf32>
    %92 = arith.addf %91, %90 : vector<16x512xf32>
    %93 = vector.extract_strided_slice %92 {offsets = [0, 0], sizes = [16, 384], strides = [1, 1]} : vector<16x512xf32> to vector<16x384xf32>
    %94 = arith.negf %93 : vector<16x384xf32>
    %95 = math.exp %94 : vector<16x384xf32>
    %cst_28 = arith.constant 1.000000e+00 : f32
    %96 = vector.broadcast %cst_28 : f32 to vector<16x384xf32>
    %97 = arith.addf %96, %95 : vector<16x384xf32>
    %98 = arith.divf %96, %97 : vector<16x384xf32>
    %99 = vector.extract_strided_slice %92 {offsets = [0, 384], sizes = [16, 128], strides = [1, 1]} : vector<16x512xf32> to vector<16x128xf32>
    %100 = math.tanh %99 : vector<16x128xf32>
    %101 = vector.extract_strided_slice %98 {offsets = [0, 128], sizes = [16, 128], strides = [1, 1]} : vector<16x384xf32> to vector<16x128xf32>
    %102 = arith.mulf %101, %78 : vector<16x128xf32>
    %103 = vector.extract_strided_slice %98 {offsets = [0, 0], sizes = [16, 128], strides = [1, 1]} : vector<16x384xf32> to vector<16x128xf32>
    %104 = arith.mulf %103, %100 : vector<16x128xf32>
    %105 = arith.addf %102, %104 : vector<16x128xf32>
    %106 = vector.extract_strided_slice %98 {offsets = [0, 256], sizes = [16, 128], strides = [1, 1]} : vector<16x384xf32> to vector<16x128xf32>
    %107 = math.tanh %105 : vector<16x128xf32>
    %108 = arith.mulf %106, %107 : vector<16x128xf32>
    %c2_i32 = arith.constant 2 : i32
    %109 = arith.addi %7, %c2_i32 : i32
    %110 = vector.broadcast %109 : i32 to vector<16x1xi32>
    %111 = arith.cmpi slt, %110, %6 : vector<16x1xi32>
    %112 = vector.shape_cast %111 : vector<16x1xi1> to vector<16x1xi1>
    %113 = vector.broadcast %112 : vector<16x1xi1> to vector<16x128xi1>
    %114 = arith.select %113, %108, %75 : vector<16x128xi1>, vector<16x128xf32>
    %115 = vector.shape_cast %111 : vector<16x1xi1> to vector<16x1xi1>
    %116 = vector.broadcast %115 : vector<16x1xi1> to vector<16x128xi1>
    %117 = arith.select %116, %105, %78 : vector<16x128xi1>, vector<16x128xf32>
    %cst_29 = arith.constant 0.000000e+00 : f32
    %118 = vector.shape_cast %111 : vector<16x1xi1> to vector<16x1xi1>
    %119 = vector.broadcast %118 : vector<16x1xi1> to vector<16x128xi1>
    %120 = vector.broadcast %cst_29 : f32 to vector<16x128xf32>
    %121 = arith.select %119, %108, %120 : vector<16x128xi1>, vector<16x128xf32>
    %122 = arith.truncf %121 : vector<16x128xf32> to vector<16x128xbf16>
    %cst_30 = arith.constant dense<0.000000e+00> : vector<16x256xf32>
    %123 = tpu.matmul %122, %4, %cst_30 {dimension_numbers = #tpu.dot_dimension_numbers<[1], [0], [0], [1], [0, 0, 1, 1], [], []>} : vector<16x128xbf16>, vector<128x256xbf16>, vector<16x256xf32> -> vector<16x256xf32>
    %124 = vector.broadcast %5 : vector<1x256xf32> to vector<16x256xf32>
    %125 = arith.addf %123, %124 : vector<16x256xf32>
    %c0_31 = arith.constant 0 : index
    %c512_32 = arith.constant 512 : index
    %126 = vector.load %arg9[%c0_31, %c512_32] : memref<16x2048xf32, #tpu.memory_space<vmem>>, vector<16x256xf32>
    tpu.vector_store %arg9[%c0_31, %c512_32], %125 {strides = array<i32>} : memref<16x2048xf32, #tpu.memory_space<vmem>>, vector<16x256xf32>,
    %c0_33 = arith.constant 0 : index
    %c1536 = arith.constant 1536 : index
    %127 = vector.load %arg3[%c0_33, %c1536] : memref<16x4096xbf16, #tpu.memory_space<vmem>>, vector<16x512xbf16>
    %128 = arith.truncf %114 : vector<16x128xf32> to vector<16x128xbf16>
    %cst_34 = arith.constant dense<0.000000e+00> : vector<16x512xf32>
    %129 = tpu.matmul %128, %3, %cst_34 {dimension_numbers = #tpu.dot_dimension_numbers<[1], [0], [0], [1], [0, 0, 1, 1], [], []>} : vector<16x128xbf16>, vector<128x512xbf16>, vector<16x512xf32> -> vector<16x512xf32>
    %130 = arith.extf %127 : vector<16x512xbf16> to vector<16x512xf32>
    %131 = arith.addf %130, %129 : vector<16x512xf32>
    %132 = vector.extract_strided_slice %131 {offsets = [0, 0], sizes = [16, 384], strides = [1, 1]} : vector<16x512xf32> to vector<16x384xf32>
    %133 = arith.negf %132 : vector<16x384xf32>
    %134 = math.exp %133 : vector<16x384xf32>
    %cst_35 = arith.constant 1.000000e+00 : f32
    %135 = vector.broadcast %cst_35 : f32 to vector<16x384xf32>
    %136 = arith.addf %135, %134 : vector<16x384xf32>
    %137 = arith.divf %135, %136 : vector<16x384xf32>
    %138 = vector.extract_strided_slice %131 {offsets = [0, 384], sizes = [16, 128], strides = [1, 1]} : vector<16x512xf32> to vector<16x128xf32>
    %139 = math.tanh %138 : vector<16x128xf32>
    %140 = vector.extract_strided_slice %137 {offsets = [0, 128], sizes = [16, 128], strides = [1, 1]} : vector<16x384xf32> to vector<16x128xf32>
    %141 = arith.mulf %140, %117 : vector<16x128xf32>
    %142 = vector.extract_strided_slice %137 {offsets = [0, 0], sizes = [16, 128], strides = [1, 1]} : vector<16x384xf32> to vector<16x128xf32>
    %143 = arith.mulf %142, %139 : vector<16x128xf32>
    %144 = arith.addf %141, %143 : vector<16x128xf32>
    %145 = vector.extract_strided_slice %137 {offsets = [0, 256], sizes = [16, 128], strides = [1, 1]} : vector<16x384xf32> to vector<16x128xf32>
    %146 = math.tanh %144 : vector<16x128xf32>
    %147 = arith.mulf %145, %146 : vector<16x128xf32>
    %c3_i32 = arith.constant 3 : i32
    %148 = arith.addi %7, %c3_i32 : i32
    %149 = vector.broadcast %148 : i32 to vector<16x1xi32>
    %150 = arith.cmpi slt, %149, %6 : vector<16x1xi32>
    %151 = vector.shape_cast %150 : vector<16x1xi1> to vector<16x1xi1>
    %152 = vector.broadcast %151 : vector<16x1xi1> to vector<16x128xi1>
    %153 = arith.select %152, %147, %114 : vector<16x128xi1>, vector<16x128xf32>
    %154 = vector.shape_cast %150 : vector<16x1xi1> to vector<16x1xi1>
    %155 = vector.broadcast %154 : vector<16x1xi1> to vector<16x128xi1>
    %156 = arith.select %155, %144, %117 : vector<16x128xi1>, vector<16x128xf32>
    %cst_36 = arith.constant 0.000000e+00 : f32
    %157 = vector.shape_cast %150 : vector<16x1xi1> to vector<16x1xi1>
    %158 = vector.broadcast %157 : vector<16x1xi1> to vector<16x128xi1>
    %159 = vector.broadcast %cst_36 : f32 to vector<16x128xf32>
    %160 = arith.select %158, %147, %159 : vector<16x128xi1>, vector<16x128xf32>
    %161 = arith.truncf %160 : vector<16x128xf32> to vector<16x128xbf16>
    %cst_37 = arith.constant dense<0.000000e+00> : vector<16x256xf32>
    %162 = tpu.matmul %161, %4, %cst_37 {dimension_numbers = #tpu.dot_dimension_numbers<[1], [0], [0], [1], [0, 0, 1, 1], [], []>} : vector<16x128xbf16>, vector<128x256xbf16>, vector<16x256xf32> -> vector<16x256xf32>
    %163 = vector.broadcast %5 : vector<1x256xf32> to vector<16x256xf32>
    %164 = arith.addf %162, %163 : vector<16x256xf32>
    %c0_38 = arith.constant 0 : index
    %c768 = arith.constant 768 : index
    %165 = vector.load %arg9[%c0_38, %c768] : memref<16x2048xf32, #tpu.memory_space<vmem>>, vector<16x256xf32>
    tpu.vector_store %arg9[%c0_38, %c768], %164 {strides = array<i32>} : memref<16x2048xf32, #tpu.memory_space<vmem>>, vector<16x256xf32>,
    %c0_39 = arith.constant 0 : index
    %c2048 = arith.constant 2048 : index
    %166 = vector.load %arg3[%c0_39, %c2048] : memref<16x4096xbf16, #tpu.memory_space<vmem>>, vector<16x512xbf16>
    %167 = arith.truncf %153 : vector<16x128xf32> to vector<16x128xbf16>
    %cst_40 = arith.constant dense<0.000000e+00> : vector<16x512xf32>
    %168 = tpu.matmul %167, %3, %cst_40 {dimension_numbers = #tpu.dot_dimension_numbers<[1], [0], [0], [1], [0, 0, 1, 1], [], []>} : vector<16x128xbf16>, vector<128x512xbf16>, vector<16x512xf32> -> vector<16x512xf32>
    %169 = arith.extf %166 : vector<16x512xbf16> to vector<16x512xf32>
    %170 = arith.addf %169, %168 : vector<16x512xf32>
    %171 = vector.extract_strided_slice %170 {offsets = [0, 0], sizes = [16, 384], strides = [1, 1]} : vector<16x512xf32> to vector<16x384xf32>
    %172 = arith.negf %171 : vector<16x384xf32>
    %173 = math.exp %172 : vector<16x384xf32>
    %cst_41 = arith.constant 1.000000e+00 : f32
    %174 = vector.broadcast %cst_41 : f32 to vector<16x384xf32>
    %175 = arith.addf %174, %173 : vector<16x384xf32>
    %176 = arith.divf %174, %175 : vector<16x384xf32>
    %177 = vector.extract_strided_slice %170 {offsets = [0, 384], sizes = [16, 128], strides = [1, 1]} : vector<16x512xf32> to vector<16x128xf32>
    %178 = math.tanh %177 : vector<16x128xf32>
    %179 = vector.extract_strided_slice %176 {offsets = [0, 128], sizes = [16, 128], strides = [1, 1]} : vector<16x384xf32> to vector<16x128xf32>
    %180 = arith.mulf %179, %156 : vector<16x128xf32>
    %181 = vector.extract_strided_slice %176 {offsets = [0, 0], sizes = [16, 128], strides = [1, 1]} : vector<16x384xf32> to vector<16x128xf32>
    %182 = arith.mulf %181, %178 : vector<16x128xf32>
    %183 = arith.addf %180, %182 : vector<16x128xf32>
    %184 = vector.extract_strided_slice %176 {offsets = [0, 256], sizes = [16, 128], strides = [1, 1]} : vector<16x384xf32> to vector<16x128xf32>
    %185 = math.tanh %183 : vector<16x128xf32>
    %186 = arith.mulf %184, %185 : vector<16x128xf32>
    %c4_i32 = arith.constant 4 : i32
    %187 = arith.addi %7, %c4_i32 : i32
    %188 = vector.broadcast %187 : i32 to vector<16x1xi32>
    %189 = arith.cmpi slt, %188, %6 : vector<16x1xi32>
    %190 = vector.shape_cast %189 : vector<16x1xi1> to vector<16x1xi1>
    %191 = vector.broadcast %190 : vector<16x1xi1> to vector<16x128xi1>
    %192 = arith.select %191, %186, %153 : vector<16x128xi1>, vector<16x128xf32>
    %193 = vector.shape_cast %189 : vector<16x1xi1> to vector<16x1xi1>
    %194 = vector.broadcast %193 : vector<16x1xi1> to vector<16x128xi1>
    %195 = arith.select %194, %183, %156 : vector<16x128xi1>, vector<16x128xf32>
    %cst_42 = arith.constant 0.000000e+00 : f32
    %196 = vector.shape_cast %189 : vector<16x1xi1> to vector<16x1xi1>
    %197 = vector.broadcast %196 : vector<16x1xi1> to vector<16x128xi1>
    %198 = vector.broadcast %cst_42 : f32 to vector<16x128xf32>
    %199 = arith.select %197, %186, %198 : vector<16x128xi1>, vector<16x128xf32>
    %200 = arith.truncf %199 : vector<16x128xf32> to vector<16x128xbf16>
    %cst_43 = arith.constant dense<0.000000e+00> : vector<16x256xf32>
    %201 = tpu.matmul %200, %4, %cst_43 {dimension_numbers = #tpu.dot_dimension_numbers<[1], [0], [0], [1], [0, 0, 1, 1], [], []>} : vector<16x128xbf16>, vector<128x256xbf16>, vector<16x256xf32> -> vector<16x256xf32>
    %202 = vector.broadcast %5 : vector<1x256xf32> to vector<16x256xf32>
    %203 = arith.addf %201, %202 : vector<16x256xf32>
    %c0_44 = arith.constant 0 : index
    %c1024_45 = arith.constant 1024 : index
    %204 = vector.load %arg9[%c0_44, %c1024_45] : memref<16x2048xf32, #tpu.memory_space<vmem>>, vector<16x256xf32>
    tpu.vector_store %arg9[%c0_44, %c1024_45], %203 {strides = array<i32>} : memref<16x2048xf32, #tpu.memory_space<vmem>>, vector<16x256xf32>,
    %c0_46 = arith.constant 0 : index
    %c2560 = arith.constant 2560 : index
    %205 = vector.load %arg3[%c0_46, %c2560] : memref<16x4096xbf16, #tpu.memory_space<vmem>>, vector<16x512xbf16>
    %206 = arith.truncf %192 : vector<16x128xf32> to vector<16x128xbf16>
    %cst_47 = arith.constant dense<0.000000e+00> : vector<16x512xf32>
    %207 = tpu.matmul %206, %3, %cst_47 {dimension_numbers = #tpu.dot_dimension_numbers<[1], [0], [0], [1], [0, 0, 1, 1], [], []>} : vector<16x128xbf16>, vector<128x512xbf16>, vector<16x512xf32> -> vector<16x512xf32>
    %208 = arith.extf %205 : vector<16x512xbf16> to vector<16x512xf32>
    %209 = arith.addf %208, %207 : vector<16x512xf32>
    %210 = vector.extract_strided_slice %209 {offsets = [0, 0], sizes = [16, 384], strides = [1, 1]} : vector<16x512xf32> to vector<16x384xf32>
    %211 = arith.negf %210 : vector<16x384xf32>
    %212 = math.exp %211 : vector<16x384xf32>
    %cst_48 = arith.constant 1.000000e+00 : f32
    %213 = vector.broadcast %cst_48 : f32 to vector<16x384xf32>
    %214 = arith.addf %213, %212 : vector<16x384xf32>
    %215 = arith.divf %213, %214 : vector<16x384xf32>
    %216 = vector.extract_strided_slice %209 {offsets = [0, 384], sizes = [16, 128], strides = [1, 1]} : vector<16x512xf32> to vector<16x128xf32>
    %217 = math.tanh %216 : vector<16x128xf32>
    %218 = vector.extract_strided_slice %215 {offsets = [0, 128], sizes = [16, 128], strides = [1, 1]} : vector<16x384xf32> to vector<16x128xf32>
    %219 = arith.mulf %218, %195 : vector<16x128xf32>
    %220 = vector.extract_strided_slice %215 {offsets = [0, 0], sizes = [16, 128], strides = [1, 1]} : vector<16x384xf32> to vector<16x128xf32>
    %221 = arith.mulf %220, %217 : vector<16x128xf32>
    %222 = arith.addf %219, %221 : vector<16x128xf32>
    %223 = vector.extract_strided_slice %215 {offsets = [0, 256], sizes = [16, 128], strides = [1, 1]} : vector<16x384xf32> to vector<16x128xf32>
    %224 = math.tanh %222 : vector<16x128xf32>
    %225 = arith.mulf %223, %224 : vector<16x128xf32>
    %c5_i32 = arith.constant 5 : i32
    %226 = arith.addi %7, %c5_i32 : i32
    %227 = vector.broadcast %226 : i32 to vector<16x1xi32>
    %228 = arith.cmpi slt, %227, %6 : vector<16x1xi32>
    %229 = vector.shape_cast %228 : vector<16x1xi1> to vector<16x1xi1>
    %230 = vector.broadcast %229 : vector<16x1xi1> to vector<16x128xi1>
    %231 = arith.select %230, %225, %192 : vector<16x128xi1>, vector<16x128xf32>
    %232 = vector.shape_cast %228 : vector<16x1xi1> to vector<16x1xi1>
    %233 = vector.broadcast %232 : vector<16x1xi1> to vector<16x128xi1>
    %234 = arith.select %233, %222, %195 : vector<16x128xi1>, vector<16x128xf32>
    %cst_49 = arith.constant 0.000000e+00 : f32
    %235 = vector.shape_cast %228 : vector<16x1xi1> to vector<16x1xi1>
    %236 = vector.broadcast %235 : vector<16x1xi1> to vector<16x128xi1>
    %237 = vector.broadcast %cst_49 : f32 to vector<16x128xf32>
    %238 = arith.select %236, %225, %237 : vector<16x128xi1>, vector<16x128xf32>
    %239 = arith.truncf %238 : vector<16x128xf32> to vector<16x128xbf16>
    %cst_50 = arith.constant dense<0.000000e+00> : vector<16x256xf32>
    %240 = tpu.matmul %239, %4, %cst_50 {dimension_numbers = #tpu.dot_dimension_numbers<[1], [0], [0], [1], [0, 0, 1, 1], [], []>} : vector<16x128xbf16>, vector<128x256xbf16>, vector<16x256xf32> -> vector<16x256xf32>
    %241 = vector.broadcast %5 : vector<1x256xf32> to vector<16x256xf32>
    %242 = arith.addf %240, %241 : vector<16x256xf32>
    %c0_51 = arith.constant 0 : index
    %c1280 = arith.constant 1280 : index
    %243 = vector.load %arg9[%c0_51, %c1280] : memref<16x2048xf32, #tpu.memory_space<vmem>>, vector<16x256xf32>
    tpu.vector_store %arg9[%c0_51, %c1280], %242 {strides = array<i32>} : memref<16x2048xf32, #tpu.memory_space<vmem>>, vector<16x256xf32>,
    %c0_52 = arith.constant 0 : index
    %c3072 = arith.constant 3072 : index
    %244 = vector.load %arg3[%c0_52, %c3072] : memref<16x4096xbf16, #tpu.memory_space<vmem>>, vector<16x512xbf16>
    %245 = arith.truncf %231 : vector<16x128xf32> to vector<16x128xbf16>
    %cst_53 = arith.constant dense<0.000000e+00> : vector<16x512xf32>
    %246 = tpu.matmul %245, %3, %cst_53 {dimension_numbers = #tpu.dot_dimension_numbers<[1], [0], [0], [1], [0, 0, 1, 1], [], []>} : vector<16x128xbf16>, vector<128x512xbf16>, vector<16x512xf32> -> vector<16x512xf32>
    %247 = arith.extf %244 : vector<16x512xbf16> to vector<16x512xf32>
    %248 = arith.addf %247, %246 : vector<16x512xf32>
    %249 = vector.extract_strided_slice %248 {offsets = [0, 0], sizes = [16, 384], strides = [1, 1]} : vector<16x512xf32> to vector<16x384xf32>
    %250 = arith.negf %249 : vector<16x384xf32>
    %251 = math.exp %250 : vector<16x384xf32>
    %cst_54 = arith.constant 1.000000e+00 : f32
    %252 = vector.broadcast %cst_54 : f32 to vector<16x384xf32>
    %253 = arith.addf %252, %251 : vector<16x384xf32>
    %254 = arith.divf %252, %253 : vector<16x384xf32>
    %255 = vector.extract_strided_slice %248 {offsets = [0, 384], sizes = [16, 128], strides = [1, 1]} : vector<16x512xf32> to vector<16x128xf32>
    %256 = math.tanh %255 : vector<16x128xf32>
    %257 = vector.extract_strided_slice %254 {offsets = [0, 128], sizes = [16, 128], strides = [1, 1]} : vector<16x384xf32> to vector<16x128xf32>
    %258 = arith.mulf %257, %234 : vector<16x128xf32>
    %259 = vector.extract_strided_slice %254 {offsets = [0, 0], sizes = [16, 128], strides = [1, 1]} : vector<16x384xf32> to vector<16x128xf32>
    %260 = arith.mulf %259, %256 : vector<16x128xf32>
    %261 = arith.addf %258, %260 : vector<16x128xf32>
    %262 = vector.extract_strided_slice %254 {offsets = [0, 256], sizes = [16, 128], strides = [1, 1]} : vector<16x384xf32> to vector<16x128xf32>
    %263 = math.tanh %261 : vector<16x128xf32>
    %264 = arith.mulf %262, %263 : vector<16x128xf32>
    %c6_i32 = arith.constant 6 : i32
    %265 = arith.addi %7, %c6_i32 : i32
    %266 = vector.broadcast %265 : i32 to vector<16x1xi32>
    %267 = arith.cmpi slt, %266, %6 : vector<16x1xi32>
    %268 = vector.shape_cast %267 : vector<16x1xi1> to vector<16x1xi1>
    %269 = vector.broadcast %268 : vector<16x1xi1> to vector<16x128xi1>
    %270 = arith.select %269, %264, %231 : vector<16x128xi1>, vector<16x128xf32>
    %271 = vector.shape_cast %267 : vector<16x1xi1> to vector<16x1xi1>
    %272 = vector.broadcast %271 : vector<16x1xi1> to vector<16x128xi1>
    %273 = arith.select %272, %261, %234 : vector<16x128xi1>, vector<16x128xf32>
    %cst_55 = arith.constant 0.000000e+00 : f32
    %274 = vector.shape_cast %267 : vector<16x1xi1> to vector<16x1xi1>
    %275 = vector.broadcast %274 : vector<16x1xi1> to vector<16x128xi1>
    %276 = vector.broadcast %cst_55 : f32 to vector<16x128xf32>
    %277 = arith.select %275, %264, %276 : vector<16x128xi1>, vector<16x128xf32>
    %278 = arith.truncf %277 : vector<16x128xf32> to vector<16x128xbf16>
    %cst_56 = arith.constant dense<0.000000e+00> : vector<16x256xf32>
    %279 = tpu.matmul %278, %4, %cst_56 {dimension_numbers = #tpu.dot_dimension_numbers<[1], [0], [0], [1], [0, 0, 1, 1], [], []>} : vector<16x128xbf16>, vector<128x256xbf16>, vector<16x256xf32> -> vector<16x256xf32>
    %280 = vector.broadcast %5 : vector<1x256xf32> to vector<16x256xf32>
    %281 = arith.addf %279, %280 : vector<16x256xf32>
    %c0_57 = arith.constant 0 : index
    %c1536_58 = arith.constant 1536 : index
    %282 = vector.load %arg9[%c0_57, %c1536_58] : memref<16x2048xf32, #tpu.memory_space<vmem>>, vector<16x256xf32>
    tpu.vector_store %arg9[%c0_57, %c1536_58], %281 {strides = array<i32>} : memref<16x2048xf32, #tpu.memory_space<vmem>>, vector<16x256xf32>,
    %c0_59 = arith.constant 0 : index
    %c3584 = arith.constant 3584 : index
    %283 = vector.load %arg3[%c0_59, %c3584] : memref<16x4096xbf16, #tpu.memory_space<vmem>>, vector<16x512xbf16>
    %284 = arith.truncf %270 : vector<16x128xf32> to vector<16x128xbf16>
    %cst_60 = arith.constant dense<0.000000e+00> : vector<16x512xf32>
    %285 = tpu.matmul %284, %3, %cst_60 {dimension_numbers = #tpu.dot_dimension_numbers<[1], [0], [0], [1], [0, 0, 1, 1], [], []>} : vector<16x128xbf16>, vector<128x512xbf16>, vector<16x512xf32> -> vector<16x512xf32>
    %286 = arith.extf %283 : vector<16x512xbf16> to vector<16x512xf32>
    %287 = arith.addf %286, %285 : vector<16x512xf32>
    %288 = vector.extract_strided_slice %287 {offsets = [0, 0], sizes = [16, 384], strides = [1, 1]} : vector<16x512xf32> to vector<16x384xf32>
    %289 = arith.negf %288 : vector<16x384xf32>
    %290 = math.exp %289 : vector<16x384xf32>
    %cst_61 = arith.constant 1.000000e+00 : f32
    %291 = vector.broadcast %cst_61 : f32 to vector<16x384xf32>
    %292 = arith.addf %291, %290 : vector<16x384xf32>
    %293 = arith.divf %291, %292 : vector<16x384xf32>
    %294 = vector.extract_strided_slice %287 {offsets = [0, 384], sizes = [16, 128], strides = [1, 1]} : vector<16x512xf32> to vector<16x128xf32>
    %295 = math.tanh %294 : vector<16x128xf32>
    %296 = vector.extract_strided_slice %293 {offsets = [0, 128], sizes = [16, 128], strides = [1, 1]} : vector<16x384xf32> to vector<16x128xf32>
    %297 = arith.mulf %296, %273 : vector<16x128xf32>
    %298 = vector.extract_strided_slice %293 {offsets = [0, 0], sizes = [16, 128], strides = [1, 1]} : vector<16x384xf32> to vector<16x128xf32>
    %299 = arith.mulf %298, %295 : vector<16x128xf32>
    %300 = arith.addf %297, %299 : vector<16x128xf32>
    %301 = vector.extract_strided_slice %293 {offsets = [0, 256], sizes = [16, 128], strides = [1, 1]} : vector<16x384xf32> to vector<16x128xf32>
    %302 = math.tanh %300 : vector<16x128xf32>
    %303 = arith.mulf %301, %302 : vector<16x128xf32>
    %c7_i32 = arith.constant 7 : i32
    %304 = arith.addi %7, %c7_i32 : i32
    %305 = vector.broadcast %304 : i32 to vector<16x1xi32>
    %306 = arith.cmpi slt, %305, %6 : vector<16x1xi32>
    %307 = vector.shape_cast %306 : vector<16x1xi1> to vector<16x1xi1>
    %308 = vector.broadcast %307 : vector<16x1xi1> to vector<16x128xi1>
    %309 = arith.select %308, %303, %270 : vector<16x128xi1>, vector<16x128xf32>
    %310 = vector.shape_cast %306 : vector<16x1xi1> to vector<16x1xi1>
    %311 = vector.broadcast %310 : vector<16x1xi1> to vector<16x128xi1>
    %312 = arith.select %311, %300, %273 : vector<16x128xi1>, vector<16x128xf32>
    %cst_62 = arith.constant 0.000000e+00 : f32
    %313 = vector.shape_cast %306 : vector<16x1xi1> to vector<16x1xi1>
    %314 = vector.broadcast %313 : vector<16x1xi1> to vector<16x128xi1>
    %315 = vector.broadcast %cst_62 : f32 to vector<16x128xf32>
    %316 = arith.select %314, %303, %315 : vector<16x128xi1>, vector<16x128xf32>
    %317 = arith.truncf %316 : vector<16x128xf32> to vector<16x128xbf16>
    %cst_63 = arith.constant dense<0.000000e+00> : vector<16x256xf32>
    %318 = tpu.matmul %317, %4, %cst_63 {dimension_numbers = #tpu.dot_dimension_numbers<[1], [0], [0], [1], [0, 0, 1, 1], [], []>} : vector<16x128xbf16>, vector<128x256xbf16>, vector<16x256xf32> -> vector<16x256xf32>
    %319 = vector.broadcast %5 : vector<1x256xf32> to vector<16x256xf32>
    %320 = arith.addf %318, %319 : vector<16x256xf32>
    %c0_64 = arith.constant 0 : index
    %c1792 = arith.constant 1792 : index
    %321 = vector.load %arg9[%c0_64, %c1792] : memref<16x2048xf32, #tpu.memory_space<vmem>>, vector<16x256xf32>
    tpu.vector_store %arg9[%c0_64, %c1792], %320 {strides = array<i32>} : memref<16x2048xf32, #tpu.memory_space<vmem>>, vector<16x256xf32>,
    %c0_65 = arith.constant 0 : index
    %c0_66 = arith.constant 0 : index
    %322 = vector.load %arg10[%c0_65, %c0_66] : memref<16x128xf32, #tpu.memory_space<vmem>>, vector<16x128xf32>
    tpu.vector_store %arg10[%c0_65, %c0_66], %309 {strides = array<i32>} : memref<16x128xf32, #tpu.memory_space<vmem>>, vector<16x128xf32>,
    %c0_67 = arith.constant 0 : index
    %c0_68 = arith.constant 0 : index
    %323 = vector.load %arg11[%c0_67, %c0_68] : memref<16x128xf32, #tpu.memory_space<vmem>>, vector<16x128xf32>
    tpu.vector_store %arg11[%c0_67, %c0_68], %312 {strides = array<i32>} : memref<16x128xf32, #tpu.memory_space<vmem>>, vector<16x128xf32>,
    return
  }
  func.func @transform_0(%arg0: i32, %arg1: i32) -> (i32, i32) {
    %c0_i32 = arith.constant 0 : i32
    %c0_i32_0 = arith.constant 0 : i32
    return %arg0, %c0_i32 : i32, i32
  }
  func.func @transform_1(%arg0: i32, %arg1: i32) -> (i32, i32) {
    %c0_i32 = arith.constant 0 : i32
    return %arg0, %arg1 : i32, i32
  }
  func.func @transform_2(%arg0: i32, %arg1: i32) -> (i32, i32) {
    %c0_i32 = arith.constant 0 : i32
    %c0_i32_0 = arith.constant 0 : i32
    return %arg0, %c0_i32 : i32, i32
  }
  func.func @transform_3(%arg0: i32, %arg1: i32) -> (i32, i32) {
    %c0_i32 = arith.constant 0 : i32
    %c0_i32_0 = arith.constant 0 : i32
    return %arg0, %c0_i32 : i32, i32
  }
  func.func @transform_4(%arg0: i32, %arg1: i32) -> (i32, i32) {
    %c0_i32 = arith.constant 0 : i32
    %c0_i32_0 = arith.constant 0 : i32
    %c0_i32_1 = arith.constant 0 : i32
    return %c0_i32, %c0_i32_0 : i32, i32
  }
  func.func @transform_5(%arg0: i32, %arg1: i32) -> (i32, i32) {
    %c0_i32 = arith.constant 0 : i32
    %c0_i32_0 = arith.constant 0 : i32
    %c0_i32_1 = arith.constant 0 : i32
    return %c0_i32, %c0_i32_0 : i32, i32
  }
  func.func @transform_6(%arg0: i32, %arg1: i32) -> (i32, i32) {
    %c0_i32 = arith.constant 0 : i32
    %c0_i32_0 = arith.constant 0 : i32
    %c0_i32_1 = arith.constant 0 : i32
    return %c0_i32, %c0_i32_0 : i32, i32
  }
  func.func @transform_7(%arg0: i32, %arg1: i32) -> (i32, i32) {
    %c0_i32 = arith.constant 0 : i32
    return %arg0, %arg1 : i32, i32
  }
  func.func @transform_8(%arg0: i32, %arg1: i32) -> (i32, i32) {
    %c0_i32 = arith.constant 0 : i32
    %c0_i32_0 = arith.constant 0 : i32
    return %arg0, %c0_i32 : i32, i32
  }
  func.func @transform_9(%arg0: i32, %arg1: i32) -> (i32, i32) {
    %c0_i32 = arith.constant 0 : i32
    %c0_i32_0 = arith.constant 0 : i32
    return %arg0, %c0_i32 : i32, i32
  }
}

</mosaic_0001>

<bundles_post_ra>
// kernel: tpu_custom_call.1
= control target key start
LH: loop header
LB: loop body
LE: loop exit
PB: predicated region body
PF: predicated region fallthrough
CT: control target
= control target key end

     0   :  { %s5770_s0 = inlined_call_operand.vmem [shape: s32[32,1], index: 0, kind: input, shape index: {}]   ;;  %s5771_s1 = inlined_call_operand.hbm [shape: bf16[32,8192], index: 1, kind: input, shape index: {}]   ;;  %s5772_s2 = inlined_call_operand.vmem [shape: f32[32,128], index: 2, kind: input, shape index: {}]   ;;  %s5773_s3 = inlined_call_operand.hbm [shape: f32[32,128], index: 3, kind: input, shape index: {}]   ;;  %s5774_s4 = inlined_call_operand.hbm [shape: bf16[128,512], index: 4, kind: input, shape index: {}]   ;;  %s5775_s5 = inlined_call_operand.hbm [shape: bf16[128,256], index: 5, kind: input, shape index: {}]   ;;  %s5776_s6 = inlined_call_operand.vmem [shape: f32[1,256], index: 6, kind: input, shape index: {}]   ;;  %s5777_s7 = inlined_call_operand.hbm [shape: f32[32,4096], index: 7, kind: output, shape index: {0}]   ;;  %s5778_s8 = inlined_call_operand.hbm [shape: f32[32,128], index: 8, kind: output, shape index: {1}]   ;;  %s5779_s9 = inlined_call_operand.hbm [shape: f32[32,128], index: 9, kind: output, shape index: {2}]  }
   0x1   :  { %5847 = sst [smem:[#allocation50_spill]] %s5770_s0 }
   0x2   :  { %5848 = sst [smem:[#allocation51_spill]] %s5771_s1 }
   0x3   :  { %5849 = sst [smem:[#allocation52_spill]] %s5772_s2 }
   0x4   :  { %5850 = sst [smem:[#allocation53_spill]] %s5773_s3 }
   0x5   :  { %5851 = sst [smem:[#allocation54_spill]] %s5774_s4 }
   0x6   :  { %5852 = sst [smem:[#allocation55_spill]] %s5775_s5 }
   0x7   :  { %5853 = sst [smem:[#allocation56_spill]] %s5776_s6 }
   0x8   :  { %5854 = sst [smem:[#allocation57_spill]] %s5777_s7 }
   0x9   :  { %5855 = sst [smem:[#allocation58_spill]] %s5778_s8 }
   0xa   :  { %5856 = sst [smem:[#allocation59_spill]] %s5779_s9 }
   0xb   :  { %15 = vsyncpa [#allocation3], 0 }
   0xc   :  { %17 = vsyncpa [#allocation3 + $0x1], 0 }
   0xd   :  { %18 = vsyncpa [#allocation6], 0 }
   0xe   :  { %20 = vsyncpa [#allocation6 + $0x1], 0 }
   0xf   :  { %21 = vsyncpa [#allocation9], 0 }
  0x10   :  { %22 = vsyncpa [#allocation4], 0 }
  0x11   :  { %24 = vsyncpa [#allocation4 + $0x1], 0 }
  0x12   :  { %25 = vsyncpa [#allocation12], 0 }
  0x13   :  { %27 = vsyncpa [#allocation12 + $0x1], 0  ;;  %s4331_s30 = smov 0   ;;  %s4333_s10 = smov 0  }
  0x14   :  { %s4335_s11 = smov 0   ;;  %s4337_s12 = smov 0  }
  0x15   :  { %s4339_s13 = smov 0   ;;  %s4341_s14 = smov 0  }
  0x16   :  { %s4343_s15 = smov 0   ;;  %s4345_s16 = smov 0  }
  0x17   :  { %s4347_s17 = smov 0   ;;  %s4349_s18 = smov 0  }
  0x18   :  { %s4351_s19 = smov 0  }
  0x19 LB: > { %5857 = sst [smem:[#allocation20_spill]] %s4238_s12  ;;  %s4385_s20 = sadd.s32 4294967295, %s4266_s19   ;;  %s4266_s19 = sphi %s4351_s19, %s33_s19   ;;  %s4262_s18 = sphi %s4349_s18, %s6045_s18   ;;  %s4258_s17 = sphi %s4347_s17, %s6044_s17   ;;  %s4254_s16 = sphi %s4345_s16, %s6043_s16   ;;  %s4250_s15 = sphi %s4343_s15, %s6042_s15   ;;  %s4246_s14 = sphi %s4341_s14, %s6051_s14   ;;  %s4242_s13 = sphi %s4339_s13, %s6050_s13   ;;  %s4238_s12 = sphi %s4337_s12, %s6049_s12   ;;  %s4234_s11 = sphi %s4335_s11, %s6048_s11   ;;  %s4230_s10 = sphi %s4333_s10, %s6047_s10   ;;  %s4226_s30 = sphi %s4331_s30, %s6046_s30  }
  0x1a   : > { %5858 = sst [smem:[#allocation21_spill]] %s4250_s15  ;;  %s5780_s21 = sadd.s32 4294967294, %s4266_s19  }
  0x1b   : > { %5859 = sst [smem:[#allocation22_spill]] %s4258_s17  ;;  %p93_p0 = scmp.ne.s32.totalorder %s4242_s13, %s4238_s12 }
  0x1c   : > { %5860 = sst [smem:[#allocation23_spill]] %s4262_s18  ;;  %p5787_p1 = scmp.eq.s32.totalorder %s4385_s20, 0 }
  0x1d   : > { %p145_p2 = scmp.ne.s32.totalorder %s4230_s10, %s4226_s30  ;;  %p234_p3 = scmp.eq.s32.totalorder %s4385_s20, 3 }
  0x1e   : > { %p4395_p4 = por %p5787_p1, %p93_p0  ;;  %p240_p5 = scmp.eq.s32.totalorder %s5780_s21, 3 }
  0x1f   : > { %p4403_p6 = por %p145_p2, %p5787_p1  ;;  %p3164_p7 = scmp.ge.s32.totalorder %s4266_s19, 1 }
  0x20   : > { %p4408_p8 = por %p240_p5, %p93_p0  ;;  %p4412_p9 = por %p240_p5, %p145_p2 }
  0x21   : > { %p299_p10 = scmp.lt.s32.totalorder %s4266_s19, 5  ;;  %s5867_s4 = sld [smem:[#allocation54_spill]] }
  0x22   : > { %s5863_s24 = scalar_select %p4408_p8, 1, 0 }
  0x23   : > { %s5865_s25 = scalar_select %p4412_p9, 1, 0 }
  0x24   : > { %5864 = sst [smem:[#allocation24_spill]] %s5863_s24  ;;  %p4420_p11 = pnand %p3164_p7, %p299_p10 }
  0x25   : > { %5866 = sst [smem:[#allocation25_spill]] %s5865_s25  ;;  %s4268_s30 = smov [#allocation7]  }
  0x26   : > { %s312_s21 = sshll.u32 %s4268_s30, 4  ;;  %p3562_p12 = pneg %p4420_p11  ;;  %s313_s21 = int_to_ptr.vmem [resolvable:$true] %s312_s21 }
  0x27   : > { %s310_s28 = sshll.u32 %s5867_s4, 4  ;;  %s5869_s5 = sld [smem:[#allocation55_spill]]  ;;  %s311_s28 = int_to_ptr.hbm [resolvable:$true] %s310_s28 }
  0x28   : > { %p3563_p13 = pnand %p3562_p12, %p5787_p1  ;;  %s4269_s27 = smov [#allocation8]  }
  0x29   : > { %s326_s4 = sshll.u32 %s4269_s27, 4  ;;  %s4270_s30 = smov 256   ;;  %s327_s4 = int_to_ptr.vmem [resolvable:$true] %s326_s4 }
  0x2a   : > { %s4271_s12 = smov 16   ;;  %s5788_s7 = smov 128  }
  0x2b   : > { %3565 = dma.hbm_to_vmem [thread:$0]  (!%p3563_p13), %s311_s28, 4096, %s313_s21, [#allocation6], %s4270_s30, %s4270_s30, %s4271_s12  }
  0x2c   : > { %s5786_s9 = smov 8   ;;  %s42_s24 = sadd.s32 1, %s4258_s17 }
  0x2d   : > { %s324_s26 = sshll.u32 %s5869_s5, 4  ;;  %p43_p0 = scmp.ge.s32.totalorder %s42_s24, 2  ;;  %s325_s26 = int_to_ptr.hbm [resolvable:$true] %s324_s26 }
  0x2e   : > { %3568 = dma.hbm_to_vmem [thread:$0]  (!%p3563_p13), %s325_s26, 2048, %s327_s4, [#allocation9], %s5788_s7, %s5788_s7, %s5786_s9  }
  0x2f   : > { %s45_s25 = sadd.s32 1, %s4262_s18  ;;  %s80_s27 = sadd.s32 1, %s4246_s14 }
  0x30   : > { %p87_p2 = scmp.ne.s32.totalorder %s4246_s14, %s4242_s13  ;;  %s6053_s24 = smov (%p43_p0, %s42_s24), 0 }
  0x31   : > { %5870 = sst [smem:[#allocation26_spill]] %s6053_s24  ;;  %s6055_s25 = smov (!%p43_p0, %s45_s25), %s4262_s18 }
  0x32   : > { %s76_s12 = ssub.s32 %s4258_s17, %s6053_s24  ;;  %p88_p5 = scmp.eq.s32.totalorder %s4266_s19, 0 }
  0x33   : > { %p47_p7 = scmp.ge.s32.totalorder %s6055_s25, 2  ;;  %p4447_p10 = por %p234_p3, %p87_p2 }
  0x34   : > { %p4453_p12 = por %p88_p5, %p87_p2  ;;  %p3588_p13 = scmp.lt.s32.totalorder %s4266_s19, 4 }
  0x35   : > { %s5871_s21 = scalar_select %p4447_p10, 1, 0 }
  0x36   : > { %s6057_s25 = smov (%p47_p7, %s6055_s25), 0  ;;  %s352_s28 = sand.u32 1, %s4246_s14  }
  0x37   : > { %5872 = sst [smem:[#allocation27_spill]] %s5871_s21  ;;  %s3170_s26 = sshll.u32 %s4258_s17, 5 }
  0x38   : > { %5874 = sst [smem:[#allocation28_spill]] %s6057_s25  ;;  %s75_s30 = ssub.s32 %s4262_s18, %s6057_s25 }
  0x39   : > { %s77_s9 = sor.u32 %s76_s12, %s75_s30  ;;  %p130_p0 = scmp.eq.s32.totalorder %s75_s30, 0 }
  0x3a   : > { %p78_p1 = scmp.eq.s32.totalorder %s77_s9, 0  ;;  %s3168_s7 = sshll.u32 %s352_s28, 8 }
  0x3b   : > { %s3491_s5 = sshll.u32 %s4262_s18, 7  ;;  %s356_s8 = scalar_lea.vmem [#allocation2], %s3168_s7 }
  0x3c   : > { %s4466_s24 = scalar_select %p78_p1, %s4246_s14, %s80_s27  }
  0x3d   : > { %s362_s21 = sadd.s32 %s3491_s5, %s3170_s26  ;;  %s367_s6 = sshll.u32 %s356_s8, 4  ;;  %s368_s6 = int_to_ptr.vmem [resolvable:$true] %s367_s6 }
  0x3e   : > { %5875 = sst [smem:[#allocation29_spill]] %s4466_s24  ;;  %s3172_s15 = sshll.u32 %s362_s21, 2 }
  0x3f   : > { %s5876_s1 = sld [smem:[#allocation51_spill]]  ;;  %p3570_p2 = pnand %p3588_p13, %p4453_p12 }
  0x40   : > { %s353_s17 = scalar_lea.sflag [#allocation3], %s352_s28  ;;  %s4274_s5 = smov 4096  }
  0x41   : > { %s4275_s26 = smov 2048   ;;  %s5877_s7 = smov 128  }
  0x42   : > { %s132_s8 = sadd.s32 1, %s4234_s11  ;;  %p139_p1 = scmp.ne.s32.totalorder %s4234_s11, %s4230_s10 }
  0x43   : > { %s4481_s21 = scalar_select %p130_p0, %s4234_s11, %s132_s8  }
  0x44   : > { %p4485_p7 = por %p234_p3, %p139_p1  ;;  %s386_s25 = sand.u32 1, %s4266_s19  }
  0x45   : > { %s364_s9 = scalar_lea.hbm %s5876_s1, %s3172_s15  ;;  %p141_p12 = por %p139_p1, %p88_p5 }
  0x46   : > { %s365_s27 = sshll.u32 %s364_s9, 4  ;;  %s388_s4 = sand.u32 1, %s4234_s11   ;;  %s366_s27 = int_to_ptr.hbm [resolvable:$true] %s365_s27 }
  0x47   : > { %3572 = dma.hbm_to_vmem [thread:$0]  (!%p3570_p2), %s366_s27, 4096, %s368_s6, %s353_s17, %s4274_s5, %s4275_s26, %s5877_s7  }
  0x48   : > { %s3173_s28 = sshll.u32 %s388_s4, 4  ;;  %s3492_s12 = sshll.u32 %s4262_s18, 4 }
  0x49   : > { %s5879_s3 = sld [smem:[#allocation53_spill]]  ;;  %s390_s27 = scalar_lea.vmem [#allocation5], %s3173_s28 }
  0x4a   : > { %s398_s30 = sshll.u32 %s390_s27, 4  ;;  %p3573_p3 = pnand %p3588_p13, %p141_p12  ;;  %s399_s30 = int_to_ptr.vmem [resolvable:$true] %s398_s30 }
  0x4b   : > { %s387_s5 = scalar_lea.sflag [#allocation6], %s386_s25  ;;  %s5880_s26 = smov 8  }
  0x4d   : > { %410 = sbr.rel (%p4420_p11) target bundleno = 1808 (0x710), region = 48 }
  0x4f   : > { %s395_s6 = scalar_lea.hbm %s5879_s3, %s3492_s12 }
  0x50   : > { %s396_s17 = sshll.u32 %s395_s6, 4  ;;  %s397_s17 = int_to_ptr.hbm [resolvable:$true] %s396_s17 }
  0x51   : > { %3575 = dma.hbm_to_vmem [thread:$0]  (!%p3573_p3), %s397_s17, 256, %s399_s30, %s387_s5, %s5877_s7, %s5877_s7, %s5880_s26  }
  0x52   : > { %s4505_s8 = sand.u32 1, %s4242_s13  }
  0x53   : > { %s3177_s1 = sshll.u32 %s4505_s8, 8  ;;  %s413_s4 = scalar_lea.sflag [#allocation3], %s4505_s8 }
  0x54   : > { %s4509_s28 = scalar_lea.vmem [#allocation2], %s3177_s1 }
  0x55   : > { %4201 = dma.done.wait (%p4395_p4), %s413_s4, 4096  }
  0x56   : > { %4203 = vsyncadd (%p4395_p4), %s413_s4, 4294963200  ;;  %s5797_s29 = sand.u32 1, %s4385_s20   ;;  %s424_s7 = sand.u32 1, %s4230_s10  }
  0x57   : > { %s3178_s25 = sshll.u32 %s424_s7, 4  ;;  %s423_s12 = scalar_lea.sflag [#allocation6], %s5797_s29 }
  0x58   : > { %s426_s9 = scalar_lea.vmem [#allocation5], %s3178_s25 }
  0x59   : > { %4205 = dma.done.wait (%p4403_p6), %s423_s12, 256  }
  0x5a   : > { %4207 = vsyncadd (%p4403_p6), %s423_s12, 4294967040  ;;  %p5881_p11 = scmp.eq.s32.totalorder %s4385_s20, 0 }
  0x5c   : > { %4209 = dma.done.wait (%p5881_p11), [#allocation6], 4096   ;;  %p5882_p4 = pmov %p5881_p11 }
  0x5e   : > { %4211 = vsyncadd (%p5882_p4), [#allocation6], 4294963200  ;;  %p5883_p5 = pmov %p5882_p4 }
  0x5f   : > { %p5884_p13 = pmov %p5882_p4 }
  0x60   : > { %4213 = dma.done.wait (%p5883_p5), [#allocation9], 2048  }
  0x61   : > { %4215 = vsyncadd (%p5884_p13), [#allocation9], 4294965248  ;;  %s3184_s22 = sshll.u32 %s4254_s16, 1  ;;  %s5885_s0 = sld [smem:[#allocation50_spill]] }
  0x62   : > { %p498_p0 = scmp.lt.s32.totalorder %s3184_s22, 3  ;;  %s5886_s2 = sld [smem:[#allocation52_spill]] }
  0x63   : > { %s4540_s4 = scalar_lea.vmem [#allocation10], %s3177_s1  ;;  %s4542_s7 = scalar_lea.vmem [#allocation11], %s3178_s25 }
  0x64   : > { %s6059_s22 = smov (!%p498_p0, %s3184_s22), 3  ;;  %s4544_s12 = scalar_lea.vmem [#allocation13], %s3178_s25 }
  0x65   : > { %s3185_s6 = sshll.u32 %s6059_s22, 3  ;;  %s5887_s29 = sld [smem:[#allocation21_spill]] }
  0x67   : > { %s4535_s27 = scalar_lea.vmem %s5885_s0, %s3185_s6 }
  0x68   : > { %s509_s26 = scalar_lea.vmem %s5886_s2, %s3185_s6 }
  0x6b   : > { %p3188_p6 = scmp.ne.s32.totalorder %s5887_s29, 0 }
  0x6d   : > { %519 = sbr.rel (%p3188_p6) target bundleno = 119 (0x77), region = 68 }
  0x72   : > { %v520_v0 = vld [vmem:[%s509_s26] sm:$0xff]  ;;  %v521_v1 = vld [vmem:[%s509_s26 + $0x8] sm:$0xff] }
  0x73   : > { %v524_v2 = vld [vmem:[%s426_s9] sm:$0xff]  ;;  %522 = vst [vmem:[%s4542_s7] sm:$0xff] %v520_v0  ;;  %v525_v3 = vld [vmem:[%s426_s9 + $0x8] sm:$0xff] }
  0x74   : > { %523 = vst [vmem:[%s4542_s7 + $0x8] sm:$0xff] %v521_v1 }
  0x75   : > { %526 = vst [vmem:[%s4544_s12] sm:$0xff] %v524_v2 }
  0x76   : > { %527 = vst [vmem:[%s4544_s12 + $0x8] sm:$0xff] %v525_v3 }
  0x77 PF: > { %v3304_v4 = vld [vmem:[#allocation7 + $0xe0] sm:$0xf]  ;;  %v3523_v5 = vld [vmem:[#allocation7 + $0xec] sm:$0xf0]  ;;  %v3521_v6 = vld [vmem:[#allocation7 + $0xe4] sm:$0xf] }
  0x78   : > { %v4551_v7 = vor.u32 %v3523_v5, %v3304_v4  ;;  %v3306_v8 = vld [vmem:[#allocation7 + $0xf0] sm:$0xf0]  ;;  %v3312_v9 = vld [vmem:[#allocation7 + $0xe8] sm:$0xf]  ;;  %v3524_v10 = vld [vmem:[#allocation7 + $0xf4] sm:$0xf0] }
  0x79   : > { %v4553_v11 = vor.u32 %v3521_v6, %v3306_v8  ;;  %v4555_v12 = vor.u32 %v3524_v10, %v3312_v9  ;;  %v3288_v13 = vld [vmem:[#allocation7 + $0xc0] sm:$0xf]  ;;  %v3519_v14 = vld [vmem:[#allocation7 + $0xcc] sm:$0xf0]  ;;  %v3517_v15 = vld [vmem:[#allocation7 + $0xc4] sm:$0xf] }
  0x7a   : > { %749 = vmatpush.bf16.msra.mxu0 %v4551_v7  ;;  %v4558_v16 = vor.u32 %v3519_v14, %v3288_v13  ;;  %v3290_v17 = vld [vmem:[#allocation7 + $0xd0] sm:$0xf0]  ;;  %v3296_v18 = vld [vmem:[#allocation7 + $0xc8] sm:$0xf]  ;;  %v3520_v19 = vld [vmem:[#allocation7 + $0xd4] sm:$0xf0] }
  0x7b   : > { %763 = vmatpush.bf16.msra.mxu1 %v4553_v11  ;;  %777 = vmatpush.bf16.msra.mxu2 %v4555_v12  ;;  %v4562_v20 = vor.u32 %v3517_v15, %v3290_v17  ;;  %v4564_v21 = vor.u32 %v3520_v19, %v3296_v18  ;;  %v3522_v22 = vld [vmem:[#allocation7 + $0xec] sm:$0xf]  ;;  %v3314_v23 = vld [vmem:[#allocation7 + $0xf8] sm:$0xf0]  ;;  %v3272_v24 = vld [vmem:[#allocation7 + $0xa0] sm:$0xf] }
  0x7c   : > { %v4566_v25 = vor.u32 %v3522_v22, %v3314_v23  ;;  %v3515_v26 = vld [vmem:[#allocation7 + $0xac] sm:$0xf0]  ;;  %v3513_v27 = vld [vmem:[#allocation7 + $0xa4] sm:$0xf]  ;;  %v3274_v28 = vld [vmem:[#allocation7 + $0xb0] sm:$0xf0] }
  0x7d   : > { %v3280_v29 = vld [vmem:[#allocation7 + $0xa8] sm:$0xf]  ;;  %v3516_v30 = vld [vmem:[#allocation7 + $0xb4] sm:$0xf0]  ;;  %v3518_v31 = vld [vmem:[#allocation7 + $0xcc] sm:$0xf]  ;;  %v4570_v32 = vor.u32 %v3515_v26, %v3272_v24  ;;  %v4574_v36 = vor.u32 %v3513_v27, %v3274_v28 }
  0x7e   : > { %750 = vmatpush.bf16.msra.mxu0 %v4558_v16  ;;  %791 = vmatpush.bf16.msra.mxu3 %v4566_v25  ;;  %v3298_v33 = vld [vmem:[#allocation7 + $0xd8] sm:$0xf0]  ;;  %v3256_v34 = vld [vmem:[#allocation7 + $0x80] sm:$0xf]  ;;  %v3511_v35 = vld [vmem:[#allocation7 + $0x8c] sm:$0xf0]  ;;  %v4576_v37 = vor.u32 %v3516_v30, %v3280_v29 }
  0x7f   : > { %764 = vmatpush.bf16.msra.mxu1 %v4562_v20  ;;  %778 = vmatpush.bf16.msra.mxu2 %v4564_v21  ;;  %v4578_v38 = vor.u32 %v3518_v31, %v3298_v33  ;;  %v3509_v39 = vld [vmem:[#allocation7 + $0x84] sm:$0xf]  ;;  %v3258_v40 = vld [vmem:[#allocation7 + $0x90] sm:$0xf0]  ;;  %v3264_v41 = vld [vmem:[#allocation7 + $0x88] sm:$0xf]  ;;  %v4582_v45 = vor.u32 %v3511_v35, %v3256_v34 }
  0x80   : > { %v3512_v42 = vld [vmem:[#allocation7 + $0x94] sm:$0xf0]  ;;  %v3514_v43 = vld [vmem:[#allocation7 + $0xac] sm:$0xf]  ;;  %v3282_v44 = vld [vmem:[#allocation7 + $0xb8] sm:$0xf0]  ;;  %v4588_v49 = vor.u32 %v3509_v39, %v3258_v40 }
  0x81   : > { %v4584_v46 = vor.u32 %v3514_v43, %v3282_v44  ;;  %v3240_v47 = vld [vmem:[#allocation7 + $0x60] sm:$0xf]  ;;  %v3507_v48 = vld [vmem:[#allocation7 + $0x6c] sm:$0xf0]  ;;  %v4590_v50 = vor.u32 %v3512_v42, %v3264_v41  ;;  %v3505_v51 = vld [vmem:[#allocation7 + $0x64] sm:$0xf] }
  0x82   : > { %751 = vmatpush.bf16.msra.mxu0 %v4570_v32  ;;  %792 = vmatpush.bf16.msra.mxu3 %v4578_v38  ;;  %v3510_v52 = vld [vmem:[#allocation7 + $0x8c] sm:$0xf]  ;;  %v3266_v53 = vld [vmem:[#allocation7 + $0x98] sm:$0xf0]  ;;  %v3242_v54 = vld [vmem:[#allocation7 + $0x70] sm:$0xf0]  ;;  %v4594_v57 = vor.u32 %v3507_v48, %v3240_v47 }
  0x83   : > { %765 = vmatpush.bf16.msra.mxu1 %v4574_v36  ;;  %779 = vmatpush.bf16.msra.mxu2 %v4576_v37  ;;  %v3248_v55 = vld [vmem:[#allocation7 + $0x68] sm:$0xf]  ;;  %v3508_v56 = vld [vmem:[#allocation7 + $0x74] sm:$0xf0]  ;;  %v4596_v58 = vor.u32 %v3510_v52, %v3266_v53  ;;  %v3224_v59 = vld [vmem:[#allocation7 + $0x40] sm:$0xf]  ;;  %v4600_v61 = vor.u32 %v3505_v51, %v3242_v54 }
  0x84   : > { %v3503_v60 = vld [vmem:[#allocation7 + $0x4c] sm:$0xf0]  ;;  %v4602_v62 = vor.u32 %v3508_v56, %v3248_v55  ;;  %v3501_v63 = vld [vmem:[#allocation7 + $0x44] sm:$0xf]  ;;  %v3506_v0 = vld [vmem:[#allocation7 + $0x6c] sm:$0xf] }
  0x85   : > { %v3250_v1 = vld [vmem:[#allocation7 + $0x78] sm:$0xf0]  ;;  %v3226_v2 = vld [vmem:[#allocation7 + $0x50] sm:$0xf0]  ;;  %s5888_s1 = sld [smem:[#allocation21_spill]]  ;;  %v4606_v5 = vor.u32 %v3503_v60, %v3224_v59  ;;  %v4276_v23 = vmov 0  }
  0x86   : > { %752 = vmatpush.bf16.msra.mxu0 %v4582_v45  ;;  %793 = vmatpush.bf16.msra.mxu3 %v4584_v46  ;;  %v3232_v3 = vld [vmem:[#allocation7 + $0x48] sm:$0xf]  ;;  %v3504_v4 = vld [vmem:[#allocation7 + $0x54] sm:$0xf0]  ;;  %v4608_v6 = vor.u32 %v3506_v0, %v3250_v1  ;;  %v3208_v8 = vld [vmem:[#allocation7 + $0x20] sm:$0xf]  ;;  %v4612_v13 = vor.u32 %v3501_v63, %v3226_v2 }
  0x87   : > { %766 = vmatpush.bf16.msra.mxu1 %v4588_v49  ;;  %780 = vmatpush.bf16.msra.mxu2 %v4590_v50  ;;  %v3499_v9 = vld [vmem:[#allocation7 + $0x2c] sm:$0xf0]  ;;  %v3497_v10 = vld [vmem:[#allocation7 + $0x24] sm:$0xf]  ;;  %v4614_v14 = vor.u32 %v3504_v4, %v3232_v3  ;;  %v3502_v15 = vld [vmem:[#allocation7 + $0x4c] sm:$0xf] }
  0x88   : > { %v3234_v17 = vld [vmem:[#allocation7 + $0x58] sm:$0xf0]  ;;  %v3210_v18 = vld [vmem:[#allocation7 + $0x30] sm:$0xf0]  ;;  %v3216_v19 = vld [vmem:[#allocation7 + $0x28] sm:$0xf]  ;;  %3693 = vset.pattern.permute.xlu0 %v4276_v23  ;;  %3694 = vset.pattern.permute.xlu1 %v4276_v23  ;;  %v4629_v29 = vor.u32 %v3499_v9, %v3208_v8 }
  0x89   : > { %v3500_v22 = vld [vmem:[#allocation7 + $0x34] sm:$0xf0]  ;;  %v3192_v26 = vld [vmem:[#allocation7] sm:$0xf]  ;;  %v3495_v27 = vld [vmem:[#allocation7 + $0xc] sm:$0xf0]  ;;  %3695 = vset.pattern.permute.xlu2 %v4276_v23  ;;  %v4631_v30 = vor.u32 %v3502_v15, %v3234_v17  ;;  %v4637_v35 = vor.u32 %v3497_v10, %v3210_v18 }
  0x8a   : > { %753 = vmatpush.bf16.msra.mxu0 %v4594_v57  ;;  %794 = vmatpush.bf16.msra.mxu3 %v4596_v58  ;;  %v4623_v28 = vld [vmem:[%s4535_s27] sm:$0xff]  ;;  %v3194_v33 = vld [vmem:[#allocation7 + $0x10] sm:$0xf0]  ;;  %v4639_v39 = vor.u32 %v3500_v22, %v3216_v19  ;;  %v3498_v40 = vld [vmem:[#allocation7 + $0x2c] sm:$0xf]  ;;  %v4647_v51 = vor.u32 %v3495_v27, %v3192_v26  ;;  %s5922_s26 = sld [smem:[#allocation56_spill]] }
  0x8b   : > { %767 = vmatpush.bf16.msra.mxu1 %v4600_v61  ;;  %781 = vmatpush.bf16.msra.mxu2 %v4602_v62  ;;  %s4617_s29 = sshll.u32 %s5888_s1, 3  ;;  %v3493_v31 = vld [vmem:[#allocation7 + $0x4] sm:$0xf]  ;;  %v3218_v41 = vld [vmem:[#allocation7 + $0x38] sm:$0xf0]  ;;  %v4644_v43 = vld [vmem:[%s4535_s27 + $0x8] sm:$0xff] }
  0x8c   : > { %v947_v24 = vstv %s4617_s29  ;;  %s1287_s25 = sadd.s32 1, %s4617_s29  ;;  %s1543_s9 = sadd.s32 2, %s4617_s29  ;;  %v3200_v44 = vld [vmem:[#allocation7 + $0x8] sm:$0xf]  ;;  %v3496_v47 = vld [vmem:[#allocation7 + $0x14] sm:$0xf0]  ;;  %v4657_v55 = vor.u32 %v3498_v40, %v3218_v41  ;;  %v4663_v56 = vor.u32 %v3493_v31, %v3194_v33 }
  0x8d   : > { %vm948_vm0 = vcmp.lt.s32.totalorder %v947_v24, %v4623_v28  ;;  %v1288_v34 = vstv %s1287_s25  ;;  %v1544_v52 = vstv %s1543_s9  ;;  %v4652_v53 = vld [vmem:[%s4542_s7] sm:$0xff]  ;;  %v4655_v54 = vld [vmem:[%s4542_s7 + $0x8] sm:$0xff]  ;;  %vm949_vm2 = vcmp.lt.s32.totalorder %v947_v24, %v4644_v43  ;;  %s1799_s22 = sadd.s32 3, %s4617_s29  ;;  %s2055_s6 = sadd.s32 4, %s4617_s29 }
  0x8e   : > { %754 = vmatpush.bf16.msra.mxu0 %v4606_v5  ;;  %795 = vmatpush.bf16.msra.mxu3 %v4608_v6  ;;  %v950_v42 = vsel %vm948_vm0, 1, %v4276_v23  ;;  %vm1289_vm1 = vcmp.lt.s32.totalorder %v1288_v34, %v4623_v28  ;;  %vm1545_vm3 = vcmp.lt.s32.totalorder %v1544_v52, %v4623_v28  ;;  %v4665_v59 = vor.u32 %v3496_v47, %v3200_v44  ;;  %v3494_v63 = vld [vmem:[#allocation7 + $0xc] sm:$0xf]  ;;  %v3202_v0 = vld [vmem:[#allocation7 + $0x18] sm:$0xf0]  ;;  %s2311_s17 = sadd.s32 5, %s4617_s29 }
  0x8f   : > { %768 = vmatpush.bf16.msra.mxu1 %v4612_v13  ;;  %782 = vmatpush.bf16.msra.mxu2 %v4614_v14  ;;  %v1291_v48 = vsel %vm1289_vm1, 1, %v4276_v23  ;;  %vm1290_vm4 = vcmp.lt.s32.totalorder %v1288_v34, %v4644_v43  ;;  %v1547_v60 = vsel %vm1545_vm3, 1, %v4276_v23  ;;  %v588_v1 = vpack.c.bf16 %v4655_v54, %v4652_v53  ;;  %s2567_s23 = sadd.s32 6, %s4617_s29  ;;  %s2823_s27 = sadd.s32 7, %s4617_s29  ;;  %v3539_v44 = vld [vmem:[#allocation8 + $0x74] sm:$0xf] }
  0x90   : > { %953 = vperm.xlu0 %3693, %v950_v42   ;;  %1294 = vperm.xlu1 %3694, %v1291_v48   ;;  %5889 = vst [vmem:[#allocation30_spill] sm:$0xff] %v4665_v59  ;;  %v951_v2 = vsel %vm949_vm2, 1, %v4276_v23  ;;  %v1292_v3 = vsel %vm1290_vm4, 1, %v4276_v23  ;;  %vm1546_vm5 = vcmp.lt.s32.totalorder %v1544_v52, %v4644_v43  ;;  %v4679_v4 = vor.u32 %v3494_v63, %v3202_v0  ;;  %v3540_v42 = vld [vmem:[#allocation8 + $0x74] sm:$0xf0]  ;;  %s6031_s9 = sld [smem:[#allocation58_spill]] }
  0x91   : > { %1550 = vperm.xlu2 %3695, %v1547_v60   ;;  %v1800_v8 = vstv %s1799_s22  ;;  %v1548_v9 = vsel %vm1546_vm5, 1, %v4276_v23  ;;  %v2056_v15 = vstv %s2055_s6  ;;  %v2312_v18 = vstv %s2311_s17  ;;  %v3384_v48 = vld [vmem:[#allocation8 + $0x78] sm:$0xf0]  ;;  %v3537_v60 = vld [vmem:[#allocation8 + $0x64] sm:$0xf]  ;;  %s2923_s6 = sshll.u32 %s4542_s7, 4  ;;  %s2924_s6 = int_to_ptr.vmem [resolvable:$true] %s2923_s6 }
  0x92   : > { %755 = vmatpush.bf16.msra.mxu0 %v4629_v29  ;;  %796 = vmatpush.bf16.msra.mxu3 %v4631_v30  ;;  %5890 = vst [vmem:[#allocation31_spill] sm:$0xff] %v4679_v4  ;;  %vm1801_vm6 = vcmp.lt.s32.totalorder %v1800_v8, %v4623_v28  ;;  %vm1802_vm7 = vcmp.lt.s32.totalorder %v1800_v8, %v4644_v43  ;;  %v2568_v26 = vstv %s2567_s23  ;;  %v2824_v33 = vstv %s2823_s27  ;;  %v3376_v0 = vld [vmem:[#allocation8 + $0x68] sm:$0xf0]  ;;  %v3535_v8 = vld [vmem:[#allocation8 + $0x54] sm:$0xf]  ;;  %s6032_s30 = sld [smem:[#allocation59_spill]] }
  0x93   : > { %769 = vmatpush.bf16.msra.mxu1 %v4637_v35  ;;  %783 = vmatpush.bf16.msra.mxu2 %v4639_v39  ;;  %v1803_v10 = vsel %vm1801_vm6, 1, %v4276_v23  ;;  %v1804_v17 = vsel %vm1802_vm7, 1, %v4276_v23  ;;  %vm2057_vm8 = vcmp.lt.s32.totalorder %v2056_v15, %v4623_v28  ;;  %vm2058_vm9 = vcmp.lt.s32.totalorder %v2056_v15, %v4644_v43  ;;  %s6034_s0 = sand.u32 1, %s4385_s20  }
  0x94   : > { %v2059_v19 = vsel %vm2057_vm8, 1, %v4276_v23  ;;  %vm2313_vm10 = vcmp.lt.s32.totalorder %v2312_v18, %v4623_v28  ;;  %v2060_v22 = vsel %vm2058_vm9, 1, %v4276_v23  ;;  %vm2314_vm11 = vcmp.lt.s32.totalorder %v2312_v18, %v4644_v43  ;;  %v3534_v18 = vld [vmem:[#allocation8 + $0x44] sm:$0xf0]  ;;  %s5674_s2 = scalar_lea.sflag [#allocation12], %s6034_s0 }
  0x95   : > { %v2315_v24 = vsel %vm2313_vm10, 1, %v4276_v23  ;;  %v2316_v27 = vsel %vm2314_vm11, 1, %v4276_v23  ;;  %vm2569_vm12 = vcmp.lt.s32.totalorder %v2568_v26, %v4623_v28  ;;  %vm2570_vm13 = vcmp.lt.s32.totalorder %v2568_v26, %v4644_v43 }
  0x96   : > { %756 = vmatpush.bf16.msra.mxu0 %v4647_v51  ;;  %797 = vmatpush.bf16.msra.mxu3 %v4657_v55  ;;  %v2571_v31 = vsel %vm2569_vm12, 1, %v4276_v23  ;;  %v2572_v34 = vsel %vm2570_vm13, 1, %v4276_v23  ;;  %vm2825_vm14 = vcmp.lt.s32.totalorder %v2824_v33, %v4623_v28  ;;  %vm2826_vm15 = vcmp.lt.s32.totalorder %v2824_v33, %v4644_v43  ;;  %v3382_v28 = vld [vmem:[#allocation8 + $0x70] sm:$0xf]  ;;  %v3538_v43 = vld [vmem:[#allocation8 + $0x64] sm:$0xf0] }
  0x97   : > { %770 = vmatpush.bf16.msra.mxu1 %v4663_v56  ;;  %784 = vmatpush.bf16.msra.mxu2 %v4665_v59  ;;  %v2827_v40 = vsel %vm2825_vm14, 1, %v4276_v23  ;;  %v2828_v41 = vsel %vm2826_vm15, 1, %v4276_v23  ;;  %v4723_v47 = vor.u32 %v3540_v42, %v3382_v28  ;;  %v4725_v52 = vor.u32 %v3539_v44, %v3384_v48  ;;  %v3374_v23 = vld [vmem:[#allocation8 + $0x60] sm:$0xf]  ;;  %v3532_v33 = vld [vmem:[#allocation8 + $0x34] sm:$0xf0] }
  0x98   : > { %956 = vperm.xlu0 %3693, %v951_v2   ;;  %1297 = vperm.xlu1 %3694, %v1292_v3   ;;  %v4731_v63 = vor.u32 %v3538_v43, %v3374_v23  ;;  %v3366_v2 = vld [vmem:[#allocation8 + $0x50] sm:$0xf]  ;;  %v3536_v3 = vld [vmem:[#allocation8 + $0x54] sm:$0xf0]  ;;  %v3342_v48 = vld [vmem:[#allocation8 + $0x20] sm:$0xf]  ;;  %s6033_s5 = smov %s6032_s30 }
  0x99   : > { %757 = vmatmul.bf16.vlgmr.msra.gmra.mxu0 %v588_v1  ;;  %1553 = vperm.xlu2 %3695, %v1548_v9   ;;  %5891 = vst [vmem:[#allocation32_spill] sm:$0xff] %v4723_v47  ;;  %v4739_v9 = vor.u32 %v3536_v3, %v3366_v2  ;;  %v3530_v23 = vld [vmem:[#allocation8 + $0x24] sm:$0xf0]  ;;  %v3529_v43 = vld [vmem:[#allocation8 + $0x24] sm:$0xf] }
  0x9a   : > { %771 = vmatmul.bf16.vlgmr.msra.gmra.mxu1 %v588_v1  ;;  %785 = vmatmul.bf16.vlgmr.msra.gmra.mxu2 %v588_v1  ;;  %5892 = vst [vmem:[#allocation33_spill] sm:$0xff] %v4725_v52  ;;  %v3344_v2 = vld [vmem:[#allocation8 + $0x28] sm:$0xf0] }
  0x9b   : > { %1089 = vmatpush.bf16.msrb.mxu2 %v4551_v7  ;;  %798 = vmatpush.bf16.msra.mxu3 %v4679_v4  ;;  %5893 = vst [vmem:[#allocation34_spill] sm:$0xff] %v4731_v63 }
  0x9c   : > { %1052 = vmatpush.bf16.msrb.mxu0 %v4723_v47  ;;  %1066 = vmatpush.bf16.msrb.mxu1 %v4725_v52  ;;  %5895 = vst [vmem:[#allocation36_spill] sm:$0xff] %v4739_v9 }
  0x9e   : > { %799 = vmatmul.bf16.vlgmr.msra.gmra.mxu3 %v588_v1  ;;  %v4733_v1 = vor.u32 %v3537_v60, %v3376_v0  ;;  %v4764_v0 = vor.u32 %v3530_v23, %v3342_v48  ;;  %v3527_v48 = vld [vmem:[#allocation8 + $0x14] sm:$0xf] }
  0x9f   : > { %1103 = vmatpush.bf16.msrb.mxu3 %v4553_v11  ;;  %1090 = vmatpush.bf16.msrb.mxu2 %v4558_v16 }
  0xa0   : > { %1806 = vperm.xlu0 %3693, %v1803_v10   ;;  %1809 = vperm.xlu1 %3694, %v1804_v17   ;;  %5894 = vst [vmem:[#allocation35_spill] sm:$0xff] %v4733_v1  ;;  %v3368_v10 = vld [vmem:[#allocation8 + $0x58] sm:$0xf0]  ;;  %v3358_v17 = vld [vmem:[#allocation8 + $0x40] sm:$0xf] }
  0xa1   : > { %2062 = vperm.xlu2 %3695, %v2059_v19   ;;  %1053 = vmatpush.bf16.msrb.mxu0 %v4731_v63  ;;  %v4741_v15 = vor.u32 %v3535_v8, %v3368_v10  ;;  %v3533_v19 = vld [vmem:[#allocation8 + $0x44] sm:$0xf]  ;;  %5901 = vst [vmem:[#allocation42_spill] sm:$0xff] %v4764_v0  ;;  %v585_v10 = vld [vmem:[%s4509_s28 + $0x8] sm:$0xff] }
  0xa2   : > { %1067 = vmatpush.bf16.msrb.mxu1 %v4733_v1 }
  0xa3   : > { %1104 = vmatpush.bf16.msrb.mxu3 %v4562_v20  ;;  %1091 = vmatpush.bf16.msrb.mxu2 %v4570_v32  ;;  %5896 = vst [vmem:[#allocation37_spill] sm:$0xff] %v4741_v15 }
  0xa5   : > { %1054 = vmatpush.bf16.msrb.mxu0 %v4739_v9 }
  0xa6   : > { %1068 = vmatpush.bf16.msrb.mxu1 %v4741_v15 }
  0xa7   : > { %1105 = vmatpush.bf16.msrb.mxu3 %v4574_v36  ;;  %1092 = vmatpush.bf16.msrb.mxu2 %v4582_v45 }
  0xa8   : > { %2065 = vperm.xlu0 %3693, %v2060_v22   ;;  %2318 = vperm.xlu1 %3694, %v2315_v24   ;;  %v4747_v22 = vor.u32 %v3534_v18, %v3358_v17  ;;  %v3360_v24 = vld [vmem:[#allocation8 + $0x48] sm:$0xf0]  ;;  %v4767_v17 = vor.u32 %v3529_v43, %v3344_v2  ;;  %v3326_v2 = vld [vmem:[#allocation8] sm:$0xf] }
  0xa9   : > { %2321 = vperm.xlu2 %3695, %v2316_v27   ;;  %v4749_v26 = vor.u32 %v3533_v19, %v3360_v24  ;;  %v584_v27 = vld [vmem:[%s4509_s28] sm:$0xff] }
  0xaa   : > { %5897 = vst [vmem:[#allocation38_spill] sm:$0xff] %v4747_v22  ;;  %1055 = vmatpush.bf16.msrb.mxu0 %v4747_v22  ;;  %v805_v28 = vunpack.c.l.bf16 %v584_v27  ;;  %v806_v44 = vunpack.c.h.bf16 %v584_v27  ;;  %v586_v19 = vld [vmem:[%s4509_s28 + $0x80] sm:$0xff]  ;;  %v3334_v27 = vld [vmem:[#allocation8 + $0x10] sm:$0xf] }
  0xab   : > { %1106 = vmatpush.bf16.msrb.mxu3 %v4588_v49  ;;  %1093 = vmatpush.bf16.msrb.mxu2 %v4594_v57  ;;  %5898 = vst [vmem:[#allocation39_spill] sm:$0xff] %v4749_v26  ;;  %v810_v23 = vunpack.c.h.bf16 %v586_v19 }
  0xac   : > { %1069 = vmatpush.bf16.msrb.mxu1 %v4749_v26  ;;  %5902 = vst [vmem:[#allocation43_spill] sm:$0xff] %v4767_v17 }
  0xaf   : > { %1107 = vmatpush.bf16.msrb.mxu3 %v4600_v61  ;;  %1094 = vmatpush.bf16.msrb.mxu2 %v4606_v5 }
  0xb0   : > { %2574 = vperm.xlu0 %3693, %v2571_v31   ;;  %2577 = vperm.xlu1 %3694, %v2572_v34   ;;  %v3350_v31 = vld [vmem:[#allocation8 + $0x30] sm:$0xf]  ;;  %v3531_v34 = vld [vmem:[#allocation8 + $0x34] sm:$0xf] }
  0xb1   : > { %2830 = vperm.xlu2 %3695, %v2827_v40   ;;  %v4756_v40 = vor.u32 %v3532_v33, %v3350_v31  ;;  %v3528_v31 = vld [vmem:[#allocation8 + $0x14] sm:$0xf0] }
  0xb3   : > { %1108 = vmatpush.bf16.msrb.mxu3 %v4612_v13  ;;  %1095 = vmatpush.bf16.msrb.mxu2 %v4629_v29  ;;  %5899 = vst [vmem:[#allocation40_spill] sm:$0xff] %v4756_v40 }
  0xb4   : > { %1056 = vmatpush.bf16.msrb.mxu0 %v4756_v40 }
  0xb7   : > { %1109 = vmatpush.bf16.msrb.mxu3 %v4637_v35  ;;  %1096 = vmatpush.bf16.msrb.mxu2 %v4647_v51 }
  0xb8   : > { %2833 = vperm.xlu0 %3693, %v2828_v41   ;;  %v3352_v41 = vld [vmem:[#allocation8 + $0x38] sm:$0xf0]  ;;  %1057 = vmatpush.bf16.msrb.mxu0 %v4764_v0 }
  0xb9   : > { %v4758_v42 = vor.u32 %v3531_v34, %v3352_v41  ;;  %v807_v34 = vunpack.c.l.bf16 %v585_v10  ;;  %v809_v41 = vunpack.c.l.bf16 %v586_v19  ;;  %v4783_v19 = vld [vmem:[%s4509_s28 + $0x88] sm:$0xff] }
  0xbb   : > { %1110 = vmatpush.bf16.msrb.mxu3 %v4663_v56  ;;  %1308 = vmatpush.bf16.msra.mxu2 %v4723_v47  ;;  %5900 = vst [vmem:[#allocation41_spill] sm:$0xff] %v4758_v42 }
  0xbc   : > { %1070 = vmatpush.bf16.msrb.mxu1 %v4758_v42 }
  0xbf   : > { %1322 = vmatpush.bf16.msra.mxu3 %v4725_v52  ;;  %1309 = vmatpush.bf16.msra.mxu2 %v4731_v63 }
  0xc0   : > { %1071 = vmatpush.bf16.msrb.mxu1 %v4767_v17 }
  0xc3   : > { %1323 = vmatpush.bf16.msra.mxu3 %v4733_v1  ;;  %1310 = vmatpush.bf16.msra.mxu2 %v4739_v9  ;;  %v582_v9 = vld [vmem:[%s4544_s12] sm:$0xff] }
  0xc7   : > { %1324 = vmatpush.bf16.msra.mxu3 %v4741_v15  ;;  %1311 = vmatpush.bf16.msra.mxu2 %v4747_v22 }
  0xcb   : > { %1325 = vmatpush.bf16.msra.mxu3 %v4749_v26  ;;  %1312 = vmatpush.bf16.msra.mxu2 %v4756_v40 }
  0xcf   : > { %1326 = vmatpush.bf16.msra.mxu3 %v4758_v42  ;;  %1313 = vmatpush.bf16.msra.mxu2 %v4764_v0 }
  0xd3   : > { %1327 = vmatpush.bf16.msra.mxu3 %v4767_v17 }
 0x102   : > { %v4833_v52 = vpop.permute.xlu0 %953 }
 0x103   : > { %vm958_vm9 = vcmp.eq.s32.totalorder %v4833_v52, 1  ;;  %v5909_v52 = vld [vmem:[#allocation35_spill] sm:$0xff] }
 0x116   : > { %v758_v60 = vpop.f32.mrf.mxu0 }
 0x117   : > { %v813_v3 = vadd.f32 %v805_v28, %v758_v60  ;;  %v772_v8 = vpop.f32.mrf.mxu1  ;;  %v4774_v28 = vor.u32 %v3528_v31, %v3334_v27  ;;  %v3328_v27 = vld [vmem:[#allocation8 + $0x8] sm:$0xf0] }
 0x118   : > { %v814_v18 = vadd.f32 %v806_v44, %v772_v8  ;;  %v3336_v44 = vld [vmem:[#allocation8 + $0x18] sm:$0xf0]  ;;  %v3525_v8 = vld [vmem:[#allocation8 + $0x4] sm:$0xf] }
 0x119   : > { %v3318_v24 = vmul.f32 -1.442695, %v813_v3  ;;  %5903 = vst [vmem:[#allocation44_spill] sm:$0xff] %v4774_v28  ;;  %v4776_v43 = vor.u32 %v3527_v48, %v3336_v44  ;;  %1058 = vmatpush.bf16.msrb.mxu0 %v4774_v28  ;;  %v3526_v3 = vld [vmem:[#allocation8 + $0x4] sm:$0xf0]  ;;  %1314 = vmatpush.bf16.msra.mxu2 %v4774_v28  ;;  %v4787_v44 = vor.u32 %v3525_v8, %v3328_v27  ;;  %v808_v28 = vunpack.c.h.bf16 %v585_v10 }
 0x11a   : > { %v3319_v33 = vmul.f32 -1.442695, %v814_v18  ;;  %v4785_v48 = vor.u32 %v3526_v3, %v3326_v2 }
 0x11b   : > { %3696 = vpow2.f32 %v3318_v24  ;;  %5904 = vst [vmem:[#allocation45_spill] sm:$0xff] %v4776_v43  ;;  %1072 = vmatpush.bf16.msrb.mxu1 %v4776_v43  ;;  %1328 = vmatpush.bf16.msra.mxu3 %v4776_v43 }
 0x11c   : > { %3698 = vpow2.f32 %v3319_v33  ;;  %5905 = vst [vmem:[#allocation46_spill] sm:$0xff] %v4785_v48 }
 0x11d   : > { %v786_v60 = vpop.f32.mrf.mxu2  ;;  %5906 = vst [vmem:[#allocation47_spill] sm:$0xff] %v4787_v44  ;;  %1059 = vmatpush.bf16.msrb.mxu0 %v4785_v48  ;;  %1315 = vmatpush.bf16.msra.mxu2 %v4785_v48 }
 0x11e   : > { %v815_v18 = vadd.f32 %v807_v34, %v786_v60  ;;  %v760_v24 = vpop.f32.mrf.mxu0 }
 0x11f   : > { %v817_v31 = vadd.f32 %v809_v41, %v760_v24  ;;  %v774_v33 = vpop.f32.mrf.mxu1  ;;  %v811_v24 = vunpack.c.l.bf16 %v4783_v19  ;;  %1073 = vmatpush.bf16.msrb.mxu1 %v4787_v44  ;;  %1329 = vmatpush.bf16.msra.mxu3 %v4787_v44 }
 0x120   : > { %v3320_v17 = vmul.f32 -1.442695, %v815_v18  ;;  %v818_v0 = vadd.f32 %v810_v23, %v774_v33 }
 0x121   : > { %v3697_v42 = vpop.eup %3696  ;;  %v3321_v40 = vmul.f32 -1.442695, %v817_v31  ;;  %1117 = vmatpush.bf16.msra.mxu0 %v4555_v12  ;;  %v800_v10 = vpop.f32.mrf.mxu3 }
 0x122   : > { %v3699_v34 = vpop.eup %3698  ;;  %v839_v60 = vadd.f32 1.0, %v3697_v42  ;;  %3700 = vpow2.f32 %v3320_v17  ;;  %v3322_v41 = vmul.f32 -1.442695, %v818_v0  ;;  %v816_v42 = vadd.f32 %v808_v28, %v800_v10 }
 0x123   : > { %v4794_v2 = vadd.f32 1.0, %v3699_v34  ;;  %3702 = vpow2.f32 %v3321_v40  ;;  %1131 = vmatpush.bf16.msra.mxu1 %v4566_v25 }
 0x124   : > { %3704 = vrcp.f32 %v839_v60  ;;  %vm850_vm3 = vweird.f32 %v839_v60 }
 0x125   : > { %3706 = vrcp.f32 %v4794_v2  ;;  %v788_v17 = vpop.f32.mrf.mxu2  ;;  %1118 = vmatpush.bf16.msra.mxu0 %v4564_v21  ;;  %vm865_vm2 = vweird.f32 %v4794_v2 }
 0x126   : > { %3708 = vpow2.f32 %v3322_v41  ;;  %v819_v0 = vadd.f32 %v811_v24, %v788_v17  ;;  %v854_v17 = vand.u32 2147483647, %v839_v60 }
 0x127   : > { %1132 = vmatpush.bf16.msra.mxu1 %v4578_v38  ;;  %3710 = vtanh.f32 %v816_v42  ;;  %v871_v42 = vand.u32 2147483648, %v4794_v2 }
 0x128   : > { %v3701_v23 = vpop.eup %3700  ;;  %v3323_v3 = vmul.f32 -1.442695, %v819_v0  ;;  %v856_v0 = vand.u32 2147483648, %v839_v60  ;;  %vm855_vm5 = vcmp.eq.f32.partialorder %v854_v17, 8.507059e+37 }
 0x129   : > { %v3703_v8 = vpop.eup %3702  ;;  %v4801_v40 = vadd.f32 1.0, %v3701_v23  ;;  %1119 = vmatpush.bf16.msra.mxu0 %v4576_v37  ;;  %v872_v22 = vor.u32 1.1754944e-38, %v871_v42 }
 0x12a   : > { %v3705_v18 = vpop.eup %3704  ;;  %v4803_v27 = vadd.f32 1.0, %v3703_v8  ;;  %3712 = vpow2.f32 %v3323_v3  ;;  %v812_v8 = vunpack.c.h.bf16 %v4783_v19  ;;  %v857_v19 = vor.u32 1.1754944e-38, %v856_v0 }
 0x12b   : > { %v3707_v28 = vpop.eup %3706  ;;  %v846_v31 = vmul.f32 %v3705_v18, %v839_v60  ;;  %3714 = vrcp.f32 %v4801_v40  ;;  %1133 = vmatpush.bf16.msra.mxu1 %v4584_v46  ;;  %vm851_vm0 = vweird.f32 %v3705_v18 }
 0x12c   : > { %v3709_v33 = vpop.eup %3708  ;;  %v861_v34 = vmul.f32 %v3707_v28, %v4794_v2  ;;  %3716 = vrcp.f32 %v4803_v27  ;;  %vm866_vm1 = vweird.f32 %v3707_v28  ;;  %vm852_vm4 = vmor %vm850_vm3, %vm851_vm0  ;;  %v901_v42 = vand.u32 2147483648, %v4803_v27 }
 0x12d   : > { %v847_v41 = vsub.f32 1.0, %v846_v31  ;;  %v4810_v24 = vadd.f32 1.0, %v3709_v33  ;;  %1120 = vmatpush.bf16.msra.mxu0 %v4590_v50  ;;  %v3711_v23 = vpop.eup %3710  ;;  %v869_v33 = vand.u32 2147483647, %v4794_v2  ;;  %vm867_vm6 = vmor %vm865_vm2, %vm866_vm1  ;;  %vm895_vm10 = vweird.f32 %v4803_v27 }
 0x12e   : > { %v862_v10 = vsub.f32 1.0, %v861_v34  ;;  %v802_v34 = vpop.f32.mrf.mxu3  ;;  %vm880_vm3 = vweird.f32 %v4801_v40 }
 0x12f   : > { %3718 = vrcp.f32 %v4810_v24  ;;  %v848_v3 = vmul.f32 %v3705_v18, %v847_v41  ;;  %1134 = vmatpush.bf16.msra.mxu1 %v4596_v58  ;;  %v820_v60 = vadd.f32 %v812_v8, %v802_v34  ;;  %vm870_vm7 = vcmp.eq.f32.partialorder %v869_v33, 8.507059e+37 }
 0x130   : > { %v3713_v44 = vpop.eup %3712  ;;  %v863_v31 = vmul.f32 %v3707_v28, %v862_v10  ;;  %v916_v33 = vand.u32 2147483648, %v4810_v24  ;;  %vm910_vm14 = vweird.f32 %v4810_v24 }
 0x131   : > { %v4818_v48 = vpop.eup %3714  ;;  %v849_v43 = vadd.f32 %v3705_v18, %v848_v3  ;;  %v4821_v26 = vadd.f32 1.0, %v3713_v44  ;;  %1121 = vmatpush.bf16.msra.mxu0 %v4602_v62 }
 0x132   : > { %v3717_v41 = vpop.eup %3716  ;;  %v864_v10 = vadd.f32 %v3707_v28, %v863_v31  ;;  %v876_v0 = vmul.f32 %v4818_v48, %v4801_v40  ;;  %vm881_vm2 = vweird.f32 %v4818_v48 }
 0x133   : > { %v891_v15 = vmul.f32 %v3717_v41, %v4803_v27  ;;  %v853_v1 = vsel %vm852_vm4, %v3705_v18, %v849_v43  ;;  %3720 = vrcp.f32 %v4821_v26  ;;  %1135 = vmatpush.bf16.msra.mxu1 %v4608_v6  ;;  %vm896_vm8 = vweird.f32 %v3717_v41 }
 0x134   : > { %v858_v44 = vsel %vm855_vm5, %v857_v19, %v853_v1  ;;  %v868_v2 = vsel %vm867_vm6, %v3707_v28, %v864_v10  ;;  %v899_v1 = vand.u32 2147483647, %v4803_v27  ;;  %3722 = vtanh.f32 %v820_v60  ;;  %vm897_vm12 = vmor %vm895_vm10, %vm896_vm8 }
 0x135   : > { %v3719_v17 = vpop.eup %3718  ;;  %v892_v3 = vsub.f32 1.0, %v891_v15  ;;  %v873_v31 = vsel %vm870_vm7, %v872_v22, %v868_v2  ;;  %v939_v63 = vmul.f32 %v3711_v23, %v858_v44  ;;  %1122 = vmatpush.bf16.msra.mxu0 %v4614_v14  ;;  %v877_v23 = vsub.f32 1.0, %v876_v0  ;;  %vm882_vm5 = vmor %vm880_vm3, %vm881_vm2 }
 0x136   : > { %v906_v43 = vmul.f32 %v3719_v17, %v4810_v24  ;;  %v937_v18 = vmul.f32 %v873_v31, %v582_v9  ;;  %v902_v19 = vor.u32 1.1754944e-38, %v901_v42  ;;  %vm911_vm11 = vweird.f32 %v3719_v17 }
 0x137   : > { %v893_v8 = vmul.f32 %v3717_v41, %v892_v3  ;;  %1136 = vmatpush.bf16.msra.mxu1 %v4631_v30  ;;  %v914_v60 = vand.u32 2147483647, %v4810_v24  ;;  %vm900_vm13 = vcmp.eq.f32.partialorder %v899_v1, 8.507059e+37  ;;  %v878_v31 = vmul.f32 %v4818_v48, %v877_v23  ;;  %vm912_vm15 = vmor %vm910_vm14, %vm911_vm11  ;;  %v957_v24 = vpop.permute.xlu0 %956 }
 0x138   : > { %v907_v28 = vsub.f32 1.0, %v906_v43  ;;  %v941_v15 = vadd.f32 %v939_v63, %v937_v18  ;;  %v917_v43 = vor.u32 1.1754944e-38, %v916_v33  ;;  %v583_v18 = vld [vmem:[%s4544_s12 + $0x8] sm:$0xff]  ;;  %vm959_vm1 = vcmp.eq.s32.totalorder %v957_v24, 1 }
 0x139   : > { %v3721_v22 = vpop.eup %3720  ;;  %v894_v34 = vadd.f32 %v3717_v41, %v893_v8  ;;  %1123 = vmatpush.bf16.msra.mxu0 %v4639_v39  ;;  %vm915_vm0 = vcmp.eq.f32.partialorder %v914_v60, 8.507059e+37  ;;  %v886_v33 = vand.u32 2147483648, %v4801_v40  ;;  %vm925_vm6 = vweird.f32 %v4821_v26  ;;  %vm3388_vm11 = vmpackc.low %vm959_vm1, %vm958_vm9  ;;  %v5913_v24 = vld [vmem:[#allocation39_spill] sm:$0xff] }
 0x13a   : > { %v908_v10 = vmul.f32 %v3719_v17, %v907_v28  ;;  %v921_v44 = vmul.f32 %v3721_v22, %v4821_v26  ;;  %v4849_v27 = vsel %vm958_vm9, %v941_v15, %v582_v9  ;;  %v3723_v3 = vpop.eup %3722  ;;  %3724 = vtanh.f32 %v941_v15 }
 0x13b   : > { %v898_v63 = vsel %vm897_vm12, %v3717_v41, %v894_v34  ;;  %1137 = vmatpush.bf16.msra.mxu1 %v4657_v55  ;;  %v879_v34 = vadd.f32 %v4818_v48, %v878_v31  ;;  %vm926_vm4 = vweird.f32 %v3721_v22  ;;  %v929_v60 = vand.u32 2147483647, %v4821_v26 }
 0x13c   : > { %v922_v2 = vsub.f32 1.0, %v921_v44  ;;  %v903_v42 = vsel %vm900_vm13, %v902_v19, %v898_v63  ;;  %v909_v0 = vadd.f32 %v3719_v17, %v908_v10  ;;  %v931_v10 = vand.u32 2147483648, %v4821_v26  ;;  %vm927_vm7 = vmor %vm925_vm6, %vm926_vm4 }
 0x13d   : > { %v940_v8 = vmul.f32 %v3723_v3, %v903_v42  ;;  %1124 = vmatpush.bf16.msra.mxu0 %v4665_v59  ;;  %v883_v44 = vsel %vm882_vm5, %v4818_v48, %v879_v34  ;;  %vm930_vm10 = vcmp.eq.f32.partialorder %v929_v60, 8.507059e+37  ;;  %v5915_v34 = vld [vmem:[#allocation41_spill] sm:$0xff]  ;;  %v576_v60 = vld [vmem:[%s5922_s26] sm:$0x3] }
 0x13e   : > { %v913_v41 = vsel %vm912_vm15, %v3719_v17, %v909_v0  ;;  %v923_v1 = vmul.f32 %v3721_v22, %v922_v2  ;;  %v884_v17 = vand.u32 2147483647, %v4801_v40  ;;  %v887_v2 = vor.u32 1.1754944e-38, %v886_v33  ;;  %v5917_v33 = vld [vmem:[#allocation43_spill] sm:$0xff] }
 0x13f   : > { %v918_v9 = vsel %vm915_vm0, %v917_v43, %v913_v41  ;;  %1138 = vmatpush.bf16.msra.mxu1 %v4679_v4  ;;  %v932_v0 = vor.u32 1.1754944e-38, %v931_v10  ;;  %v5920_v10 = vld [vmem:[#allocation46_spill] sm:$0xff] }
 0x140   : > { %v938_v28 = vmul.f32 %v918_v9, %v583_v18  ;;  %v924_v19 = vadd.f32 %v3721_v22, %v923_v1  ;;  %v3725_v63 = vpop.eup %3724  ;;  %vm885_vm8 = vcmp.eq.f32.partialorder %v884_v17, 8.507059e+37  ;;  %v5911_v1 = vld [vmem:[#allocation37_spill] sm:$0xff]  ;;  %v5912_v9 = vld [vmem:[#allocation38_spill] sm:$0xff]  ;;  %v5918_v17 = vld [vmem:[#allocation44_spill] sm:$0xff] }
 0x141   : > { %v888_v42 = vsel %vm885_vm8, %v887_v2, %v883_v44  ;;  %v5921_v44 = vld [vmem:[#allocation47_spill] sm:$0xff]  ;;  %v4936_v2 = vperm.slane %v576_v60, 1 }
 0x142   : > { %v942_v23 = vadd.f32 %v940_v8, %v938_v28  ;;  %v928_v40 = vsel %vm927_vm7, %v3721_v22, %v924_v19  ;;  %v945_v3 = vmul.f32 %v3725_v63, %v888_v42  ;;  %v5910_v22 = vld [vmem:[#allocation36_spill] sm:$0xff]  ;;  %v5919_v19 = vld [vmem:[#allocation45_spill] sm:$0xff]  ;;  %v4934_v63 = vperm.slane %v576_v60, 0 }
 0x143   : > { %v933_v43 = vsel %vm930_vm10, %v932_v0, %v928_v40  ;;  %v5914_v28 = vld [vmem:[#allocation40_spill] sm:$0xff]  ;;  %5924 = vst [vmem:[#allocation49_spill] sm:$0xff] %v4936_v2 }
 0x144   : > { %3726 = vtanh.f32 %v942_v23  ;;  %v4864_v15 = vsel %vm959_vm1, %v942_v23, %v583_v18  ;;  %v4872_v8 = vsel %vm958_vm9, %v945_v3, %v4652_v53  ;;  %v5907_v53 = vld [vmem:[#allocation33_spill] sm:$0xff]  ;;  %v5916_v23 = vld [vmem:[#allocation42_spill] sm:$0xff]  ;;  %5923 = vst [vmem:[#allocation48_spill] sm:$0xff] %v4934_v63 }
 0x14a   : > { %v3727_v31 = vpop.eup %3726 }
 0x14b   : > { %v946_v41 = vmul.f32 %v3727_v31, %v933_v43  ;;  %v1084_v31 = vld [vmem:[%s4509_s28 + $0x10] sm:$0xff] }
 0x14c   : > { %v1145_v43 = vunpack.c.l.bf16 %v1084_v31 }
 0x14d   : > { %v3389_v18 = vpack.c.bf16 %v946_v41, %v945_v3  ;;  %v4876_v26 = vsel %vm959_vm1, %v946_v41, %v4655_v54  ;;  %v5908_v54 = vld [vmem:[#allocation34_spill] sm:$0xff]  ;;  %v1146_v41 = vunpack.c.h.bf16 %v1084_v31 }
 0x14e   : > { %v1088_v48 = vpack.c.bf16 %v4876_v26, %v4872_v8 }
 0x14f   : > { %3390 = vmatmul.msk.bf16.vlgmr.msrb.gmra.mxu0 %vm3388_vm11, %v3389_v18  ;;  %3393 = vmatmul.msk.bf16.vlgmr.msrb.gmra.mxu1 %vm3388_vm11, %v3389_v18 }
 0x150   : > { %1097 = vmatmul.bf16.vlgmr.msrb.gmra.mxu2 %v1088_v48  ;;  %1111 = vmatmul.bf16.vlgmr.msrb.gmra.mxu3 %v1088_v48 }
 0x151   : > { %1345 = vmatpush.bf16.msrb.mxu0 %v4551_v7  ;;  %1359 = vmatpush.bf16.msrb.mxu1 %v4553_v11 }
 0x152   : > { %1373 = vmatpush.bf16.msrb.mxu2 %v4555_v12  ;;  %1387 = vmatpush.bf16.msrb.mxu3 %v4566_v25 }
 0x155   : > { %1346 = vmatpush.bf16.msrb.mxu0 %v4558_v16  ;;  %1360 = vmatpush.bf16.msrb.mxu1 %v4562_v20 }
 0x156   : > { %1374 = vmatpush.bf16.msrb.mxu2 %v4564_v21  ;;  %1388 = vmatpush.bf16.msrb.mxu3 %v4578_v38 }
 0x159   : > { %1347 = vmatpush.bf16.msrb.mxu0 %v4570_v32  ;;  %1361 = vmatpush.bf16.msrb.mxu1 %v4574_v36 }
 0x15a   : > { %1375 = vmatpush.bf16.msrb.mxu2 %v4576_v37  ;;  %1389 = vmatpush.bf16.msrb.mxu3 %v4584_v46 }
 0x15d   : > { %1348 = vmatpush.bf16.msrb.mxu0 %v4582_v45  ;;  %1362 = vmatpush.bf16.msrb.mxu1 %v4588_v49 }
 0x15e   : > { %1376 = vmatpush.bf16.msrb.mxu2 %v4590_v50  ;;  %1390 = vmatpush.bf16.msrb.mxu3 %v4596_v58 }
 0x15f   : > { %1125 = vmatmul.bf16.vlgmr.msra.gmra.mxu0 %v1088_v48  ;;  %1139 = vmatmul.bf16.vlgmr.msra.gmra.mxu1 %v1088_v48 }
 0x161   : > { %1349 = vmatpush.bf16.msrb.mxu0 %v4594_v57  ;;  %1363 = vmatpush.bf16.msrb.mxu1 %v4600_v61 }
 0x162   : > { %1377 = vmatpush.bf16.msrb.mxu2 %v4602_v62  ;;  %1391 = vmatpush.bf16.msrb.mxu3 %v4608_v6 }
 0x165   : > { %1350 = vmatpush.bf16.msrb.mxu0 %v4606_v5  ;;  %1364 = vmatpush.bf16.msrb.mxu1 %v4612_v13 }
 0x166   : > { %1378 = vmatpush.bf16.msrb.mxu2 %v4614_v14  ;;  %1392 = vmatpush.bf16.msrb.mxu3 %v4631_v30 }
 0x169   : > { %1351 = vmatpush.bf16.msrb.mxu0 %v4629_v29  ;;  %1365 = vmatpush.bf16.msrb.mxu1 %v4637_v35 }
 0x16a   : > { %1379 = vmatpush.bf16.msrb.mxu2 %v4639_v39  ;;  %1393 = vmatpush.bf16.msrb.mxu3 %v4657_v55 }
 0x16d   : > { %1352 = vmatpush.bf16.msrb.mxu0 %v4647_v51  ;;  %1366 = vmatpush.bf16.msrb.mxu1 %v4663_v56 }
 0x16e   : > { %1380 = vmatpush.bf16.msrb.mxu2 %v4665_v59  ;;  %1394 = vmatpush.bf16.msrb.mxu3 %v4679_v4 }
 0x171   : > { %1564 = vmatpush.bf16.msra.mxu0 %v4723_v47  ;;  %1578 = vmatpush.bf16.msra.mxu1 %v5907_v53 }
 0x175   : > { %1565 = vmatpush.bf16.msra.mxu0 %v5908_v54  ;;  %1579 = vmatpush.bf16.msra.mxu1 %v5909_v52 }
 0x179   : > { %1566 = vmatpush.bf16.msra.mxu0 %v5910_v22  ;;  %1580 = vmatpush.bf16.msra.mxu1 %v5911_v1 }
 0x17d   : > { %1567 = vmatpush.bf16.msra.mxu0 %v5912_v9  ;;  %1581 = vmatpush.bf16.msra.mxu1 %v5913_v24 }
 0x181   : > { %1568 = vmatpush.bf16.msra.mxu0 %v5914_v28  ;;  %1582 = vmatpush.bf16.msra.mxu1 %v5915_v34  ;;  %v1085_v34 = vld [vmem:[%s4509_s28 + $0x18] sm:$0xff] }
 0x182   : > { %v1147_v31 = vunpack.c.l.bf16 %v1085_v34 }
 0x185   : > { %1569 = vmatpush.bf16.msra.mxu0 %v5916_v23  ;;  %1583 = vmatpush.bf16.msra.mxu1 %v5917_v33  ;;  %v1086_v33 = vld [vmem:[%s4509_s28 + $0x90] sm:$0xff] }
 0x189   : > { %1570 = vmatpush.bf16.msra.mxu0 %v5918_v17  ;;  %1584 = vmatpush.bf16.msra.mxu1 %v5919_v19 }
 0x18d   : > { %1571 = vmatpush.bf16.msra.mxu0 %v5920_v10  ;;  %1585 = vmatpush.bf16.msra.mxu1 %v5921_v44 }
 0x1cc   : > { %v1061_v40 = vpop.f32.mrf.mxu0  ;;  %v1075_v42 = vpop.f32.mrf.mxu1 }
 0x1cd   : > { %v1062_v0 = vadd.f32 %v1061_v40, %v4934_v63  ;;  %v1076_v3 = vadd.f32 %v1075_v42, %v4936_v2 }
 0x1cf   : > { %1080 = vst [vmem:[%s4540_s4] sm:$0xff] %v1062_v0  ;;  %v1149_v0 = vunpack.c.l.bf16 %v1086_v33 }
 0x1d0   : > { %1081 = vst [vmem:[%s4540_s4 + $0x8] sm:$0xff] %v1076_v3  ;;  %v1150_v3 = vunpack.c.h.bf16 %v1086_v33 }
 0x1d3   : > { %v1098_v18 = vpop.f32.mrf.mxu2  ;;  %v1112_v48 = vpop.f32.mrf.mxu3 }
 0x1d4   : > { %v1153_v44 = vadd.f32 %v1145_v43, %v1098_v18  ;;  %v1154_v60 = vadd.f32 %v1146_v41, %v1112_v48  ;;  %v1063_v10 = vpop.f32.mrf.mxu0  ;;  %v1077_v19 = vpop.f32.mrf.mxu1 }
 0x1d5   : > { %v1064_v17 = vadd.f32 %v1063_v10, %v4934_v63  ;;  %v1078_v40 = vadd.f32 %v1077_v19, %v4936_v2  ;;  %v1087_v2 = vld [vmem:[%s4509_s28 + $0x98] sm:$0xff] }
 0x1d6   : > { %v3394_v42 = vmul.f32 -1.442695, %v1153_v44  ;;  %v3395_v23 = vmul.f32 -1.442695, %v1154_v60 }
 0x1d7   : > { %1082 = vst [vmem:[%s4540_s4 + $0x80] sm:$0xff] %v1064_v17 }
 0x1d8   : > { %3728 = vpow2.f32 %v3394_v42  ;;  %1083 = vst [vmem:[%s4540_s4 + $0x88] sm:$0xff] %v1078_v40  ;;  %v1148_v40 = vunpack.c.h.bf16 %v1085_v34 }
 0x1d9   : > { %3730 = vpow2.f32 %v3395_v23  ;;  %v1151_v23 = vunpack.c.l.bf16 %v1087_v2 }
 0x1db   : > { %v1100_v43 = vpop.f32.mrf.mxu2  ;;  %v1114_v41 = vpop.f32.mrf.mxu3 }
 0x1dc   : > { %v1157_v18 = vadd.f32 %v1149_v0, %v1100_v43  ;;  %v1158_v48 = vadd.f32 %v1150_v3, %v1114_v41  ;;  %v1126_v28 = vpop.f32.mrf.mxu0  ;;  %v1140_v33 = vpop.f32.mrf.mxu1 }
 0x1dd   : > { %v1155_v10 = vadd.f32 %v1147_v31, %v1126_v28  ;;  %v1156_v42 = vadd.f32 %v1148_v40, %v1140_v33 }
 0x1de   : > { %v3729_v63 = vpop.eup %3728  ;;  %v3397_v19 = vmul.f32 -1.442695, %v1157_v18  ;;  %v3398_v24 = vmul.f32 -1.442695, %v1158_v48 }
 0x1df   : > { %v3731_v44 = vpop.eup %3730  ;;  %v1179_v60 = vadd.f32 1.0, %v3729_v63  ;;  %v3396_v17 = vmul.f32 -1.442695, %v1155_v10 }
 0x1e0   : > { %v1180_v9 = vadd.f32 1.0, %v3731_v44  ;;  %3732 = vpow2.f32 %v3397_v19 }
 0x1e1   : > { %3734 = vrcp.f32 %v1179_v60  ;;  %v1194_v33 = vand.u32 2147483647, %v1179_v60  ;;  %vm1190_vm13 = vweird.f32 %v1179_v60 }
 0x1e2   : > { %3736 = vrcp.f32 %v1180_v9  ;;  %vm1205_vm14 = vweird.f32 %v1180_v9 }
 0x1e3   : > { %3738 = vpow2.f32 %v3398_v24  ;;  %v1152_v24 = vunpack.c.h.bf16 %v1087_v2  ;;  %vm1195_vm0 = vcmp.eq.f32.partialorder %v1194_v33, 8.507059e+37 }
 0x1e4   : > { %3740 = vpow2.f32 %v3396_v17  ;;  %v1128_v0 = vpop.f32.mrf.mxu0 }
 0x1e5   : > { %v1159_v3 = vadd.f32 %v1151_v23, %v1128_v0  ;;  %3742 = vtanh.f32 %v1156_v42  ;;  %v1196_v23 = vand.u32 2147483648, %v1179_v60  ;;  %v1211_v0 = vand.u32 2147483648, %v1180_v9 }
 0x1e6   : > { %v3733_v28 = vpop.eup %3732 }
 0x1e7   : > { %v3735_v31 = vpop.eup %3734  ;;  %v4950_v43 = vadd.f32 1.0, %v3733_v28  ;;  %v3399_v41 = vmul.f32 -1.442695, %v1159_v3  ;;  %v1209_v28 = vand.u32 2147483647, %v1180_v9  ;;  %v1212_v22 = vor.u32 1.1754944e-38, %v1211_v0 }
 0x1e8   : > { %v3737_v63 = vpop.eup %3736  ;;  %v1186_v18 = vmul.f32 %v3735_v31, %v1179_v60  ;;  %vm1191_vm9 = vweird.f32 %v3735_v31  ;;  %v4962_v60 = vpop.permute.xlu1 %1294 }
 0x1e9   : > { %v3739_v48 = vpop.eup %3738  ;;  %v1201_v10 = vmul.f32 %v3737_v63, %v1180_v9  ;;  %3744 = vrcp.f32 %v4950_v43  ;;  %vm1206_vm12 = vweird.f32 %v3737_v63  ;;  %vm1192_vm15 = vmor %vm1190_vm13, %vm1191_vm9  ;;  %vm1210_vm2 = vcmp.eq.f32.partialorder %v1209_v28, 8.507059e+37 }
 0x1ea   : > { %v3741_v34 = vpop.eup %3740  ;;  %v1187_v19 = vsub.f32 1.0, %v1186_v18  ;;  %v4953_v44 = vadd.f32 1.0, %v3739_v48  ;;  %3746 = vpow2.f32 %v3399_v41  ;;  %v1142_v18 = vpop.f32.mrf.mxu1  ;;  %v1197_v41 = vor.u32 1.1754944e-38, %v1196_v23  ;;  %vm1207_vm1 = vmor %vm1205_vm14, %vm1206_vm12 }
 0x1eb   : > { %v1202_v17 = vsub.f32 1.0, %v1201_v10  ;;  %v4955_v40 = vadd.f32 1.0, %v3741_v34  ;;  %v3743_v48 = vpop.eup %3742  ;;  %v1160_v52 = vadd.f32 %v1152_v24, %v1142_v18  ;;  %vm1299_vm3 = vcmp.eq.s32.totalorder %v4962_v60, 1  ;;  %v5927_v60 = vld [vmem:[#allocation33_spill] sm:$0xff] }
 0x1ec   : > { %3748 = vrcp.f32 %v4953_v44  ;;  %v1188_v3 = vmul.f32 %v3735_v31, %v1187_v19  ;;  %v1241_v24 = vand.u32 2147483648, %v4950_v43  ;;  %vm1235_vm5 = vweird.f32 %v4950_v43 }
 0x1ed   : > { %v1203_v42 = vmul.f32 %v3737_v63, %v1202_v17  ;;  %3750 = vrcp.f32 %v4955_v40  ;;  %vm1250_vm8 = vweird.f32 %v4953_v44  ;;  %vm1220_vm14 = vweird.f32 %v4955_v40 }
 0x1ee   : > { %v1189_v1 = vadd.f32 %v3735_v31, %v1188_v3 }
 0x1ef   : > { %v3745_v2 = vpop.eup %3744  ;;  %v1204_v10 = vadd.f32 %v3737_v63, %v1203_v42  ;;  %v1256_v42 = vand.u32 2147483648, %v4953_v44 }
 0x1f0   : > { %v3747_v34 = vpop.eup %3746  ;;  %v1231_v19 = vmul.f32 %v3745_v2, %v4950_v43  ;;  %v1193_v17 = vsel %vm1192_vm15, %v3735_v31, %v1189_v1  ;;  %vm1236_vm4 = vweird.f32 %v3745_v2 }
 0x1f1   : > { %v1198_v54 = vsel %vm1195_vm0, %v1197_v41, %v1193_v17  ;;  %v1208_v53 = vsel %vm1207_vm1, %v3737_v63, %v1204_v10  ;;  %v4960_v47 = vadd.f32 1.0, %v3747_v34  ;;  %v1239_v63 = vand.u32 2147483647, %v4950_v43  ;;  %vm1237_vm7 = vmor %vm1235_vm5, %vm1236_vm4 }
 0x1f2   : > { %v3749_v3 = vpop.eup %3748  ;;  %v1232_v9 = vsub.f32 1.0, %v1231_v19  ;;  %v1213_v4 = vsel %vm1210_vm2, %v1212_v22, %v1208_v53  ;;  %v1279_v33 = vmul.f32 %v3743_v48, %v1198_v54  ;;  %v1254_v48 = vand.u32 2147483647, %v4953_v44 }
 0x1f3   : > { %v4964_v23 = vpop.eup %3750  ;;  %v1246_v0 = vmul.f32 %v3749_v3, %v4953_v44  ;;  %v1277_v1 = vmul.f32 %v1213_v4, %v4849_v27  ;;  %3752 = vrcp.f32 %v4960_v47  ;;  %vm1251_vm6 = vweird.f32 %v3749_v3 }
 0x1f4   : > { %v1216_v31 = vmul.f32 %v4964_v23, %v4955_v40  ;;  %3754 = vtanh.f32 %v1160_v52  ;;  %v1233_v22 = vmul.f32 %v3745_v2, %v1232_v9  ;;  %v1242_v41 = vor.u32 1.1754944e-38, %v1241_v24  ;;  %vm1252_vm11 = vmor %vm1250_vm8, %vm1251_vm6 }
 0x1f5   : > { %v1247_v53 = vsub.f32 1.0, %v1246_v0  ;;  %v1281_v54 = vadd.f32 %v1279_v33, %v1277_v1  ;;  %vm1240_vm10 = vcmp.eq.f32.partialorder %v1239_v63, 8.507059e+37  ;;  %v1257_v43 = vor.u32 1.1754944e-38, %v1256_v42 }
 0x1f6   : > { %v1217_v28 = vsub.f32 1.0, %v1216_v31  ;;  %v1234_v18 = vadd.f32 %v3745_v2, %v1233_v22  ;;  %vm1255_vm9 = vcmp.eq.f32.partialorder %v1254_v48, 8.507059e+37  ;;  %vm1221_vm13 = vweird.f32 %v4964_v23 }
 0x1f7   : > { %v1248_v4 = vmul.f32 %v3749_v3, %v1247_v53  ;;  %v4980_v52 = vsel %vm1299_vm3, %v1281_v54, %v4849_v27  ;;  %v1298_v53 = vpop.permute.xlu1 %1297  ;;  %3756 = vtanh.f32 %v1281_v54  ;;  %v1226_v22 = vand.u32 2147483648, %v4955_v40  ;;  %vm1222_vm0 = vmor %vm1220_vm14, %vm1221_vm13 }
 0x1f8   : > { %v1238_v34 = vsel %vm1237_vm7, %v3745_v2, %v1234_v18  ;;  %v1218_v9 = vmul.f32 %v4964_v23, %v1217_v28  ;;  %vm1300_vm12 = vcmp.eq.s32.totalorder %v1298_v53, 1  ;;  %v1271_v54 = vand.u32 2147483648, %v4960_v47  ;;  %v5932_v53 = vld [vmem:[#allocation38_spill] sm:$0xff] }
 0x1f9   : > { %v3753_v10 = vpop.eup %3752  ;;  %v1249_v19 = vadd.f32 %v3749_v3, %v1248_v4  ;;  %v1243_v0 = vsel %vm1240_vm10, %v1242_v41, %v1238_v34  ;;  %vm1265_vm1 = vweird.f32 %v4960_v47  ;;  %v1269_v18 = vand.u32 2147483647, %v4960_v47  ;;  %vm3400_vm6 = vmpackc.low %vm1300_vm12, %vm1299_vm3 }
 0x1fa   : > { %v3755_v17 = vpop.eup %3754  ;;  %v1261_v33 = vmul.f32 %v3753_v10, %v4960_v47  ;;  %v1219_v2 = vadd.f32 %v4964_v23, %v1218_v9  ;;  %vm1266_vm15 = vweird.f32 %v3753_v10  ;;  %v1227_v34 = vor.u32 1.1754944e-38, %v1226_v22  ;;  %v5936_v22 = vld [vmem:[#allocation42_spill] sm:$0xff] }
 0x1fb   : > { %v1253_v1 = vsel %vm1252_vm11, %v3749_v3, %v1249_v19  ;;  %v1280_v31 = vmul.f32 %v3755_v17, %v1243_v0  ;;  %v1224_v3 = vand.u32 2147483647, %v4955_v40  ;;  %vm1267_vm2 = vmor %vm1265_vm1, %vm1266_vm15  ;;  %v1272_v19 = vor.u32 1.1754944e-38, %v1271_v54  ;;  %v5940_v54 = vld [vmem:[#allocation46_spill] sm:$0xff] }
 0x1fc   : > { %v1262_v24 = vsub.f32 1.0, %v1261_v33  ;;  %v1258_v27 = vsel %vm1255_vm9, %v1257_v43, %v1253_v1  ;;  %v1223_v48 = vsel %vm1222_vm0, %v4964_v23, %v1219_v2  ;;  %vm1270_vm5 = vcmp.eq.f32.partialorder %v1269_v18, 8.507059e+37  ;;  %v5934_v2 = vld [vmem:[#allocation40_spill] sm:$0xff]  ;;  %v5941_v18 = vld [vmem:[#allocation47_spill] sm:$0xff] }
 0x1fd   : > { %v1278_v44 = vmul.f32 %v1258_v27, %v4864_v15  ;;  %v3757_v41 = vpop.eup %3756  ;;  %vm1225_vm4 = vcmp.eq.f32.partialorder %v1224_v3, 8.507059e+37  ;;  %v5931_v27 = vld [vmem:[#allocation37_spill] sm:$0xff]  ;;  %v5938_v3 = vld [vmem:[#allocation44_spill] sm:$0xff] }
 0x1fe   : > { %v1263_v63 = vmul.f32 %v3753_v10, %v1262_v24  ;;  %v1228_v17 = vsel %vm1225_vm4, %v1227_v34, %v1223_v48  ;;  %v5930_v24 = vld [vmem:[#allocation36_spill] sm:$0xff]  ;;  %v1340_v48 = vld [vmem:[%s4509_s28 + $0x20] sm:$0xff] }
 0x1ff   : > { %v1282_v42 = vadd.f32 %v1280_v31, %v1278_v44  ;;  %v1285_v43 = vmul.f32 %v3757_v41, %v1228_v17  ;;  %v5929_v31 = vld [vmem:[#allocation35_spill] sm:$0xff]  ;;  %v1401_v41 = vunpack.c.l.bf16 %v1340_v48  ;;  %v1402_v34 = vunpack.c.h.bf16 %v1340_v48 }
 0x200   : > { %v1264_v28 = vadd.f32 %v3753_v10, %v1263_v63  ;;  %v5933_v44 = vld [vmem:[#allocation39_spill] sm:$0xff]  ;;  %v5935_v63 = vld [vmem:[#allocation41_spill] sm:$0xff] }
 0x201   : > { %3758 = vtanh.f32 %v1282_v42  ;;  %v4994_v4 = vsel %vm1300_vm12, %v1282_v42, %v4864_v15  ;;  %v5002_v1 = vsel %vm1299_vm3, %v1285_v43, %v4872_v8  ;;  %v5925_v8 = vld [vmem:[#allocation31_spill] sm:$0xff] }
 0x202   : > { %v1268_v40 = vsel %vm1267_vm2, %v3753_v10, %v1264_v28  ;;  %v5928_v10 = vld [vmem:[#allocation34_spill] sm:$0xff]  ;;  %v5937_v42 = vld [vmem:[#allocation43_spill] sm:$0xff]  ;;  %v5939_v28 = vld [vmem:[#allocation45_spill] sm:$0xff] }
 0x203   : > { %v1273_v33 = vsel %vm1270_vm5, %v1272_v19, %v1268_v40 }
 0x207   : > { %v3759_v9 = vpop.eup %3758 }
 0x208   : > { %v1286_v0 = vmul.f32 %v3759_v9, %v1273_v33  ;;  %v1342_v9 = vld [vmem:[%s4509_s28 + $0xa0] sm:$0xff] }
 0x20a   : > { %v3401_v15 = vpack.c.bf16 %v1286_v0, %v1285_v43  ;;  %v5006_v47 = vsel %vm1300_vm12, %v1286_v0, %v4876_v26  ;;  %v5926_v26 = vld [vmem:[#allocation32_spill] sm:$0xff] }
 0x20b   : > { %v1344_v23 = vpack.c.bf16 %v5006_v47, %v5002_v1 }
 0x20c   : > { %3402 = vmatmul.msk.bf16.vlgmr.msra.gmra.mxu2 %vm3400_vm6, %v3401_v15  ;;  %3405 = vmatmul.msk.bf16.vlgmr.msra.gmra.mxu3 %vm3400_vm6, %v3401_v15 }
 0x20d   : > { %1353 = vmatmul.bf16.vlgmr.msrb.gmra.mxu0 %v1344_v23  ;;  %1367 = vmatmul.bf16.vlgmr.msrb.gmra.mxu1 %v1344_v23 }
 0x20e   : > { %1601 = vmatpush.bf16.msra.mxu2 %v4551_v7  ;;  %1615 = vmatpush.bf16.msra.mxu3 %v4553_v11 }
 0x20f   : > { %1629 = vmatpush.bf16.msrb.mxu0 %v4555_v12  ;;  %1643 = vmatpush.bf16.msrb.mxu1 %v4566_v25 }
 0x212   : > { %1602 = vmatpush.bf16.msra.mxu2 %v4558_v16  ;;  %1616 = vmatpush.bf16.msra.mxu3 %v4562_v20 }
 0x213   : > { %1630 = vmatpush.bf16.msrb.mxu0 %v4564_v21  ;;  %1644 = vmatpush.bf16.msrb.mxu1 %v4578_v38 }
 0x216   : > { %1603 = vmatpush.bf16.msra.mxu2 %v4570_v32  ;;  %1617 = vmatpush.bf16.msra.mxu3 %v4574_v36 }
 0x217   : > { %1631 = vmatpush.bf16.msrb.mxu0 %v4576_v37  ;;  %1645 = vmatpush.bf16.msrb.mxu1 %v4584_v46 }
 0x21a   : > { %1604 = vmatpush.bf16.msra.mxu2 %v4582_v45  ;;  %1618 = vmatpush.bf16.msra.mxu3 %v4588_v49 }
 0x21b   : > { %1632 = vmatpush.bf16.msrb.mxu0 %v4590_v50  ;;  %1646 = vmatpush.bf16.msrb.mxu1 %v4596_v58 }
 0x21c   : > { %1381 = vmatmul.bf16.vlgmr.msrb.gmra.mxu2 %v1344_v23  ;;  %1395 = vmatmul.bf16.vlgmr.msrb.gmra.mxu3 %v1344_v23 }
 0x21e   : > { %1605 = vmatpush.bf16.msra.mxu2 %v4594_v57  ;;  %1619 = vmatpush.bf16.msra.mxu3 %v4600_v61 }
 0x21f   : > { %1633 = vmatpush.bf16.msrb.mxu0 %v4602_v62  ;;  %1647 = vmatpush.bf16.msrb.mxu1 %v4608_v6 }
 0x222   : > { %1606 = vmatpush.bf16.msra.mxu2 %v4606_v5  ;;  %1620 = vmatpush.bf16.msra.mxu3 %v4612_v13 }
 0x223   : > { %1634 = vmatpush.bf16.msrb.mxu0 %v4614_v14  ;;  %1648 = vmatpush.bf16.msrb.mxu1 %v4631_v30 }
 0x226   : > { %1607 = vmatpush.bf16.msra.mxu2 %v4629_v29  ;;  %1621 = vmatpush.bf16.msra.mxu3 %v4637_v35 }
 0x227   : > { %1635 = vmatpush.bf16.msrb.mxu0 %v4639_v39  ;;  %1649 = vmatpush.bf16.msrb.mxu1 %v4657_v55 }
 0x22a   : > { %1608 = vmatpush.bf16.msra.mxu2 %v4647_v51  ;;  %1622 = vmatpush.bf16.msra.mxu3 %v4663_v56 }
 0x22b   : > { %1636 = vmatpush.bf16.msrb.mxu0 %v4665_v59  ;;  %1650 = vmatpush.bf16.msrb.mxu1 %v5925_v8 }
 0x22e   : > { %1820 = vmatpush.bf16.msrb.mxu2 %v5926_v26  ;;  %1834 = vmatpush.bf16.msrb.mxu3 %v5927_v60 }
 0x232   : > { %1821 = vmatpush.bf16.msrb.mxu2 %v5928_v10  ;;  %1835 = vmatpush.bf16.msrb.mxu3 %v5929_v31 }
 0x236   : > { %1822 = vmatpush.bf16.msrb.mxu2 %v5930_v24  ;;  %1836 = vmatpush.bf16.msrb.mxu3 %v5931_v27 }
 0x23a   : > { %1823 = vmatpush.bf16.msrb.mxu2 %v5932_v53  ;;  %1837 = vmatpush.bf16.msrb.mxu3 %v5933_v44 }
 0x23e   : > { %1824 = vmatpush.bf16.msrb.mxu2 %v5934_v2  ;;  %1838 = vmatpush.bf16.msrb.mxu3 %v5935_v63 }
 0x242   : > { %1825 = vmatpush.bf16.msrb.mxu2 %v5936_v22  ;;  %1839 = vmatpush.bf16.msrb.mxu3 %v5937_v42  ;;  %v5943_v42 = vld [vmem:[#allocation49_spill] sm:$0xff] }
 0x246   : > { %1826 = vmatpush.bf16.msrb.mxu2 %v5938_v3  ;;  %1840 = vmatpush.bf16.msrb.mxu3 %v5939_v28  ;;  %v1405_v28 = vunpack.c.l.bf16 %v1342_v9  ;;  %v1406_v3 = vunpack.c.h.bf16 %v1342_v9 }
 0x24a   : > { %1827 = vmatpush.bf16.msrb.mxu2 %v5940_v54  ;;  %1841 = vmatpush.bf16.msrb.mxu3 %v5941_v18  ;;  %v5942_v54 = vld [vmem:[#allocation48_spill] sm:$0xff] }
 0x28a   : > { %v1354_v40 = vpop.f32.mrf.mxu0  ;;  %v1368_v19 = vpop.f32.mrf.mxu1 }
 0x28b   : > { %v1409_v17 = vadd.f32 %v1401_v41, %v1354_v40  ;;  %v1410_v43 = vadd.f32 %v1402_v34, %v1368_v19 }
 0x28d   : > { %v3406_v33 = vmul.f32 -1.442695, %v1409_v17  ;;  %v3407_v0 = vmul.f32 -1.442695, %v1410_v43 }
 0x28f   : > { %3760 = vpow2.f32 %v3406_v33  ;;  %v1317_v15 = vpop.f32.mrf.mxu2  ;;  %v1331_v23 = vpop.f32.mrf.mxu3 }
 0x290   : > { %3762 = vpow2.f32 %v3407_v0  ;;  %v1318_v18 = vadd.f32 %v1317_v15, %v5942_v54  ;;  %v1332_v22 = vadd.f32 %v1331_v23, %v5943_v42 }
 0x292   : > { %1336 = vst [vmem:[%s4540_s4 + $0x10] sm:$0xff] %v1318_v18  ;;  %v1356_v48 = vpop.f32.mrf.mxu0  ;;  %v1370_v63 = vpop.f32.mrf.mxu1 }
 0x293   : > { %1337 = vst [vmem:[%s4540_s4 + $0x18] sm:$0xff] %v1332_v22  ;;  %v1413_v41 = vadd.f32 %v1405_v28, %v1356_v48  ;;  %v1414_v34 = vadd.f32 %v1406_v3, %v1370_v63  ;;  %v1341_v28 = vld [vmem:[%s4509_s28 + $0x28] sm:$0xff] }
 0x294   : > { %v1403_v63 = vunpack.c.l.bf16 %v1341_v28  ;;  %v1404_v23 = vunpack.c.h.bf16 %v1341_v28  ;;  %v1343_v48 = vld [vmem:[%s4509_s28 + $0xa8] sm:$0xff] }
 0x295   : > { %v3761_v40 = vpop.eup %3760  ;;  %v3409_v19 = vmul.f32 -1.442695, %v1413_v41  ;;  %v3410_v33 = vmul.f32 -1.442695, %v1414_v34 }
 0x296   : > { %v3763_v17 = vpop.eup %3762  ;;  %v1435_v43 = vadd.f32 1.0, %v3761_v40 }
 0x297   : > { %v1436_v9 = vadd.f32 1.0, %v3763_v17  ;;  %3764 = vpow2.f32 %v3409_v19  ;;  %v1319_v0 = vpop.f32.mrf.mxu2  ;;  %v1333_v15 = vpop.f32.mrf.mxu3 }
 0x298   : > { %3766 = vrcp.f32 %v1435_v43  ;;  %v1320_v18 = vadd.f32 %v1319_v0, %v5942_v54  ;;  %v1334_v22 = vadd.f32 %v1333_v15, %v5943_v42  ;;  %v1407_v42 = vunpack.c.l.bf16 %v1343_v48 }
 0x299   : > { %3768 = vrcp.f32 %v1436_v9  ;;  %v1408_v54 = vunpack.c.h.bf16 %v1343_v48  ;;  %v1467_v53 = vand.u32 2147483648, %v1436_v9  ;;  %v1452_v31 = vand.u32 2147483648, %v1435_v43 }
 0x29a   : > { %3770 = vpow2.f32 %v3410_v33  ;;  %1338 = vst [vmem:[%s4540_s4 + $0x90] sm:$0xff] %v1320_v18  ;;  %v1465_v60 = vand.u32 2147483647, %v1436_v9  ;;  %vm1446_vm8 = vweird.f32 %v1435_v43  ;;  %vm1461_vm10 = vweird.f32 %v1436_v9 }
 0x29b   : > { %1339 = vst [vmem:[%s4540_s4 + $0x98] sm:$0xff] %v1334_v22 }
 0x29c   : > { %vm1466_vm13 = vcmp.eq.f32.partialorder %v1465_v60, 8.507059e+37 }
 0x29d   : > { %v3765_v3 = vpop.eup %3764 }
 0x29e   : > { %v3767_v41 = vpop.eup %3766  ;;  %v5073_v34 = vadd.f32 1.0, %v3765_v3  ;;  %v1450_v3 = vand.u32 2147483647, %v1435_v43 }
 0x29f   : > { %v3769_v40 = vpop.eup %3768  ;;  %v1442_v19 = vmul.f32 %v3767_v41, %v1435_v43  ;;  %v1382_v17 = vpop.f32.mrf.mxu2  ;;  %vm1447_vm3 = vweird.f32 %v3767_v41 }
 0x2a0   : > { %v1396_v2 = vpop.f32.mrf.mxu3  ;;  %v3771_v44 = vpop.eup %3770  ;;  %v1457_v0 = vmul.f32 %v3769_v40, %v1436_v9  ;;  %3772 = vrcp.f32 %v5073_v34  ;;  %v1411_v15 = vadd.f32 %v1403_v63, %v1382_v17  ;;  %vm1462_vm7 = vweird.f32 %v3769_v40  ;;  %vm5079_vm11 = vmor %vm1446_vm8, %vm1447_vm3 }
 0x2a1   : > { %v1443_v33 = vsub.f32 1.0, %v1442_v19  ;;  %v5076_v18 = vadd.f32 1.0, %v3771_v44  ;;  %v1412_v22 = vadd.f32 %v1404_v23, %v1396_v2  ;;  %v1468_v2 = vor.u32 1.1754944e-38, %v1467_v53  ;;  %vm5083_vm9 = vmor %vm1461_vm10, %vm1462_vm7  ;;  %v5090_v9 = vpop.permute.xlu2 %1550 }
 0x2a2   : > { %v1458_v28 = vsub.f32 1.0, %v1457_v0  ;;  %v3408_v27 = vmul.f32 -1.442695, %v1411_v15  ;;  %vm1451_vm12 = vcmp.eq.f32.partialorder %v1450_v3, 8.507059e+37  ;;  %vm1555_vm14 = vcmp.eq.s32.totalorder %v5090_v9, 1  ;;  %v5950_v9 = vld [vmem:[#allocation33_spill] sm:$0xff] }
 0x2a3   : > { %3774 = vrcp.f32 %v5076_v18  ;;  %v1444_v24 = vmul.f32 %v3767_v41, %v1443_v33  ;;  %v1497_v60 = vand.u32 2147483648, %v5073_v34  ;;  %vm1491_vm0 = vweird.f32 %v5073_v34 }
 0x2a4   : > { %v1459_v10 = vmul.f32 %v3769_v40, %v1458_v28  ;;  %3776 = vpow2.f32 %v3408_v27  ;;  %vm1506_vm2 = vweird.f32 %v5076_v18 }
 0x2a5   : > { %v1445_v63 = vadd.f32 %v3767_v41, %v1444_v24  ;;  %3778 = vtanh.f32 %v1412_v22  ;;  %v1453_v24 = vor.u32 1.1754944e-38, %v1452_v31 }
 0x2a6   : > { %v3773_v44 = vpop.eup %3772  ;;  %v1460_v48 = vadd.f32 %v3769_v40, %v1459_v10 }
 0x2a7   : > { %v1487_v17 = vmul.f32 %v3773_v44, %v5073_v34  ;;  %v1449_v27 = vsel %vm5079_vm11, %v3767_v41, %v1445_v63  ;;  %v1384_v43 = vpop.f32.mrf.mxu2  ;;  %v1495_v63 = vand.u32 2147483647, %v5073_v34  ;;  %vm1492_vm15 = vweird.f32 %v3773_v44 }
 0x2a8   : > { %v1398_v0 = vpop.f32.mrf.mxu3  ;;  %v1464_v53 = vsel %vm5083_vm9, %v3769_v40, %v1460_v48  ;;  %v1415_v10 = vadd.f32 %v1407_v42, %v1384_v43  ;;  %v1454_v28 = vsel %vm1451_vm12, %v1453_v24, %v1449_v27  ;;  %vm1493_vm4 = vmor %vm1491_vm0, %vm1492_vm15  ;;  %v1498_v24 = vor.u32 1.1754944e-38, %v1497_v60 }
 0x2a9   : > { %v1416_v15 = vadd.f32 %v1408_v54, %v1398_v0  ;;  %v3775_v33 = vpop.eup %3774  ;;  %v1488_v22 = vsub.f32 1.0, %v1487_v17  ;;  %v1469_v26 = vsel %vm1466_vm13, %v1468_v2, %v1464_v53  ;;  %v1512_v2 = vand.u32 2147483648, %v5076_v18 }
 0x2aa   : > { %v3777_v23 = vpop.eup %3776  ;;  %v1502_v41 = vmul.f32 %v3775_v33, %v5076_v18  ;;  %v1533_v31 = vmul.f32 %v1469_v26, %v4980_v52  ;;  %v3411_v3 = vmul.f32 -1.442695, %v1415_v10  ;;  %v1510_v26 = vand.u32 2147483647, %v5076_v18 }
 0x2ab   : > { %v3779_v8 = vpop.eup %3778  ;;  %v1437_v19 = vadd.f32 1.0, %v3777_v23  ;;  %v1489_v40 = vmul.f32 %v3773_v44, %v1488_v22  ;;  %3780 = vtanh.f32 %v1416_v15  ;;  %vm1507_vm1 = vweird.f32 %v3775_v33 }
 0x2ac   : > { %v1503_v42 = vsub.f32 1.0, %v1502_v41  ;;  %v1535_v54 = vmul.f32 %v3779_v8, %v1454_v28  ;;  %3782 = vpow2.f32 %v3411_v3  ;;  %vm1496_vm5 = vcmp.eq.f32.partialorder %v1495_v63, 8.507059e+37  ;;  %vm1508_vm6 = vmor %vm1506_vm2, %vm1507_vm1 }
 0x2ad   : > { %3784 = vrcp.f32 %v1437_v19  ;;  %v1490_v27 = vadd.f32 %v3773_v44, %v1489_v40  ;;  %v1513_v34 = vor.u32 1.1754944e-38, %v1512_v2  ;;  %vm1511_vm3 = vcmp.eq.f32.partialorder %v1510_v26, 8.507059e+37 }
 0x2ae   : > { %v1504_v48 = vmul.f32 %v3775_v33, %v1503_v42  ;;  %v1537_v17 = vadd.f32 %v1535_v54, %v1533_v31  ;;  %v1554_v31 = vpop.permute.xlu2 %1553  ;;  %v1482_v54 = vand.u32 2147483648, %v1437_v19  ;;  %vm1476_vm10 = vweird.f32 %v1437_v19 }
 0x2af   : > { %v1494_v43 = vsel %vm1493_vm4, %v3773_v44, %v1490_v27  ;;  %vm1556_vm7 = vcmp.eq.s32.totalorder %v1554_v31, 1  ;;  %v1480_v2 = vand.u32 2147483647, %v1437_v19  ;;  %v5951_v31 = vld [vmem:[#allocation34_spill] sm:$0xff] }
 0x2b0   : > { %v1505_v8 = vadd.f32 %v3775_v33, %v1504_v48  ;;  %v5106_v0 = vsel %vm1555_vm14, %v1537_v17, %v4980_v52  ;;  %v1499_v10 = vsel %vm1496_vm5, %v1498_v24, %v1494_v43  ;;  %v1483_v24 = vor.u32 1.1754944e-38, %v1482_v54  ;;  %vm3412_vm1 = vmpackc.low %vm1556_vm7, %vm1555_vm14  ;;  %v5957_v54 = vld [vmem:[#allocation40_spill] sm:$0xff] }
 0x2b1   : > { %v3781_v53 = vpop.eup %3780  ;;  %vm1481_vm9 = vcmp.eq.f32.partialorder %v1480_v2, 8.507059e+37  ;;  %v5958_v2 = vld [vmem:[#allocation41_spill] sm:$0xff] }
 0x2b2   : > { %v3783_v15 = vpop.eup %3782  ;;  %v1509_v22 = vsel %vm1508_vm6, %v3775_v33, %v1505_v8  ;;  %v1536_v28 = vmul.f32 %v3781_v53, %v1499_v10 }
 0x2b3   : > { %v3785_v23 = vpop.eup %3784  ;;  %v1440_v18 = vadd.f32 1.0, %v3783_v15  ;;  %v1514_v41 = vsel %vm1511_vm3, %v1513_v34, %v1509_v22 }
 0x2b4   : > { %v1472_v44 = vmul.f32 %v3785_v23, %v1437_v19  ;;  %v1534_v3 = vmul.f32 %v1514_v41, %v4994_v4  ;;  %vm1477_vm8 = vweird.f32 %v3785_v23 }
 0x2b5   : > { %3786 = vrcp.f32 %v1440_v18  ;;  %vm1478_vm11 = vmor %vm1476_vm10, %vm1477_vm8  ;;  %v1527_v43 = vand.u32 2147483648, %v1440_v18  ;;  %v1525_v53 = vand.u32 2147483647, %v1440_v18  ;;  %vm1521_vm13 = vweird.f32 %v1440_v18 }
 0x2b6   : > { %v1473_v63 = vsub.f32 1.0, %v1472_v44  ;;  %v1538_v52 = vadd.f32 %v1536_v28, %v1534_v3  ;;  %3788 = vtanh.f32 %v1537_v17 }
 0x2b7   : > { %v1528_v15 = vor.u32 1.1754944e-38, %v1527_v43  ;;  %vm1526_vm0 = vcmp.eq.f32.partialorder %v1525_v53, 8.507059e+37  ;;  %v5963_v43 = vld [vmem:[#allocation46_spill] sm:$0xff] }
 0x2b8   : > { %v1474_v40 = vmul.f32 %v3785_v23, %v1473_v63  ;;  %v5111_v60 = vsel %vm1556_vm7, %v1538_v52, %v4994_v4  ;;  %3790 = vtanh.f32 %v1538_v52  ;;  %v5952_v63 = vld [vmem:[#allocation35_spill] sm:$0xff]  ;;  %v5953_v52 = vld [vmem:[#allocation36_spill] sm:$0xff] }
 0x2ba   : > { %v1475_v42 = vadd.f32 %v3785_v23, %v1474_v40  ;;  %v5954_v40 = vld [vmem:[#allocation37_spill] sm:$0xff] }
 0x2bb   : > { %v3787_v33 = vpop.eup %3786 }
 0x2bc   : > { %v1517_v26 = vmul.f32 %v3787_v33, %v1440_v18  ;;  %v1479_v27 = vsel %vm1478_vm11, %v3785_v23, %v1475_v42  ;;  %vm1522_vm12 = vweird.f32 %v3787_v33  ;;  %v3789_v10 = vpop.eup %3788  ;;  %v5955_v42 = vld [vmem:[#allocation38_spill] sm:$0xff] }
 0x2bd   : > { %v1484_v4 = vsel %vm1481_vm9, %v1483_v24, %v1479_v27  ;;  %vm1523_vm15 = vmor %vm1521_vm13, %vm1522_vm12  ;;  %v5961_v27 = vld [vmem:[#allocation44_spill] sm:$0xff]  ;;  %v5962_v24 = vld [vmem:[#allocation45_spill] sm:$0xff] }
 0x2be   : > { %v1518_v48 = vsub.f32 1.0, %v1517_v26  ;;  %v1541_v22 = vmul.f32 %v3789_v10, %v1484_v4  ;;  %v3791_v28 = vpop.eup %3790  ;;  %v5959_v26 = vld [vmem:[#allocation42_spill] sm:$0xff] }
 0x2c0   : > { %v1519_v8 = vmul.f32 %v3787_v33, %v1518_v48  ;;  %v5116_v44 = vsel %vm1555_vm14, %v1541_v22, %v5002_v1  ;;  %v5948_v1 = vld [vmem:[#allocation31_spill] sm:$0xff] }
 0x2c1   : > { %v5960_v48 = vld [vmem:[#allocation43_spill] sm:$0xff] }
 0x2c2   : > { %v1520_v34 = vadd.f32 %v3787_v33, %v1519_v8  ;;  %v5964_v8 = vld [vmem:[#allocation47_spill] sm:$0xff] }
 0x2c4   : > { %v1524_v19 = vsel %vm1523_vm15, %v3787_v33, %v1520_v34  ;;  %v5956_v33 = vld [vmem:[#allocation39_spill] sm:$0xff]  ;;  %v5965_v34 = vld [vmem:[#allocation48_spill] sm:$0xff] }
 0x2c5   : > { %v1529_v17 = vsel %vm1526_vm0, %v1528_v15, %v1524_v19  ;;  %v5966_v15 = vld [vmem:[#allocation49_spill] sm:$0xff] }
 0x2c6   : > { %v1542_v41 = vmul.f32 %v3791_v28, %v1529_v17 }
 0x2c8   : > { %v3413_v23 = vpack.c.bf16 %v1542_v41, %v1541_v22  ;;  %v5120_v3 = vsel %vm1556_vm7, %v1542_v41, %v5006_v47  ;;  %v5949_v47 = vld [vmem:[#allocation32_spill] sm:$0xff] }
 0x2c9   : > { %v1600_v18 = vpack.c.bf16 %v5120_v3, %v5116_v44  ;;  %v1596_v22 = vld [vmem:[%s4509_s28 + $0x30] sm:$0xff] }
 0x2ca   : > { %3414 = vmatmul.msk.bf16.vlgmr.msra.gmra.mxu0 %vm3412_vm1, %v3413_v23  ;;  %3417 = vmatmul.msk.bf16.vlgmr.msra.gmra.mxu1 %vm3412_vm1, %v3413_v23  ;;  %v1657_v28 = vunpack.c.l.bf16 %v1596_v22  ;;  %v1658_v17 = vunpack.c.h.bf16 %v1596_v22 }
 0x2cb   : > { %1609 = vmatmul.bf16.vlgmr.msra.gmra.mxu2 %v1600_v18  ;;  %1623 = vmatmul.bf16.vlgmr.msra.gmra.mxu3 %v1600_v18 }
 0x2cc   : > { %1857 = vmatpush.bf16.msra.mxu0 %v4551_v7  ;;  %1871 = vmatpush.bf16.msra.mxu1 %v4553_v11 }
 0x2cd   : > { %1885 = vmatpush.bf16.msra.mxu2 %v4555_v12  ;;  %1899 = vmatpush.bf16.msra.mxu3 %v4566_v25 }
 0x2d0   : > { %1858 = vmatpush.bf16.msra.mxu0 %v4558_v16  ;;  %1872 = vmatpush.bf16.msra.mxu1 %v4562_v20 }
 0x2d1   : > { %1886 = vmatpush.bf16.msra.mxu2 %v4564_v21  ;;  %1900 = vmatpush.bf16.msra.mxu3 %v4578_v38 }
 0x2d4   : > { %1859 = vmatpush.bf16.msra.mxu0 %v4570_v32  ;;  %1873 = vmatpush.bf16.msra.mxu1 %v4574_v36 }
 0x2d5   : > { %1887 = vmatpush.bf16.msra.mxu2 %v4576_v37  ;;  %1901 = vmatpush.bf16.msra.mxu3 %v4584_v46 }
 0x2d8   : > { %1860 = vmatpush.bf16.msra.mxu0 %v4582_v45  ;;  %1874 = vmatpush.bf16.msra.mxu1 %v4588_v49 }
 0x2d9   : > { %1888 = vmatpush.bf16.msra.mxu2 %v4590_v50  ;;  %1902 = vmatpush.bf16.msra.mxu3 %v4596_v58 }
 0x2da   : > { %1637 = vmatmul.bf16.vlgmr.msrb.gmra.mxu0 %v1600_v18  ;;  %1651 = vmatmul.bf16.vlgmr.msrb.gmra.mxu1 %v1600_v18 }
 0x2dc   : > { %1861 = vmatpush.bf16.msra.mxu0 %v4594_v57  ;;  %1875 = vmatpush.bf16.msra.mxu1 %v4600_v61 }
 0x2dd   : > { %1889 = vmatpush.bf16.msra.mxu2 %v4602_v62  ;;  %1903 = vmatpush.bf16.msra.mxu3 %v4608_v6 }
 0x2e0   : > { %1862 = vmatpush.bf16.msra.mxu0 %v4606_v5  ;;  %1876 = vmatpush.bf16.msra.mxu1 %v4612_v13 }
 0x2e1   : > { %1890 = vmatpush.bf16.msra.mxu2 %v4614_v14  ;;  %1904 = vmatpush.bf16.msra.mxu3 %v4631_v30 }
 0x2e4   : > { %1863 = vmatpush.bf16.msra.mxu0 %v4629_v29  ;;  %1877 = vmatpush.bf16.msra.mxu1 %v4637_v35 }
 0x2e5   : > { %1891 = vmatpush.bf16.msra.mxu2 %v4639_v39  ;;  %1905 = vmatpush.bf16.msra.mxu3 %v4657_v55 }
 0x2e8   : > { %1864 = vmatpush.bf16.msra.mxu0 %v4647_v51  ;;  %1878 = vmatpush.bf16.msra.mxu1 %v4663_v56 }
 0x2e9   : > { %1892 = vmatpush.bf16.msra.mxu2 %v4665_v59  ;;  %1906 = vmatpush.bf16.msra.mxu3 %v5948_v1 }
 0x2ec   : > { %2076 = vmatpush.bf16.msrb.mxu0 %v5949_v47  ;;  %2090 = vmatpush.bf16.msrb.mxu1 %v5950_v9 }
 0x2f0   : > { %2077 = vmatpush.bf16.msrb.mxu0 %v5951_v31  ;;  %2091 = vmatpush.bf16.msrb.mxu1 %v5952_v63 }
 0x2f4   : > { %2078 = vmatpush.bf16.msrb.mxu0 %v5953_v52  ;;  %2092 = vmatpush.bf16.msrb.mxu1 %v5954_v40 }
 0x2f8   : > { %2079 = vmatpush.bf16.msrb.mxu0 %v5955_v42  ;;  %2093 = vmatpush.bf16.msrb.mxu1 %v5956_v33 }
 0x2fc   : > { %2080 = vmatpush.bf16.msrb.mxu0 %v5957_v54  ;;  %2094 = vmatpush.bf16.msrb.mxu1 %v5958_v2  ;;  %v1597_v2 = vld [vmem:[%s4509_s28 + $0x38] sm:$0xff] }
 0x2fd   : > { %v1659_v22 = vunpack.c.l.bf16 %v1597_v2 }
 0x300   : > { %2081 = vmatpush.bf16.msrb.mxu0 %v5959_v26  ;;  %2095 = vmatpush.bf16.msrb.mxu1 %v5960_v48  ;;  %v1598_v48 = vld [vmem:[%s4509_s28 + $0xb0] sm:$0xff] }
 0x304   : > { %2082 = vmatpush.bf16.msrb.mxu0 %v5961_v27  ;;  %2096 = vmatpush.bf16.msrb.mxu1 %v5962_v24 }
 0x308   : > { %2083 = vmatpush.bf16.msrb.mxu0 %v5963_v43  ;;  %2097 = vmatpush.bf16.msrb.mxu1 %v5964_v8 }
 0x347   : > { %v1573_v53 = vpop.f32.mrf.mxu0  ;;  %v1587_v4 = vpop.f32.mrf.mxu1 }
 0x348   : > { %v1574_v10 = vadd.f32 %v1573_v53, %v5965_v34  ;;  %v1588_v19 = vadd.f32 %v1587_v4, %v5966_v15 }
 0x34a   : > { %1592 = vst [vmem:[%s4540_s4 + $0x20] sm:$0xff] %v1574_v10  ;;  %v1661_v10 = vunpack.c.l.bf16 %v1598_v48 }
 0x34b   : > { %1593 = vst [vmem:[%s4540_s4 + $0x28] sm:$0xff] %v1588_v19  ;;  %v1662_v19 = vunpack.c.h.bf16 %v1598_v48 }
 0x34e   : > { %v1610_v41 = vpop.f32.mrf.mxu2  ;;  %v1624_v23 = vpop.f32.mrf.mxu3 }
 0x34f   : > { %v1665_v18 = vadd.f32 %v1657_v28, %v1610_v41  ;;  %v1666_v43 = vadd.f32 %v1658_v17, %v1624_v23  ;;  %v1575_v8 = vpop.f32.mrf.mxu0  ;;  %v1589_v24 = vpop.f32.mrf.mxu1 }
 0x350   : > { %v1576_v27 = vadd.f32 %v1575_v8, %v5965_v34  ;;  %v1590_v53 = vadd.f32 %v1589_v24, %v5966_v15  ;;  %v1599_v15 = vld [vmem:[%s4509_s28 + $0xb8] sm:$0xff] }
 0x351   : > { %v3418_v4 = vmul.f32 -1.442695, %v1665_v18  ;;  %v3419_v26 = vmul.f32 -1.442695, %v1666_v43 }
 0x352   : > { %1594 = vst [vmem:[%s4540_s4 + $0xa0] sm:$0xff] %v1576_v27 }
 0x353   : > { %3792 = vpow2.f32 %v3418_v4  ;;  %1595 = vst [vmem:[%s4540_s4 + $0xa8] sm:$0xff] %v1590_v53  ;;  %v1660_v53 = vunpack.c.h.bf16 %v1597_v2 }
 0x354   : > { %3794 = vpow2.f32 %v3419_v26  ;;  %v1663_v26 = vunpack.c.l.bf16 %v1599_v15 }
 0x356   : > { %v1612_v28 = vpop.f32.mrf.mxu2  ;;  %v1626_v17 = vpop.f32.mrf.mxu3 }
 0x357   : > { %v1669_v41 = vadd.f32 %v1661_v10, %v1612_v28  ;;  %v1670_v23 = vadd.f32 %v1662_v19, %v1626_v17  ;;  %v1638_v54 = vpop.f32.mrf.mxu0  ;;  %v1652_v48 = vpop.f32.mrf.mxu1 }
 0x358   : > { %v1667_v8 = vadd.f32 %v1659_v22, %v1638_v54  ;;  %v1668_v4 = vadd.f32 %v1660_v53, %v1652_v48 }
 0x359   : > { %v3793_v34 = vpop.eup %3792  ;;  %v3421_v24 = vmul.f32 -1.442695, %v1669_v41  ;;  %v3422_v33 = vmul.f32 -1.442695, %v1670_v23 }
 0x35a   : > { %v3795_v18 = vpop.eup %3794  ;;  %v1691_v43 = vadd.f32 1.0, %v3793_v34  ;;  %v3420_v27 = vmul.f32 -1.442695, %v1667_v8 }
 0x35b   : > { %v1692_v42 = vadd.f32 1.0, %v3795_v18  ;;  %3796 = vpow2.f32 %v3421_v24 }
 0x35c   : > { %3798 = vrcp.f32 %v1691_v43  ;;  %v1706_v48 = vand.u32 2147483647, %v1691_v43  ;;  %vm1702_vm4 = vweird.f32 %v1691_v43 }
 0x35d   : > { %3800 = vrcp.f32 %v1692_v42  ;;  %vm1717_vm5 = vweird.f32 %v1692_v42 }
 0x35e   : > { %3802 = vpow2.f32 %v3422_v33  ;;  %v1664_v33 = vunpack.c.h.bf16 %v1599_v15  ;;  %vm1707_vm3 = vcmp.eq.f32.partialorder %v1706_v48, 8.507059e+37 }
 0x35f   : > { %3804 = vpow2.f32 %v3420_v27  ;;  %v1640_v10 = vpop.f32.mrf.mxu0 }
 0x360   : > { %v1671_v19 = vadd.f32 %v1663_v26, %v1640_v10  ;;  %3806 = vtanh.f32 %v1668_v4  ;;  %v1708_v26 = vand.u32 2147483648, %v1691_v43  ;;  %v1723_v10 = vand.u32 2147483648, %v1692_v42 }
 0x361   : > { %v3797_v54 = vpop.eup %3796 }
 0x362   : > { %v3799_v22 = vpop.eup %3798  ;;  %v5187_v28 = vadd.f32 1.0, %v3797_v54  ;;  %v3423_v17 = vmul.f32 -1.442695, %v1671_v19  ;;  %v1721_v54 = vand.u32 2147483647, %v1692_v42  ;;  %v1724_v52 = vor.u32 1.1754944e-38, %v1723_v10 }
 0x363   : > { %v3801_v34 = vpop.eup %3800  ;;  %v1698_v41 = vmul.f32 %v3799_v22, %v1691_v43  ;;  %vm1703_vm14 = vweird.f32 %v3799_v22 }
 0x364   : > { %v3803_v23 = vpop.eup %3802  ;;  %v1713_v8 = vmul.f32 %v3801_v34, %v1692_v42  ;;  %3808 = vrcp.f32 %v5187_v28  ;;  %vm1718_vm2 = vweird.f32 %v3801_v34  ;;  %vm1704_vm6 = vmor %vm1702_vm4, %vm1703_vm14  ;;  %vm1722_vm8 = vcmp.eq.f32.partialorder %v1721_v54, 8.507059e+37 }
 0x365   : > { %v3805_v2 = vpop.eup %3804  ;;  %v1699_v24 = vsub.f32 1.0, %v1698_v41  ;;  %v5190_v18 = vadd.f32 1.0, %v3803_v23  ;;  %3810 = vpow2.f32 %v3423_v17  ;;  %v1654_v41 = vpop.f32.mrf.mxu1  ;;  %v1709_v17 = vor.u32 1.1754944e-38, %v1708_v26  ;;  %vm1719_vm7 = vmor %vm1717_vm5, %vm1718_vm2 }
 0x366   : > { %v1714_v27 = vsub.f32 1.0, %v1713_v8  ;;  %v5192_v53 = vadd.f32 1.0, %v3805_v2  ;;  %v3807_v23 = vpop.eup %3806  ;;  %v1672_v63 = vadd.f32 %v1664_v33, %v1654_v41  ;;  %v5208_v33 = vpop.permute.xlu0 %1806  ;;  %vm1747_vm9 = vweird.f32 %v5187_v28 }
 0x367   : > { %3812 = vrcp.f32 %v5190_v18  ;;  %v1700_v19 = vmul.f32 %v3799_v22, %v1699_v24  ;;  %vm1811_vm11 = vcmp.eq.s32.totalorder %v5208_v33, 1  ;;  %v1766_v41 = vand.u32 2147483647, %v5190_v18  ;;  %v5969_v33 = vld [vmem:[#allocation32_spill] sm:$0xff] }
 0x368   : > { %v1715_v4 = vmul.f32 %v3801_v34, %v1714_v27  ;;  %3814 = vrcp.f32 %v5192_v53  ;;  %vm1762_vm15 = vweird.f32 %v5190_v18  ;;  %vm1732_vm5 = vweird.f32 %v5192_v53 }
 0x369   : > { %v1701_v40 = vadd.f32 %v3799_v22, %v1700_v19  ;;  %vm1767_vm14 = vcmp.eq.f32.partialorder %v1766_v41, 8.507059e+37 }
 0x36a   : > { %v3809_v15 = vpop.eup %3808  ;;  %v1716_v8 = vadd.f32 %v3801_v34, %v1715_v4 }
 0x36b   : > { %v3811_v2 = vpop.eup %3810  ;;  %v1743_v24 = vmul.f32 %v3809_v15, %v5187_v28  ;;  %v1705_v27 = vsel %vm1704_vm6, %v3799_v22, %v1701_v40  ;;  %v1751_v22 = vand.u32 2147483647, %v5187_v28  ;;  %vm1748_vm10 = vweird.f32 %v3809_v15 }
 0x36c   : > { %v1710_v31 = vsel %vm1707_vm3, %v1709_v17, %v1705_v27  ;;  %v1720_v9 = vsel %vm1719_vm7, %v3801_v34, %v1716_v8  ;;  %v5197_v47 = vadd.f32 1.0, %v3811_v2  ;;  %v1753_v34 = vand.u32 2147483648, %v5187_v28  ;;  %vm1749_vm13 = vmor %vm1747_vm9, %vm1748_vm10 }
 0x36d   : > { %v3813_v19 = vpop.eup %3812  ;;  %v1744_v43 = vsub.f32 1.0, %v1743_v24  ;;  %v1725_v1 = vsel %vm1722_vm8, %v1724_v52, %v1720_v9  ;;  %v1791_v42 = vmul.f32 %v3807_v23, %v1710_v31  ;;  %vm1752_vm0 = vcmp.eq.f32.partialorder %v1751_v22, 8.507059e+37 }
 0x36e   : > { %v5199_v59 = vpop.eup %3814  ;;  %v1758_v48 = vmul.f32 %v3813_v19, %v5190_v18  ;;  %v1789_v26 = vmul.f32 %v1725_v1, %v5106_v0  ;;  %3816 = vrcp.f32 %v5197_v47  ;;  %v1768_v1 = vand.u32 2147483648, %v5190_v18  ;;  %v1810_v18 = vpop.permute.xlu1 %1809 }
 0x36f   : > { %v1728_v40 = vmul.f32 %v5199_v59, %v5192_v53  ;;  %3818 = vtanh.f32 %v1672_v63  ;;  %v1745_v52 = vmul.f32 %v3809_v15, %v1744_v43  ;;  %vm1763_vm12 = vweird.f32 %v3813_v19 }
 0x370   : > { %v1759_v9 = vsub.f32 1.0, %v1758_v48  ;;  %v1793_v31 = vadd.f32 %v1791_v42, %v1789_v26  ;;  %v1754_v63 = vor.u32 1.1754944e-38, %v1753_v34  ;;  %vm1764_vm1 = vmor %vm1762_vm15, %vm1763_vm12  ;;  %v1769_v28 = vor.u32 1.1754944e-38, %v1768_v1 }
 0x371   : > { %v1729_v10 = vsub.f32 1.0, %v1728_v40  ;;  %v1746_v54 = vadd.f32 %v3809_v15, %v1745_v52  ;;  %vm1733_vm2 = vweird.f32 %v5199_v59  ;;  %vm1812_vm4 = vcmp.eq.s32.totalorder %v1810_v18, 1  ;;  %v5976_v18 = vld [vmem:[#allocation39_spill] sm:$0xff] }
 0x372   : > { %v1760_v4 = vmul.f32 %v3813_v19, %v1759_v9  ;;  %v5217_v23 = vsel %vm1811_vm11, %v1793_v31, %v5106_v0  ;;  %3820 = vtanh.f32 %v1793_v31  ;;  %v1738_v9 = vand.u32 2147483648, %v5192_v53  ;;  %vm1734_vm3 = vmor %vm1732_vm5, %vm1733_vm2 }
 0x373   : > { %v1750_v8 = vsel %vm1749_vm13, %v3809_v15, %v1746_v54  ;;  %v1730_v27 = vmul.f32 %v5199_v59, %v1729_v10  ;;  %v1783_v31 = vand.u32 2147483648, %v5197_v47  ;;  %vm1777_vm7 = vweird.f32 %v5197_v47  ;;  %vm3424_vm12 = vmpackc.low %vm1812_vm4, %vm1811_vm11 }
 0x374   : > { %v3817_v17 = vpop.eup %3816  ;;  %v1761_v2 = vadd.f32 %v3813_v19, %v1760_v4  ;;  %v1755_v42 = vsel %vm1752_vm0, %v1754_v63, %v1750_v8  ;;  %v1781_v4 = vand.u32 2147483647, %v5197_v47  ;;  %v1739_v63 = vor.u32 1.1754944e-38, %v1738_v9  ;;  %v5979_v9 = vld [vmem:[#allocation42_spill] sm:$0xff] }
 0x375   : > { %v3819_v24 = vpop.eup %3818  ;;  %v1773_v43 = vmul.f32 %v3817_v17, %v5197_v47  ;;  %v1731_v15 = vadd.f32 %v5199_v59, %v1730_v27  ;;  %vm1778_vm6 = vweird.f32 %v3817_v17  ;;  %v1784_v8 = vor.u32 1.1754944e-38, %v1783_v31  ;;  %v5983_v31 = vld [vmem:[#allocation46_spill] sm:$0xff] }
 0x376   : > { %v1765_v48 = vsel %vm1764_vm1, %v3813_v19, %v1761_v2  ;;  %v1792_v26 = vmul.f32 %v3819_v24, %v1755_v42  ;;  %v1736_v19 = vand.u32 2147483647, %v5192_v53  ;;  %vm1779_vm8 = vmor %vm1777_vm7, %vm1778_vm6  ;;  %vm1782_vm9 = vcmp.eq.f32.partialorder %v1781_v4, 8.507059e+37  ;;  %v5984_v4 = vld [vmem:[#allocation47_spill] sm:$0xff] }
 0x377   : > { %v1774_v40 = vsub.f32 1.0, %v1773_v43  ;;  %v1770_v0 = vsel %vm1767_vm14, %v1769_v28, %v1765_v48  ;;  %v1735_v54 = vsel %vm1734_vm3, %v5199_v59, %v1731_v15  ;;  %v5971_v48 = vld [vmem:[#allocation34_spill] sm:$0xff]  ;;  %v5977_v15 = vld [vmem:[#allocation40_spill] sm:$0xff] }
 0x378   : > { %v1790_v34 = vmul.f32 %v1770_v0, %v5111_v60  ;;  %v3821_v41 = vpop.eup %3820  ;;  %vm1737_vm10 = vcmp.eq.f32.partialorder %v1736_v19, 8.507059e+37  ;;  %v5974_v0 = vld [vmem:[#allocation37_spill] sm:$0xff]  ;;  %v5981_v19 = vld [vmem:[#allocation44_spill] sm:$0xff] }
 0x379   : > { %v1775_v22 = vmul.f32 %v3817_v17, %v1774_v40  ;;  %v1740_v2 = vsel %vm1737_vm10, %v1739_v63, %v1735_v54  ;;  %v5973_v40 = vld [vmem:[#allocation36_spill] sm:$0xff]  ;;  %v1852_v54 = vld [vmem:[%s4509_s28 + $0x40] sm:$0xff] }
 0x37a   : > { %v1794_v52 = vadd.f32 %v1792_v26, %v1790_v34  ;;  %v1797_v24 = vmul.f32 %v3821_v41, %v1740_v2  ;;  %v5972_v26 = vld [vmem:[#allocation35_spill] sm:$0xff]  ;;  %v5975_v34 = vld [vmem:[#allocation38_spill] sm:$0xff]  ;;  %v1913_v41 = vunpack.c.l.bf16 %v1852_v54  ;;  %v1914_v63 = vunpack.c.h.bf16 %v1852_v54 }
 0x37b   : > { %v1776_v1 = vadd.f32 %v3817_v17, %v1775_v22  ;;  %v5978_v22 = vld [vmem:[#allocation41_spill] sm:$0xff] }
 0x37c   : > { %3822 = vtanh.f32 %v1794_v52  ;;  %v5231_v10 = vsel %vm1812_vm4, %v1794_v52, %v5111_v60  ;;  %v5239_v42 = vsel %vm1811_vm11, %v1797_v24, %v5116_v44  ;;  %v5967_v44 = vld [vmem:[#allocation30_spill] sm:$0xff]  ;;  %v5980_v52 = vld [vmem:[#allocation43_spill] sm:$0xff] }
 0x37d   : > { %v1780_v53 = vsel %vm1779_vm8, %v3817_v17, %v1776_v1  ;;  %v5970_v17 = vld [vmem:[#allocation33_spill] sm:$0xff] }
 0x37e   : > { %v1785_v27 = vsel %vm1782_vm9, %v1784_v8, %v1780_v53  ;;  %v5982_v1 = vld [vmem:[#allocation45_spill] sm:$0xff] }
 0x382   : > { %v3823_v28 = vpop.eup %3822 }
 0x383   : > { %v1798_v43 = vmul.f32 %v3823_v28, %v1785_v27  ;;  %v1854_v28 = vld [vmem:[%s4509_s28 + $0xc0] sm:$0xff] }
 0x385   : > { %v3425_v60 = vpack.c.bf16 %v1798_v43, %v1797_v24  ;;  %v5243_v59 = vsel %vm1812_vm4, %v1798_v43, %v5120_v3  ;;  %v5968_v3 = vld [vmem:[#allocation31_spill] sm:$0xff] }
 0x386   : > { %v1856_v47 = vpack.c.bf16 %v5243_v59, %v5239_v42 }
 0x387   : > { %3426 = vmatmul.msk.bf16.vlgmr.msrb.gmra.mxu2 %vm3424_vm12, %v3425_v60  ;;  %3429 = vmatmul.msk.bf16.vlgmr.msrb.gmra.mxu3 %vm3424_vm12, %v3425_v60 }
 0x388   : > { %1865 = vmatmul.bf16.vlgmr.msra.gmra.mxu0 %v1856_v47  ;;  %1879 = vmatmul.bf16.vlgmr.msra.gmra.mxu1 %v1856_v47 }
 0x389   : > { %2113 = vmatpush.bf16.msrb.mxu2 %v4551_v7  ;;  %2127 = vmatpush.bf16.msrb.mxu3 %v4553_v11 }
 0x38a   : > { %2141 = vmatpush.bf16.msra.mxu0 %v4555_v12  ;;  %2155 = vmatpush.bf16.msra.mxu1 %v4566_v25 }
 0x38d   : > { %2114 = vmatpush.bf16.msrb.mxu2 %v4558_v16  ;;  %2128 = vmatpush.bf16.msrb.mxu3 %v4562_v20 }
 0x38e   : > { %2142 = vmatpush.bf16.msra.mxu0 %v4564_v21  ;;  %2156 = vmatpush.bf16.msra.mxu1 %v4578_v38 }
 0x391   : > { %2115 = vmatpush.bf16.msrb.mxu2 %v4570_v32  ;;  %2129 = vmatpush.bf16.msrb.mxu3 %v4574_v36 }
 0x392   : > { %2143 = vmatpush.bf16.msra.mxu0 %v4576_v37  ;;  %2157 = vmatpush.bf16.msra.mxu1 %v4584_v46 }
 0x395   : > { %2116 = vmatpush.bf16.msrb.mxu2 %v4582_v45  ;;  %2130 = vmatpush.bf16.msrb.mxu3 %v4588_v49 }
 0x396   : > { %2144 = vmatpush.bf16.msra.mxu0 %v4590_v50  ;;  %2158 = vmatpush.bf16.msra.mxu1 %v4596_v58 }
 0x397   : > { %1893 = vmatmul.bf16.vlgmr.msra.gmra.mxu2 %v1856_v47  ;;  %1907 = vmatmul.bf16.vlgmr.msra.gmra.mxu3 %v1856_v47 }
 0x399   : > { %2117 = vmatpush.bf16.msrb.mxu2 %v4594_v57  ;;  %2131 = vmatpush.bf16.msrb.mxu3 %v4600_v61 }
 0x39a   : > { %2145 = vmatpush.bf16.msra.mxu0 %v4602_v62  ;;  %2159 = vmatpush.bf16.msra.mxu1 %v4608_v6 }
 0x39d   : > { %2118 = vmatpush.bf16.msrb.mxu2 %v4606_v5  ;;  %2132 = vmatpush.bf16.msrb.mxu3 %v4612_v13 }
 0x39e   : > { %2146 = vmatpush.bf16.msra.mxu0 %v4614_v14  ;;  %2160 = vmatpush.bf16.msra.mxu1 %v4631_v30 }
 0x3a1   : > { %2119 = vmatpush.bf16.msrb.mxu2 %v4629_v29  ;;  %2133 = vmatpush.bf16.msrb.mxu3 %v4637_v35 }
 0x3a2   : > { %2147 = vmatpush.bf16.msra.mxu0 %v4639_v39  ;;  %2161 = vmatpush.bf16.msra.mxu1 %v4657_v55 }
 0x3a5   : > { %2120 = vmatpush.bf16.msrb.mxu2 %v4647_v51  ;;  %2134 = vmatpush.bf16.msrb.mxu3 %v4663_v56 }
 0x3a6   : > { %2148 = vmatpush.bf16.msra.mxu0 %v5967_v44  ;;  %2162 = vmatpush.bf16.msra.mxu1 %v5968_v3 }
 0x3a9   : > { %2332 = vmatpush.bf16.msra.mxu2 %v5969_v33  ;;  %2346 = vmatpush.bf16.msra.mxu3 %v5970_v17 }
 0x3ad   : > { %2333 = vmatpush.bf16.msra.mxu2 %v5971_v48  ;;  %2347 = vmatpush.bf16.msra.mxu3 %v5972_v26 }
 0x3b1   : > { %2334 = vmatpush.bf16.msra.mxu2 %v5973_v40  ;;  %2348 = vmatpush.bf16.msra.mxu3 %v5974_v0 }
 0x3b5   : > { %2335 = vmatpush.bf16.msra.mxu2 %v5975_v34  ;;  %2349 = vmatpush.bf16.msra.mxu3 %v5976_v18 }
 0x3b9   : > { %2336 = vmatpush.bf16.msra.mxu2 %v5977_v15  ;;  %2350 = vmatpush.bf16.msra.mxu3 %v5978_v22 }
 0x3bd   : > { %2337 = vmatpush.bf16.msra.mxu2 %v5979_v9  ;;  %2351 = vmatpush.bf16.msra.mxu3 %v5980_v52  ;;  %v5986_v52 = vld [vmem:[#allocation49_spill] sm:$0xff] }
 0x3c1   : > { %2338 = vmatpush.bf16.msra.mxu2 %v5981_v19  ;;  %2352 = vmatpush.bf16.msra.mxu3 %v5982_v1  ;;  %v1917_v1 = vunpack.c.l.bf16 %v1854_v28  ;;  %v1918_v19 = vunpack.c.h.bf16 %v1854_v28 }
 0x3c5   : > { %2339 = vmatpush.bf16.msra.mxu2 %v5983_v31  ;;  %2353 = vmatpush.bf16.msra.mxu3 %v5984_v4  ;;  %v5985_v31 = vld [vmem:[#allocation48_spill] sm:$0xff] }
 0x405   : > { %v1866_v53 = vpop.f32.mrf.mxu0  ;;  %v1880_v8 = vpop.f32.mrf.mxu1 }
 0x406   : > { %v1921_v2 = vadd.f32 %v1913_v41, %v1866_v53  ;;  %v1922_v24 = vadd.f32 %v1914_v63, %v1880_v8 }
 0x408   : > { %v3430_v27 = vmul.f32 -1.442695, %v1921_v2  ;;  %v3431_v43 = vmul.f32 -1.442695, %v1922_v24 }
 0x40a   : > { %3824 = vpow2.f32 %v3430_v27  ;;  %v1829_v60 = vpop.f32.mrf.mxu2  ;;  %v1843_v47 = vpop.f32.mrf.mxu3 }
 0x40b   : > { %3826 = vpow2.f32 %v3431_v43  ;;  %v1830_v4 = vadd.f32 %v1829_v60, %v5985_v31  ;;  %v1844_v9 = vadd.f32 %v1843_v47, %v5986_v52 }
 0x40d   : > { %1848 = vst [vmem:[%s4540_s4 + $0x30] sm:$0xff] %v1830_v4  ;;  %v1868_v54 = vpop.f32.mrf.mxu0  ;;  %v1882_v22 = vpop.f32.mrf.mxu1 }
 0x40e   : > { %1849 = vst [vmem:[%s4540_s4 + $0x38] sm:$0xff] %v1844_v9  ;;  %v1925_v41 = vadd.f32 %v1917_v1, %v1868_v54  ;;  %v1926_v63 = vadd.f32 %v1918_v19, %v1882_v22  ;;  %v1853_v1 = vld [vmem:[%s4509_s28 + $0x48] sm:$0xff] }
 0x40f   : > { %v1915_v22 = vunpack.c.l.bf16 %v1853_v1  ;;  %v1916_v47 = vunpack.c.h.bf16 %v1853_v1  ;;  %v1855_v54 = vld [vmem:[%s4509_s28 + $0xc8] sm:$0xff] }
 0x410   : > { %v3825_v53 = vpop.eup %3824  ;;  %v3433_v8 = vmul.f32 -1.442695, %v1925_v41  ;;  %v3434_v27 = vmul.f32 -1.442695, %v1926_v63 }
 0x411   : > { %v3827_v2 = vpop.eup %3826  ;;  %v1947_v24 = vadd.f32 1.0, %v3825_v53 }
 0x412   : > { %v1948_v28 = vadd.f32 1.0, %v3827_v2  ;;  %3828 = vpow2.f32 %v3433_v8  ;;  %v1831_v43 = vpop.f32.mrf.mxu2  ;;  %v1845_v60 = vpop.f32.mrf.mxu3 }
 0x413   : > { %3830 = vrcp.f32 %v1947_v24  ;;  %v1832_v4 = vadd.f32 %v1831_v43, %v5985_v31  ;;  %v1846_v9 = vadd.f32 %v1845_v60, %v5986_v52  ;;  %v1919_v52 = vunpack.c.l.bf16 %v1855_v54 }
 0x414   : > { %3832 = vrcp.f32 %v1948_v28  ;;  %v1920_v31 = vunpack.c.h.bf16 %v1855_v54  ;;  %v1979_v34 = vand.u32 2147483648, %v1948_v28  ;;  %v1964_v26 = vand.u32 2147483648, %v1947_v24 }
 0x415   : > { %3834 = vpow2.f32 %v3434_v27  ;;  %1850 = vst [vmem:[%s4540_s4 + $0xb0] sm:$0xff] %v1832_v4  ;;  %v1977_v17 = vand.u32 2147483647, %v1948_v28  ;;  %vm1958_vm15 = vweird.f32 %v1947_v24  ;;  %vm1973_vm0 = vweird.f32 %v1948_v28 }
 0x416   : > { %1851 = vst [vmem:[%s4540_s4 + $0xb8] sm:$0xff] %v1846_v9 }
 0x417   : > { %vm1978_vm4 = vcmp.eq.f32.partialorder %v1977_v17, 8.507059e+37 }
 0x418   : > { %v3829_v19 = vpop.eup %3828 }
 0x419   : > { %v3831_v41 = vpop.eup %3830  ;;  %v5310_v63 = vadd.f32 1.0, %v3829_v19  ;;  %v1962_v19 = vand.u32 2147483647, %v1947_v24 }
 0x41a   : > { %v3833_v53 = vpop.eup %3832  ;;  %v1954_v8 = vmul.f32 %v3831_v41, %v1947_v24  ;;  %v1894_v2 = vpop.f32.mrf.mxu2  ;;  %vm1959_vm11 = vweird.f32 %v3831_v41 }
 0x41b   : > { %v1908_v15 = vpop.f32.mrf.mxu3  ;;  %v3835_v18 = vpop.eup %3834  ;;  %v1969_v43 = vmul.f32 %v3833_v53, %v1948_v28  ;;  %3836 = vrcp.f32 %v5310_v63  ;;  %v1923_v60 = vadd.f32 %v1915_v22, %v1894_v2  ;;  %vm1974_vm13 = vweird.f32 %v3833_v53  ;;  %vm5316_vm1 = vmor %vm1958_vm15, %vm1959_vm11 }
 0x41c   : > { %v1955_v27 = vsub.f32 1.0, %v1954_v8  ;;  %v5313_v4 = vadd.f32 1.0, %v3835_v18  ;;  %v1924_v9 = vadd.f32 %v1916_v47, %v1908_v15  ;;  %v1980_v15 = vor.u32 1.1754944e-38, %v1979_v34  ;;  %vm1975_vm14 = vmor %vm1973_vm0, %vm1974_vm13  ;;  %v5330_v47 = vpop.permute.xlu2 %2062 }
 0x41d   : > { %v1970_v1 = vsub.f32 1.0, %v1969_v43  ;;  %v3432_v0 = vmul.f32 -1.442695, %v1923_v60  ;;  %vm1963_vm2 = vcmp.eq.f32.partialorder %v1962_v19, 8.507059e+37  ;;  %vm2003_vm6 = vweird.f32 %v5310_v63 }
 0x41e   : > { %3838 = vrcp.f32 %v5313_v4  ;;  %v1956_v40 = vmul.f32 %v3831_v41, %v1955_v27  ;;  %vm2067_vm7 = vcmp.eq.s32.totalorder %v5330_v47, 1  ;;  %vm2018_vm8 = vweird.f32 %v5313_v4  ;;  %v5991_v47 = vld [vmem:[#allocation32_spill] sm:$0xff] }
 0x41f   : > { %v1971_v48 = vmul.f32 %v3833_v53, %v1970_v1  ;;  %3840 = vpow2.f32 %v3432_v0  ;;  %v1965_v0 = vor.u32 1.1754944e-38, %v1964_v26 }
 0x420   : > { %v1957_v22 = vadd.f32 %v3831_v41, %v1956_v40  ;;  %3842 = vtanh.f32 %v1924_v9 }
 0x421   : > { %v3837_v18 = vpop.eup %3836  ;;  %v1972_v54 = vadd.f32 %v3833_v53, %v1971_v48 }
 0x422   : > { %v1999_v8 = vmul.f32 %v3837_v18, %v5310_v63  ;;  %v1961_v2 = vsel %vm5316_vm1, %v3831_v41, %v1957_v22  ;;  %v1896_v43 = vpop.f32.mrf.mxu2  ;;  %v2007_v41 = vand.u32 2147483647, %v5310_v63  ;;  %vm2004_vm5 = vweird.f32 %v3837_v18 }
 0x423   : > { %v1910_v40 = vpop.f32.mrf.mxu3  ;;  %v1976_v24 = vsel %vm1975_vm14, %v3833_v53, %v1972_v54  ;;  %v1927_v60 = vadd.f32 %v1919_v52, %v1896_v43  ;;  %v1966_v9 = vsel %vm1963_vm2, %v1965_v0, %v1961_v2  ;;  %v2009_v53 = vand.u32 2147483648, %v5310_v63  ;;  %vm2005_vm10 = vmor %vm2003_vm6, %vm2004_vm5 }
 0x424   : > { %v1928_v28 = vadd.f32 %v1920_v31, %v1910_v40  ;;  %v3839_v34 = vpop.eup %3838  ;;  %v2000_v27 = vsub.f32 1.0, %v1999_v8  ;;  %v1981_v1 = vsel %vm1978_vm4, %v1980_v15, %v1976_v24  ;;  %v2024_v31 = vand.u32 2147483648, %v5313_v4 }
 0x425   : > { %v3841_v33 = vpop.eup %3840  ;;  %v2014_v48 = vmul.f32 %v3839_v34, %v5313_v4  ;;  %v2045_v3 = vmul.f32 %v1981_v1, %v5217_v23  ;;  %v3435_v44 = vmul.f32 -1.442695, %v1927_v60  ;;  %v2022_v15 = vand.u32 2147483647, %v5313_v4 }
 0x426   : > { %v3843_v19 = vpop.eup %3842  ;;  %v1949_v26 = vadd.f32 1.0, %v3841_v33  ;;  %v2001_v22 = vmul.f32 %v3837_v18, %v2000_v27  ;;  %3844 = vtanh.f32 %v1928_v28  ;;  %vm2019_vm3 = vweird.f32 %v3839_v34 }
 0x427   : > { %v2015_v17 = vsub.f32 1.0, %v2014_v48  ;;  %v2047_v52 = vmul.f32 %v3843_v19, %v1966_v9  ;;  %3846 = vpow2.f32 %v3435_v44  ;;  %v2010_v44 = vor.u32 1.1754944e-38, %v2009_v53  ;;  %vm2020_vm12 = vmor %vm2018_vm8, %vm2019_vm3  ;;  %v2066_v48 = vpop.permute.xlu0 %2065 }
 0x428   : > { %3848 = vrcp.f32 %v1949_v26  ;;  %v2002_v8 = vadd.f32 %v3837_v18, %v2001_v22  ;;  %vm2008_vm9 = vcmp.eq.f32.partialorder %v2007_v41, 8.507059e+37  ;;  %v2025_v40 = vor.u32 1.1754944e-38, %v2024_v31 }
 0x429   : > { %v2016_v54 = vmul.f32 %v3839_v34, %v2015_v17  ;;  %v2049_v33 = vadd.f32 %v2047_v52, %v2045_v3  ;;  %vm2023_vm11 = vcmp.eq.f32.partialorder %v2022_v15, 8.507059e+37  ;;  %vm2068_vm13 = vcmp.eq.s32.totalorder %v2066_v48, 1  ;;  %v5993_v48 = vld [vmem:[#allocation34_spill] sm:$0xff] }
 0x42a   : > { %v2006_v2 = vsel %vm2005_vm10, %v3837_v18, %v2002_v8  ;;  %v1994_v17 = vand.u32 2147483648, %v1949_v26  ;;  %vm1988_vm0 = vweird.f32 %v1949_v26  ;;  %v1992_v52 = vand.u32 2147483647, %v1949_v26  ;;  %vm3436_vm3 = vmpackc.low %vm2068_vm13, %vm2067_vm7 }
 0x42b   : > { %v2017_v0 = vadd.f32 %v3839_v34, %v2016_v54  ;;  %v5337_v63 = vsel %vm2067_vm7, %v2049_v33, %v5217_v23  ;;  %v2011_v24 = vsel %vm2008_vm9, %v2010_v44, %v2006_v2 }
 0x42c   : > { %v3845_v43 = vpop.eup %3844  ;;  %v1995_v8 = vor.u32 1.1754944e-38, %v1994_v17  ;;  %vm1993_vm14 = vcmp.eq.f32.partialorder %v1992_v52, 8.507059e+37  ;;  %v5999_v17 = vld [vmem:[#allocation40_spill] sm:$0xff]  ;;  %v6000_v52 = vld [vmem:[#allocation41_spill] sm:$0xff] }
 0x42d   : > { %v3847_v3 = vpop.eup %3846  ;;  %v2021_v60 = vsel %vm2020_vm12, %v3839_v34, %v2017_v0  ;;  %v2048_v28 = vmul.f32 %v3845_v43, %v2011_v24 }
 0x42e   : > { %v3849_v27 = vpop.eup %3848  ;;  %v1952_v4 = vadd.f32 1.0, %v3847_v3  ;;  %v2026_v9 = vsel %vm2023_vm11, %v2025_v40, %v2021_v60 }
 0x42f   : > { %v1984_v1 = vmul.f32 %v3849_v27, %v1949_v26  ;;  %v2046_v18 = vmul.f32 %v2026_v9, %v5231_v10  ;;  %vm1989_vm15 = vweird.f32 %v3849_v27 }
 0x430   : > { %3850 = vrcp.f32 %v1952_v4  ;;  %vm1990_vm1 = vmor %vm1988_vm0, %vm1989_vm15  ;;  %v2039_v44 = vand.u32 2147483648, %v1952_v4  ;;  %v2037_v0 = vand.u32 2147483647, %v1952_v4  ;;  %vm2033_vm4 = vweird.f32 %v1952_v4 }
 0x431   : > { %v1985_v41 = vsub.f32 1.0, %v1984_v1  ;;  %v2050_v19 = vadd.f32 %v2048_v28, %v2046_v18  ;;  %3852 = vtanh.f32 %v2049_v33  ;;  %v5992_v18 = vld [vmem:[#allocation33_spill] sm:$0xff] }
 0x432   : > { %v2040_v24 = vor.u32 1.1754944e-38, %v2039_v44  ;;  %vm2038_vm6 = vcmp.eq.f32.partialorder %v2037_v0, 8.507059e+37  ;;  %v6005_v44 = vld [vmem:[#allocation46_spill] sm:$0xff] }
 0x433   : > { %v1986_v23 = vmul.f32 %v3849_v27, %v1985_v41  ;;  %v5342_v22 = vsel %vm2068_vm13, %v2050_v19, %v5231_v10  ;;  %3854 = vtanh.f32 %v2050_v19  ;;  %v5994_v41 = vld [vmem:[#allocation35_spill] sm:$0xff]  ;;  %v5995_v19 = vld [vmem:[#allocation36_spill] sm:$0xff] }
 0x435   : > { %v1987_v53 = vadd.f32 %v3849_v27, %v1986_v23  ;;  %v5996_v23 = vld [vmem:[#allocation37_spill] sm:$0xff] }
 0x436   : > { %v3851_v34 = vpop.eup %3850 }
 0x437   : > { %v2029_v31 = vmul.f32 %v3851_v34, %v1952_v4  ;;  %v1991_v54 = vsel %vm1990_vm1, %v3849_v27, %v1987_v53  ;;  %vm2034_vm2 = vweird.f32 %v3851_v34  ;;  %v3853_v40 = vpop.eup %3852  ;;  %v5997_v53 = vld [vmem:[#allocation38_spill] sm:$0xff] }
 0x438   : > { %v1996_v10 = vsel %vm1993_vm14, %v1995_v8, %v1991_v54  ;;  %vm2035_vm5 = vmor %vm2033_vm4, %vm2034_vm2  ;;  %v6003_v54 = vld [vmem:[#allocation44_spill] sm:$0xff]  ;;  %v6004_v8 = vld [vmem:[#allocation45_spill] sm:$0xff] }
 0x439   : > { %v2030_v15 = vsub.f32 1.0, %v2029_v31  ;;  %v2053_v3 = vmul.f32 %v3853_v40, %v1996_v10  ;;  %v3855_v60 = vpop.eup %3854  ;;  %v6001_v31 = vld [vmem:[#allocation42_spill] sm:$0xff] }
 0x43b   : > { %v2031_v2 = vmul.f32 %v3851_v34, %v2030_v15  ;;  %v5347_v9 = vsel %vm2067_vm7, %v2053_v3, %v5239_v42  ;;  %v5989_v42 = vld [vmem:[#allocation30_spill] sm:$0xff]  ;;  %v6002_v15 = vld [vmem:[#allocation43_spill] sm:$0xff] }
 0x43d   : > { %v2032_v43 = vadd.f32 %v3851_v34, %v2031_v2  ;;  %v6006_v2 = vld [vmem:[#allocation47_spill] sm:$0xff] }
 0x43f   : > { %v2036_v26 = vsel %vm2035_vm5, %v3851_v34, %v2032_v43  ;;  %v5998_v34 = vld [vmem:[#allocation39_spill] sm:$0xff]  ;;  %v6007_v43 = vld [vmem:[#allocation48_spill] sm:$0xff] }
 0x440   : > { %v2041_v33 = vsel %vm2038_vm6, %v2040_v24, %v2036_v26  ;;  %v6008_v24 = vld [vmem:[#allocation49_spill] sm:$0xff] }
 0x441   : > { %v2054_v28 = vmul.f32 %v3855_v60, %v2041_v33 }
 0x443   : > { %v3437_v27 = vpack.c.bf16 %v2054_v28, %v2053_v3  ;;  %v5351_v1 = vsel %vm2068_vm13, %v2054_v28, %v5243_v59  ;;  %v5990_v59 = vld [vmem:[#allocation31_spill] sm:$0xff]  ;;  %v2108_v3 = vld [vmem:[%s4509_s28 + $0x50] sm:$0xff] }
 0x444   : > { %v2112_v4 = vpack.c.bf16 %v5351_v1, %v5347_v9  ;;  %v2169_v60 = vunpack.c.l.bf16 %v2108_v3  ;;  %v2170_v33 = vunpack.c.h.bf16 %v2108_v3 }
 0x445   : > { %3438 = vmatmul.msk.bf16.vlgmr.msrb.gmra.mxu0 %vm3436_vm3, %v3437_v27  ;;  %3441 = vmatmul.msk.bf16.vlgmr.msrb.gmra.mxu1 %vm3436_vm3, %v3437_v27 }
 0x446   : > { %2121 = vmatmul.bf16.vlgmr.msrb.gmra.mxu2 %v2112_v4  ;;  %2135 = vmatmul.bf16.vlgmr.msrb.gmra.mxu3 %v2112_v4 }
 0x447   : > { %2369 = vmatpush.bf16.msrb.mxu0 %v4551_v7  ;;  %2383 = vmatpush.bf16.msrb.mxu1 %v4553_v11 }
 0x448   : > { %2397 = vmatpush.bf16.msrb.mxu2 %v4555_v12  ;;  %2411 = vmatpush.bf16.msrb.mxu3 %v4566_v25 }
 0x44b   : > { %2370 = vmatpush.bf16.msrb.mxu0 %v4558_v16  ;;  %2384 = vmatpush.bf16.msrb.mxu1 %v4562_v20 }
 0x44c   : > { %2398 = vmatpush.bf16.msrb.mxu2 %v4564_v21  ;;  %2412 = vmatpush.bf16.msrb.mxu3 %v4578_v38 }
 0x44f   : > { %2371 = vmatpush.bf16.msrb.mxu0 %v4570_v32  ;;  %2385 = vmatpush.bf16.msrb.mxu1 %v4574_v36 }
 0x450   : > { %2399 = vmatpush.bf16.msrb.mxu2 %v4576_v37  ;;  %2413 = vmatpush.bf16.msrb.mxu3 %v4584_v46 }
 0x453   : > { %2372 = vmatpush.bf16.msrb.mxu0 %v4582_v45  ;;  %2386 = vmatpush.bf16.msrb.mxu1 %v4588_v49 }
 0x454   : > { %2400 = vmatpush.bf16.msrb.mxu2 %v4590_v50  ;;  %2414 = vmatpush.bf16.msrb.mxu3 %v4596_v58 }
 0x455   : > { %2149 = vmatmul.bf16.vlgmr.msra.gmra.mxu0 %v2112_v4  ;;  %2163 = vmatmul.bf16.vlgmr.msra.gmra.mxu1 %v2112_v4 }
 0x457   : > { %2373 = vmatpush.bf16.msrb.mxu0 %v4594_v57  ;;  %2387 = vmatpush.bf16.msrb.mxu1 %v4600_v61 }
 0x458   : > { %2401 = vmatpush.bf16.msrb.mxu2 %v4602_v62  ;;  %2415 = vmatpush.bf16.msrb.mxu3 %v4608_v6 }
 0x45b   : > { %2374 = vmatpush.bf16.msrb.mxu0 %v4606_v5  ;;  %2388 = vmatpush.bf16.msrb.mxu1 %v4612_v13 }
 0x45c   : > { %2402 = vmatpush.bf16.msrb.mxu2 %v4614_v14  ;;  %2416 = vmatpush.bf16.msrb.mxu3 %v4631_v30 }
 0x45f   : > { %2375 = vmatpush.bf16.msrb.mxu0 %v4629_v29  ;;  %2389 = vmatpush.bf16.msrb.mxu1 %v4637_v35 }
 0x460   : > { %2403 = vmatpush.bf16.msrb.mxu2 %v4639_v39  ;;  %2417 = vmatpush.bf16.msrb.mxu3 %v4657_v55 }
 0x463   : > { %2376 = vmatpush.bf16.msrb.mxu0 %v4647_v51  ;;  %2390 = vmatpush.bf16.msrb.mxu1 %v4663_v56 }
 0x464   : > { %2404 = vmatpush.bf16.msrb.mxu2 %v5989_v42  ;;  %2418 = vmatpush.bf16.msrb.mxu3 %v5990_v59 }
 0x467   : > { %2588 = vmatpush.bf16.msra.mxu0 %v5991_v47  ;;  %2602 = vmatpush.bf16.msra.mxu1 %v5992_v18 }
 0x46b   : > { %2589 = vmatpush.bf16.msra.mxu0 %v5993_v48  ;;  %2603 = vmatpush.bf16.msra.mxu1 %v5994_v41 }
 0x46f   : > { %2590 = vmatpush.bf16.msra.mxu0 %v5995_v19  ;;  %2604 = vmatpush.bf16.msra.mxu1 %v5996_v23 }
 0x473   : > { %2591 = vmatpush.bf16.msra.mxu0 %v5997_v53  ;;  %2605 = vmatpush.bf16.msra.mxu1 %v5998_v34 }
 0x477   : > { %2592 = vmatpush.bf16.msra.mxu0 %v5999_v17  ;;  %2606 = vmatpush.bf16.msra.mxu1 %v6000_v52  ;;  %v2109_v52 = vld [vmem:[%s4509_s28 + $0x58] sm:$0xff] }
 0x478   : > { %v2171_v3 = vunpack.c.l.bf16 %v2109_v52 }
 0x47b   : > { %2593 = vmatpush.bf16.msra.mxu0 %v6001_v31  ;;  %2607 = vmatpush.bf16.msra.mxu1 %v6002_v15  ;;  %v2110_v15 = vld [vmem:[%s4509_s28 + $0xd0] sm:$0xff] }
 0x47f   : > { %2594 = vmatpush.bf16.msra.mxu0 %v6003_v54  ;;  %2608 = vmatpush.bf16.msra.mxu1 %v6004_v8 }
 0x483   : > { %2595 = vmatpush.bf16.msra.mxu0 %v6005_v44  ;;  %2609 = vmatpush.bf16.msra.mxu1 %v6006_v2 }
 0x4c2   : > { %v2085_v0 = vpop.f32.mrf.mxu0  ;;  %v2099_v10 = vpop.f32.mrf.mxu1 }
 0x4c3   : > { %v2086_v40 = vadd.f32 %v2085_v0, %v6007_v43  ;;  %v2100_v26 = vadd.f32 %v2099_v10, %v6008_v24 }
 0x4c5   : > { %2104 = vst [vmem:[%s4540_s4 + $0x40] sm:$0xff] %v2086_v40  ;;  %v2173_v40 = vunpack.c.l.bf16 %v2110_v15 }
 0x4c6   : > { %2105 = vst [vmem:[%s4540_s4 + $0x48] sm:$0xff] %v2100_v26  ;;  %v2174_v26 = vunpack.c.h.bf16 %v2110_v15 }
 0x4c9   : > { %v2122_v28 = vpop.f32.mrf.mxu2  ;;  %v2136_v27 = vpop.f32.mrf.mxu3 }
 0x4ca   : > { %v2177_v4 = vadd.f32 %v2169_v60, %v2122_v28  ;;  %v2178_v44 = vadd.f32 %v2170_v33, %v2136_v27  ;;  %v2087_v2 = vpop.f32.mrf.mxu0  ;;  %v2101_v8 = vpop.f32.mrf.mxu1 }
 0x4cb   : > { %v2088_v54 = vadd.f32 %v2087_v2, %v6007_v43  ;;  %v2102_v0 = vadd.f32 %v2101_v8, %v6008_v24  ;;  %v2111_v24 = vld [vmem:[%s4509_s28 + $0xd8] sm:$0xff] }
 0x4cc   : > { %v3442_v10 = vmul.f32 -1.442695, %v2177_v4  ;;  %v3443_v31 = vmul.f32 -1.442695, %v2178_v44 }
 0x4cd   : > { %2106 = vst [vmem:[%s4540_s4 + $0xc0] sm:$0xff] %v2088_v54 }
 0x4ce   : > { %3856 = vpow2.f32 %v3442_v10  ;;  %2107 = vst [vmem:[%s4540_s4 + $0xc8] sm:$0xff] %v2102_v0  ;;  %v2172_v0 = vunpack.c.h.bf16 %v2109_v52 }
 0x4cf   : > { %3858 = vpow2.f32 %v3443_v31  ;;  %v2175_v31 = vunpack.c.l.bf16 %v2111_v24 }
 0x4d1   : > { %v2124_v60 = vpop.f32.mrf.mxu2  ;;  %v2138_v33 = vpop.f32.mrf.mxu3 }
 0x4d2   : > { %v2181_v28 = vadd.f32 %v2173_v40, %v2124_v60  ;;  %v2182_v27 = vadd.f32 %v2174_v26, %v2138_v33  ;;  %v2150_v17 = vpop.f32.mrf.mxu0  ;;  %v2164_v15 = vpop.f32.mrf.mxu1 }
 0x4d3   : > { %v2179_v2 = vadd.f32 %v2171_v3, %v2150_v17  ;;  %v2180_v10 = vadd.f32 %v2172_v0, %v2164_v15 }
 0x4d4   : > { %v3857_v43 = vpop.eup %3856  ;;  %v3445_v8 = vmul.f32 -1.442695, %v2181_v28  ;;  %v3446_v34 = vmul.f32 -1.442695, %v2182_v27 }
 0x4d5   : > { %v3859_v4 = vpop.eup %3858  ;;  %v2203_v44 = vadd.f32 1.0, %v3857_v43  ;;  %v3444_v54 = vmul.f32 -1.442695, %v2179_v2 }
 0x4d6   : > { %v2204_v53 = vadd.f32 1.0, %v3859_v4  ;;  %3860 = vpow2.f32 %v3445_v8 }
 0x4d7   : > { %3862 = vrcp.f32 %v2203_v44  ;;  %v2218_v15 = vand.u32 2147483647, %v2203_v44  ;;  %vm2214_vm10 = vweird.f32 %v2203_v44 }
 0x4d8   : > { %3864 = vrcp.f32 %v2204_v53  ;;  %vm2229_vm9 = vweird.f32 %v2204_v53 }
 0x4d9   : > { %3866 = vpow2.f32 %v3446_v34  ;;  %v2176_v34 = vunpack.c.h.bf16 %v2111_v24  ;;  %vm2219_vm11 = vcmp.eq.f32.partialorder %v2218_v15, 8.507059e+37 }
 0x4da   : > { %3868 = vpow2.f32 %v3444_v54  ;;  %v2152_v40 = vpop.f32.mrf.mxu0 }
 0x4db   : > { %v2183_v26 = vadd.f32 %v2175_v31, %v2152_v40  ;;  %3870 = vtanh.f32 %v2180_v10  ;;  %v2220_v31 = vand.u32 2147483648, %v2203_v44  ;;  %v2235_v40 = vand.u32 2147483648, %v2204_v53 }
 0x4dc   : > { %v3861_v17 = vpop.eup %3860 }
 0x4dd   : > { %v3863_v3 = vpop.eup %3862  ;;  %v5418_v60 = vadd.f32 1.0, %v3861_v17  ;;  %v3447_v33 = vmul.f32 -1.442695, %v2183_v26  ;;  %v2233_v17 = vand.u32 2147483647, %v2204_v53  ;;  %v2236_v19 = vor.u32 1.1754944e-38, %v2235_v40 }
 0x4de   : > { %v3865_v43 = vpop.eup %3864  ;;  %v2210_v28 = vmul.f32 %v3863_v3, %v2203_v44  ;;  %vm2215_vm7 = vweird.f32 %v3863_v3 }
 0x4df   : > { %v3867_v27 = vpop.eup %3866  ;;  %v2225_v2 = vmul.f32 %v3865_v43, %v2204_v53  ;;  %3872 = vrcp.f32 %v5418_v60  ;;  %vm2230_vm8 = vweird.f32 %v3865_v43  ;;  %vm2216_vm12 = vmor %vm2214_vm10, %vm2215_vm7  ;;  %vm2234_vm15 = vcmp.eq.f32.partialorder %v2233_v17, 8.507059e+37 }
 0x4e0   : > { %v3869_v52 = vpop.eup %3868  ;;  %v2211_v8 = vsub.f32 1.0, %v2210_v28  ;;  %v5421_v4 = vadd.f32 1.0, %v3867_v27  ;;  %3874 = vpow2.f32 %v3447_v33  ;;  %v2166_v28 = vpop.f32.mrf.mxu1  ;;  %v2221_v33 = vor.u32 1.1754944e-38, %v2220_v31  ;;  %vm2231_vm13 = vmor %vm2229_vm9, %vm2230_vm8 }
 0x4e1   : > { %v2226_v54 = vsub.f32 1.0, %v2225_v2  ;;  %v5423_v0 = vadd.f32 1.0, %v3869_v52  ;;  %v3871_v27 = vpop.eup %3870  ;;  %v2184_v41 = vadd.f32 %v2176_v34, %v2166_v28  ;;  %v5439_v34 = vpop.permute.xlu1 %2318  ;;  %vm2259_vm14 = vweird.f32 %v5418_v60 }
 0x4e2   : > { %3876 = vrcp.f32 %v5421_v4  ;;  %v2212_v26 = vmul.f32 %v3863_v3, %v2211_v8  ;;  %vm2323_vm1 = vcmp.eq.s32.totalorder %v5439_v34, 1  ;;  %v2278_v28 = vand.u32 2147483647, %v5421_v4  ;;  %v6027_v34 = vld [vmem:[#allocation48_spill] sm:$0xff] }
 0x4e3   : > { %v2227_v10 = vmul.f32 %v3865_v43, %v2226_v54  ;;  %3878 = vrcp.f32 %v5423_v0  ;;  %vm2274_vm5 = vweird.f32 %v5421_v4  ;;  %vm2244_vm9 = vweird.f32 %v5423_v0 }
 0x4e4   : > { %v2213_v23 = vadd.f32 %v3863_v3, %v2212_v26  ;;  %vm2279_vm7 = vcmp.eq.f32.partialorder %v2278_v28, 8.507059e+37 }
 0x4e5   : > { %v3873_v24 = vpop.eup %3872  ;;  %v2228_v2 = vadd.f32 %v3865_v43, %v2227_v10 }
 0x4e6   : > { %v3875_v52 = vpop.eup %3874  ;;  %v2255_v8 = vmul.f32 %v3873_v24, %v5418_v60  ;;  %v2217_v54 = vsel %vm2216_vm12, %v3863_v3, %v2213_v23  ;;  %v2263_v3 = vand.u32 2147483647, %v5418_v60  ;;  %vm2260_vm0 = vweird.f32 %v3873_v24 }
 0x4e7   : > { %v2222_v48 = vsel %vm2219_vm11, %v2221_v33, %v2217_v54  ;;  %v2232_v18 = vsel %vm2231_vm13, %v3865_v43, %v2228_v2  ;;  %v5428_v47 = vadd.f32 1.0, %v3875_v52  ;;  %v2265_v43 = vand.u32 2147483648, %v5418_v60  ;;  %vm2261_vm4 = vmor %vm2259_vm14, %vm2260_vm0 }
 0x4e8   : > { %v3877_v26 = vpop.eup %3876  ;;  %v2256_v44 = vsub.f32 1.0, %v2255_v8  ;;  %v2237_v59 = vsel %vm2234_vm15, %v2236_v19, %v2232_v18  ;;  %v2303_v53 = vmul.f32 %v3871_v27, %v2222_v48  ;;  %vm2264_vm6 = vcmp.eq.f32.partialorder %v2263_v3, 8.507059e+37 }
 0x4e9   : > { %v5430_v42 = vpop.eup %3878  ;;  %v2270_v15 = vmul.f32 %v3877_v26, %v5421_v4  ;;  %v2301_v31 = vmul.f32 %v2237_v59, %v5337_v63  ;;  %3880 = vrcp.f32 %v5428_v47  ;;  %v2280_v59 = vand.u32 2147483648, %v5421_v4  ;;  %v2322_v4 = vpop.permute.xlu2 %2321 }
 0x4ea   : > { %v2240_v23 = vmul.f32 %v5430_v42, %v5423_v0  ;;  %3882 = vtanh.f32 %v2184_v41  ;;  %v2257_v19 = vmul.f32 %v3873_v24, %v2256_v44  ;;  %vm2275_vm2 = vweird.f32 %v3877_v26 }
 0x4eb   : > { %v2271_v18 = vsub.f32 1.0, %v2270_v15  ;;  %v2305_v48 = vadd.f32 %v2303_v53, %v2301_v31  ;;  %v2266_v41 = vor.u32 1.1754944e-38, %v2265_v43  ;;  %vm2276_vm3 = vmor %vm2274_vm5, %vm2275_vm2  ;;  %v2281_v60 = vor.u32 1.1754944e-38, %v2280_v59 }
 0x4ec   : > { %v2241_v40 = vsub.f32 1.0, %v2240_v23  ;;  %v2258_v17 = vadd.f32 %v3873_v24, %v2257_v19  ;;  %vm2245_vm8 = vweird.f32 %v5430_v42  ;;  %vm2324_vm10 = vcmp.eq.s32.totalorder %v2322_v4, 1 }
 0x4ed   : > { %v2272_v10 = vmul.f32 %v3877_v26, %v2271_v18  ;;  %v5448_v27 = vsel %vm2323_vm1, %v2305_v48, %v5337_v63  ;;  %3884 = vtanh.f32 %v2305_v48  ;;  %v2250_v18 = vand.u32 2147483648, %v5423_v0  ;;  %vm2246_vm11 = vmor %vm2244_vm9, %vm2245_vm8 }
 0x4ee   : > { %v2262_v2 = vsel %vm2261_vm4, %v3873_v24, %v2258_v17  ;;  %v2242_v54 = vmul.f32 %v5430_v42, %v2241_v40  ;;  %v2295_v48 = vand.u32 2147483648, %v5428_v47  ;;  %vm2289_vm13 = vweird.f32 %v5428_v47  ;;  %vm3448_vm2 = vmpackc.low %vm2324_vm10, %vm2323_vm1 }
 0x4ef   : > { %v3881_v33 = vpop.eup %3880  ;;  %v2273_v52 = vadd.f32 %v3877_v26, %v2272_v10  ;;  %v2267_v53 = vsel %vm2264_vm6, %v2266_v41, %v2262_v2  ;;  %v2293_v10 = vand.u32 2147483647, %v5428_v47  ;;  %v2251_v41 = vor.u32 1.1754944e-38, %v2250_v18 }
 0x4f0   : > { %v3883_v8 = vpop.eup %3882  ;;  %v2285_v44 = vmul.f32 %v3881_v33, %v5428_v47  ;;  %v2243_v24 = vadd.f32 %v5430_v42, %v2242_v54  ;;  %vm2290_vm12 = vweird.f32 %v3881_v33  ;;  %v2296_v2 = vor.u32 1.1754944e-38, %v2295_v48 }
 0x4f1   : > { %v2277_v15 = vsel %vm2276_vm3, %v3877_v26, %v2273_v52  ;;  %v2304_v31 = vmul.f32 %v3883_v8, %v2267_v53  ;;  %v2248_v26 = vand.u32 2147483647, %v5423_v0  ;;  %vm2291_vm15 = vmor %vm2289_vm13, %vm2290_vm12  ;;  %vm2294_vm14 = vcmp.eq.f32.partialorder %v2293_v10, 8.507059e+37 }
 0x4f2   : > { %v2286_v23 = vsub.f32 1.0, %v2285_v44  ;;  %v2282_v63 = vsel %vm2279_vm7, %v2281_v60, %v2277_v15  ;;  %v2247_v17 = vsel %vm2246_vm11, %v5430_v42, %v2243_v24  ;;  %v6028_v15 = vld [vmem:[#allocation49_spill] sm:$0xff] }
 0x4f3   : > { %v2302_v43 = vmul.f32 %v2282_v63, %v5342_v22  ;;  %v3885_v28 = vpop.eup %3884  ;;  %vm2249_vm0 = vcmp.eq.f32.partialorder %v2248_v26, 8.507059e+37 }
 0x4f4   : > { %v2287_v3 = vmul.f32 %v3881_v33, %v2286_v23  ;;  %v2252_v52 = vsel %vm2249_vm0, %v2251_v41, %v2247_v17  ;;  %v2365_v41 = vld [vmem:[%s4509_s28 + $0x68] sm:$0xff] }
 0x4f5   : > { %v2306_v19 = vadd.f32 %v2304_v31, %v2302_v43  ;;  %v2309_v8 = vmul.f32 %v3885_v28, %v2252_v52  ;;  %v2428_v52 = vunpack.c.h.bf16 %v2365_v41 }
 0x4f6   : > { %v2288_v59 = vadd.f32 %v3881_v33, %v2287_v3 }
 0x4f7   : > { %3886 = vtanh.f32 %v2306_v19  ;;  %v5462_v40 = vsel %vm2324_vm10, %v2306_v19, %v5342_v22  ;;  %v5470_v53 = vsel %vm2323_vm1, %v2309_v8, %v5347_v9 }
 0x4f8   : > { %v2292_v0 = vsel %vm2291_vm15, %v3881_v33, %v2288_v59 }
 0x4f9   : > { %v2297_v54 = vsel %vm2294_vm14, %v2296_v2, %v2292_v0  ;;  %v2427_v0 = vunpack.c.l.bf16 %v2365_v41 }
 0x4fd   : > { %v3887_v60 = vpop.eup %3886 }
 0x4fe   : > { %v2310_v44 = vmul.f32 %v3887_v60, %v2297_v54 }
 0x500   : > { %v3449_v22 = vpack.c.bf16 %v2310_v44, %v2309_v8  ;;  %v5474_v42 = vsel %vm2324_vm10, %v2310_v44, %v5351_v1  ;;  %v2367_v8 = vld [vmem:[%s4509_s28 + $0xe8] sm:$0xff] }
 0x501   : > { %v2368_v47 = vpack.c.bf16 %v5474_v42, %v5470_v53 }
 0x502   : > { %3450 = vmatmul.msk.bf16.vlgmr.msra.gmra.mxu2 %vm3448_vm2, %v3449_v22  ;;  %3453 = vmatmul.msk.bf16.vlgmr.msra.gmra.mxu3 %vm3448_vm2, %v3449_v22 }
 0x503   : > { %2377 = vmatmul.bf16.vlgmr.msrb.gmra.mxu0 %v2368_v47  ;;  %2391 = vmatmul.bf16.vlgmr.msrb.gmra.mxu1 %v2368_v47 }
 0x504   : > { %2625 = vmatpush.bf16.msra.mxu2 %v4551_v7  ;;  %2639 = vmatpush.bf16.msra.mxu3 %v4553_v11  ;;  %v6009_v7 = vld [vmem:[#allocation30_spill] sm:$0xff]  ;;  %v6010_v11 = vld [vmem:[#allocation31_spill] sm:$0xff] }
 0x505   : > { %2653 = vmatpush.bf16.msrb.mxu0 %v4555_v12  ;;  %2667 = vmatpush.bf16.msrb.mxu1 %v4566_v25  ;;  %v6011_v12 = vld [vmem:[#allocation32_spill] sm:$0xff] }
 0x506   : > { %v6015_v25 = vld [vmem:[#allocation36_spill] sm:$0xff] }
 0x508   : > { %2626 = vmatpush.bf16.msra.mxu2 %v4558_v16  ;;  %2640 = vmatpush.bf16.msra.mxu3 %v4562_v20  ;;  %v6012_v16 = vld [vmem:[#allocation33_spill] sm:$0xff]  ;;  %v6013_v20 = vld [vmem:[#allocation34_spill] sm:$0xff] }
 0x509   : > { %2654 = vmatpush.bf16.msrb.mxu0 %v4564_v21  ;;  %2668 = vmatpush.bf16.msrb.mxu1 %v4578_v38  ;;  %v6014_v21 = vld [vmem:[#allocation35_spill] sm:$0xff]  ;;  %v6019_v38 = vld [vmem:[#allocation40_spill] sm:$0xff] }
 0x50c   : > { %2627 = vmatpush.bf16.msra.mxu2 %v4570_v32  ;;  %2641 = vmatpush.bf16.msra.mxu3 %v4574_v36  ;;  %v6016_v32 = vld [vmem:[#allocation37_spill] sm:$0xff]  ;;  %v6017_v36 = vld [vmem:[#allocation38_spill] sm:$0xff] }
 0x50d   : > { %2655 = vmatpush.bf16.msrb.mxu0 %v4576_v37  ;;  %2669 = vmatpush.bf16.msrb.mxu1 %v4584_v46  ;;  %v6018_v37 = vld [vmem:[#allocation39_spill] sm:$0xff]  ;;  %v6021_v46 = vld [vmem:[#allocation42_spill] sm:$0xff] }
 0x510   : > { %2628 = vmatpush.bf16.msra.mxu2 %v4582_v45  ;;  %2642 = vmatpush.bf16.msra.mxu3 %v4588_v49  ;;  %v6020_v45 = vld [vmem:[#allocation41_spill] sm:$0xff]  ;;  %v6022_v49 = vld [vmem:[#allocation43_spill] sm:$0xff] }
 0x511   : > { %2656 = vmatpush.bf16.msrb.mxu0 %v4590_v50  ;;  %2670 = vmatpush.bf16.msrb.mxu1 %v4596_v58  ;;  %v6023_v50 = vld [vmem:[#allocation44_spill] sm:$0xff]  ;;  %v6025_v58 = vld [vmem:[#allocation46_spill] sm:$0xff] }
 0x512   : > { %2405 = vmatmul.bf16.vlgmr.msrb.gmra.mxu2 %v2368_v47  ;;  %2419 = vmatmul.bf16.vlgmr.msrb.gmra.mxu3 %v2368_v47 }
 0x514   : > { %2629 = vmatpush.bf16.msra.mxu2 %v4594_v57  ;;  %2643 = vmatpush.bf16.msra.mxu3 %v4600_v61  ;;  %v6024_v57 = vld [vmem:[#allocation45_spill] sm:$0xff]  ;;  %v6026_v61 = vld [vmem:[#allocation47_spill] sm:$0xff] }
 0x515   : > { %2657 = vmatpush.bf16.msrb.mxu0 %v4602_v62  ;;  %2671 = vmatpush.bf16.msrb.mxu1 %v4608_v6  ;;  %v2364_v62 = vld [vmem:[%s4509_s28 + $0x60] sm:$0xff] }
 0x516   : > { %v2426_v6 = vunpack.c.h.bf16 %v2364_v62 }
 0x518   : > { %2630 = vmatpush.bf16.msra.mxu2 %v4606_v5  ;;  %2644 = vmatpush.bf16.msra.mxu3 %v4612_v13  ;;  %v2425_v5 = vunpack.c.l.bf16 %v2364_v62 }
 0x519   : > { %2658 = vmatpush.bf16.msrb.mxu0 %v4614_v14  ;;  %2672 = vmatpush.bf16.msrb.mxu1 %v4631_v30 }
 0x51c   : > { %2631 = vmatpush.bf16.msra.mxu2 %v4629_v29  ;;  %2645 = vmatpush.bf16.msra.mxu3 %v4637_v35  ;;  %v2366_v35 = vld [vmem:[%s4509_s28 + $0xe0] sm:$0xff] }
 0x51d   : > { %2659 = vmatpush.bf16.msrb.mxu0 %v4639_v39  ;;  %2673 = vmatpush.bf16.msrb.mxu1 %v4657_v55  ;;  %v2429_v9 = vunpack.c.l.bf16 %v2366_v35  ;;  %v2430_v1 = vunpack.c.h.bf16 %v2366_v35 }
 0x520   : > { %2632 = vmatpush.bf16.msra.mxu2 %v4647_v51  ;;  %2646 = vmatpush.bf16.msra.mxu3 %v4663_v56 }
 0x521   : > { %2660 = vmatpush.bf16.msrb.mxu0 %v6009_v7  ;;  %2674 = vmatpush.bf16.msrb.mxu1 %v6010_v11 }
 0x524   : > { %2844 = vmatpush.bf16.msrb.mxu2 %v6011_v12  ;;  %2858 = vmatpush.bf16.msrb.mxu3 %v6012_v16 }
 0x528   : > { %2845 = vmatpush.bf16.msrb.mxu2 %v6013_v20  ;;  %2859 = vmatpush.bf16.msrb.mxu3 %v6014_v21  ;;  %v2431_v20 = vunpack.c.l.bf16 %v2367_v8 }
 0x52c   : > { %2846 = vmatpush.bf16.msrb.mxu2 %v6015_v25  ;;  %2860 = vmatpush.bf16.msrb.mxu3 %v6016_v32 }
 0x530   : > { %2847 = vmatpush.bf16.msrb.mxu2 %v6017_v36  ;;  %2861 = vmatpush.bf16.msrb.mxu3 %v6018_v37  ;;  %v2432_v36 = vunpack.c.h.bf16 %v2367_v8 }
 0x534   : > { %2848 = vmatpush.bf16.msrb.mxu2 %v6019_v38  ;;  %2862 = vmatpush.bf16.msrb.mxu3 %v6020_v45 }
 0x538   : > { %2849 = vmatpush.bf16.msrb.mxu2 %v6021_v46  ;;  %2863 = vmatpush.bf16.msrb.mxu3 %v6022_v49 }
 0x53c   : > { %2850 = vmatpush.bf16.msrb.mxu2 %v6023_v50  ;;  %2864 = vmatpush.bf16.msrb.mxu3 %v6024_v57 }
 0x540   : > { %2851 = vmatpush.bf16.msrb.mxu2 %v6025_v58  ;;  %2865 = vmatpush.bf16.msrb.mxu3 %v6026_v61 }
 0x580   : > { %v2378_v13 = vpop.f32.mrf.mxu0  ;;  %v2392_v14 = vpop.f32.mrf.mxu1 }
 0x581   : > { %v2433_v29 = vadd.f32 %v2425_v5, %v2378_v13  ;;  %v2434_v30 = vadd.f32 %v2426_v6, %v2392_v14 }
 0x583   : > { %v3454_v39 = vmul.f32 -1.442695, %v2433_v29  ;;  %v3455_v51 = vmul.f32 -1.442695, %v2434_v30 }
 0x585   : > { %3888 = vpow2.f32 %v3454_v39  ;;  %v2341_v55 = vpop.f32.mrf.mxu2  ;;  %v2355_v56 = vpop.f32.mrf.mxu3 }
 0x586   : > { %3890 = vpow2.f32 %v3455_v51  ;;  %v2342_v33 = vadd.f32 %v2341_v55, %v6027_v34  ;;  %v2356_v31 = vadd.f32 %v2355_v56, %v6028_v15 }
 0x588   : > { %2360 = vst [vmem:[%s4540_s4 + $0x50] sm:$0xff] %v2342_v33  ;;  %v2380_v23 = vpop.f32.mrf.mxu0  ;;  %v2394_v63 = vpop.f32.mrf.mxu1 }
 0x589   : > { %2361 = vst [vmem:[%s4540_s4 + $0x58] sm:$0xff] %v2356_v31  ;;  %v2437_v43 = vadd.f32 %v2429_v9, %v2380_v23  ;;  %v2438_v4 = vadd.f32 %v2430_v1, %v2394_v63 }
 0x58b   : > { %v3889_v24 = vpop.eup %3888  ;;  %v3457_v3 = vmul.f32 -1.442695, %v2437_v43  ;;  %v3458_v26 = vmul.f32 -1.442695, %v2438_v4 }
 0x58c   : > { %v3891_v18 = vpop.eup %3890  ;;  %v2459_v19 = vadd.f32 1.0, %v3889_v24 }
 0x58d   : > { %v2460_v59 = vadd.f32 1.0, %v3891_v18  ;;  %3892 = vpow2.f32 %v3457_v3  ;;  %v2343_v48 = vpop.f32.mrf.mxu2  ;;  %v2357_v10 = vpop.f32.mrf.mxu3 }
 0x58e   : > { %3894 = vrcp.f32 %v2459_v19  ;;  %v2344_v17 = vadd.f32 %v2343_v48, %v6027_v34  ;;  %v2358_v28 = vadd.f32 %v2357_v10, %v6028_v15  ;;  %v2474_v46 = vand.u32 2147483647, %v2459_v19 }
 0x58f   : > { %3896 = vrcp.f32 %v2460_v59  ;;  %v2491_v38 = vand.u32 2147483648, %v2460_v59  ;;  %v2476_v50 = vand.u32 2147483648, %v2459_v19  ;;  %v2489_v58 = vand.u32 2147483647, %v2460_v59 }
 0x590   : > { %3898 = vpow2.f32 %v3458_v26  ;;  %2362 = vst [vmem:[%s4540_s4 + $0xd0] sm:$0xff] %v2344_v17  ;;  %vm2470_vm5 = vweird.f32 %v2459_v19  ;;  %vm2485_vm6 = vweird.f32 %v2460_v59  ;;  %vm2475_vm8 = vcmp.eq.f32.partialorder %v2474_v46, 8.507059e+37 }
 0x591   : > { %2363 = vst [vmem:[%s4540_s4 + $0xd8] sm:$0xff] %v2358_v28  ;;  %v2492_v5 = vor.u32 1.1754944e-38, %v2491_v38  ;;  %v2477_v30 = vor.u32 1.1754944e-38, %v2476_v50  ;;  %vm2490_vm10 = vcmp.eq.f32.partialorder %v2489_v58, 8.507059e+37  ;;  %v5561_v28 = vpop.permute.xlu0 %2574 }
 0x592   : > { %vm2579_vm13 = vcmp.eq.s32.totalorder %v5561_v28, 1 }
 0x593   : > { %v3893_v2 = vpop.eup %3892 }
 0x594   : > { %v3895_v60 = vpop.eup %3894  ;;  %v5541_v54 = vadd.f32 1.0, %v3893_v2 }
 0x595   : > { %v3897_v44 = vpop.eup %3896  ;;  %v2466_v22 = vmul.f32 %v3895_v60, %v2459_v19  ;;  %v2406_v47 = vpop.f32.mrf.mxu2  ;;  %vm2471_vm1 = vweird.f32 %v3895_v60 }
 0x596   : > { %v2420_v7 = vpop.f32.mrf.mxu3  ;;  %v3899_v11 = vpop.eup %3898  ;;  %v2481_v12 = vmul.f32 %v3897_v44, %v2460_v59  ;;  %3900 = vrcp.f32 %v5541_v54  ;;  %v2435_v16 = vadd.f32 %v2427_v0, %v2406_v47  ;;  %vm2486_vm4 = vweird.f32 %v3897_v44  ;;  %vm5547_vm3 = vmor %vm2470_vm5, %vm2471_vm1 }
 0x597   : > { %v2467_v21 = vsub.f32 1.0, %v2466_v22  ;;  %v5544_v25 = vadd.f32 1.0, %v3899_v11  ;;  %v2436_v32 = vadd.f32 %v2428_v52, %v2420_v7  ;;  %vm2487_vm7 = vmor %vm2485_vm6, %vm2486_vm4  ;;  %v2519_v24 = vand.u32 2147483647, %v5541_v54 }
 0x598   : > { %v2482_v37 = vsub.f32 1.0, %v2481_v12  ;;  %v3456_v45 = vmul.f32 -1.442695, %v2435_v16  ;;  %v2521_v26 = vand.u32 2147483648, %v5541_v54  ;;  %vm2515_vm12 = vweird.f32 %v5541_v54 }
 0x599   : > { %3902 = vrcp.f32 %v5544_v25  ;;  %v2468_v49 = vmul.f32 %v3895_v60, %v2467_v21  ;;  %v2536_v10 = vand.u32 2147483648, %v5544_v25  ;;  %v2534_v17 = vand.u32 2147483647, %v5544_v25 }
 0x59a   : > { %v2483_v57 = vmul.f32 %v3897_v44, %v2482_v37  ;;  %3904 = vpow2.f32 %v3456_v45  ;;  %vm2530_vm15 = vweird.f32 %v5544_v25  ;;  %v2522_v52 = vor.u32 1.1754944e-38, %v2521_v26 }
 0x59b   : > { %v2469_v61 = vadd.f32 %v3895_v60, %v2468_v49  ;;  %3906 = vtanh.f32 %v2436_v32  ;;  %vm2520_vm14 = vcmp.eq.f32.partialorder %v2519_v24, 8.507059e+37  ;;  %v2537_v22 = vor.u32 1.1754944e-38, %v2536_v10 }
 0x59c   : > { %v3901_v62 = vpop.eup %3900  ;;  %v2484_v13 = vadd.f32 %v3897_v44, %v2483_v57  ;;  %vm2535_vm1 = vcmp.eq.f32.partialorder %v2534_v17, 8.507059e+37 }
 0x59d   : > { %v2511_v14 = vmul.f32 %v3901_v62, %v5541_v54  ;;  %v2473_v29 = vsel %vm5547_vm3, %v3895_v60, %v2469_v61  ;;  %v2408_v35 = vpop.f32.mrf.mxu2  ;;  %vm2516_vm9 = vweird.f32 %v3901_v62 }
 0x59e   : > { %v2422_v39 = vpop.f32.mrf.mxu3  ;;  %v2488_v51 = vsel %vm2487_vm7, %v3897_v44, %v2484_v13  ;;  %v2439_v55 = vadd.f32 %v2431_v20, %v2408_v35  ;;  %v2478_v33 = vsel %vm2475_vm8, %v2477_v30, %v2473_v29  ;;  %vm2517_vm0 = vmor %vm2515_vm12, %vm2516_vm9 }
 0x59f   : > { %v2440_v56 = vadd.f32 %v2432_v36, %v2422_v39  ;;  %v3903_v9 = vpop.eup %3902  ;;  %v2512_v1 = vsub.f32 1.0, %v2511_v14  ;;  %v2493_v31 = vsel %vm2490_vm10, %v2492_v5, %v2488_v51 }
 0x5a0   : > { %v3905_v23 = vpop.eup %3904  ;;  %v2526_v63 = vmul.f32 %v3903_v9, %v5544_v25  ;;  %v2557_v43 = vmul.f32 %v2493_v31, %v5448_v27  ;;  %v3459_v4 = vmul.f32 -1.442695, %v2439_v55  ;;  %vm2531_vm11 = vweird.f32 %v3903_v9  ;;  %v2578_v25 = vpop.permute.xlu1 %2577 }
 0x5a1   : > { %v3907_v3 = vpop.eup %3906  ;;  %v2461_v18 = vadd.f32 1.0, %v3905_v23  ;;  %v2513_v19 = vmul.f32 %v3901_v62, %v2512_v1  ;;  %3908 = vtanh.f32 %v2440_v56  ;;  %vm2532_vm2 = vmor %vm2530_vm15, %vm2531_vm11  ;;  %vm2580_vm4 = vcmp.eq.s32.totalorder %v2578_v25, 1  ;;  %v2623_v25 = vld [vmem:[%s4509_s28 + $0xf8] sm:$0xff] }
 0x5a2   : > { %v2527_v59 = vsub.f32 1.0, %v2526_v63  ;;  %v2559_v48 = vmul.f32 %v3907_v3, %v2478_v33  ;;  %3910 = vpow2.f32 %v3459_v4  ;;  %vm3460_vm11 = vmpackc.low %vm2580_vm4, %vm2579_vm13  ;;  %v2620_v4 = vld [vmem:[%s4509_s28 + $0x70] sm:$0xff] }
 0x5a3   : > { %3912 = vrcp.f32 %v2461_v18  ;;  %v2514_v2 = vadd.f32 %v3901_v62, %v2513_v19  ;;  %v2506_v50 = vand.u32 2147483648, %v2461_v18  ;;  %vm2500_vm6 = vweird.f32 %v2461_v18 }
 0x5a4   : > { %v2528_v41 = vmul.f32 %v3903_v9, %v2527_v59  ;;  %v2561_v0 = vadd.f32 %v2559_v48, %v2557_v43  ;;  %v2504_v57 = vand.u32 2147483647, %v2461_v18  ;;  %v2681_v24 = vunpack.c.l.bf16 %v2620_v4 }
 0x5a5   : > { %v2518_v8 = vsel %vm2517_vm0, %v3901_v62, %v2514_v2  ;;  %v2507_v5 = vor.u32 1.1754944e-38, %v2506_v50  ;;  %v2682_v3 = vunpack.c.h.bf16 %v2620_v4  ;;  %v2687_v50 = vunpack.c.l.bf16 %v2623_v25 }
 0x5a6   : > { %v2529_v60 = vadd.f32 %v3903_v9, %v2528_v41  ;;  %v5568_v54 = vsel %vm2579_vm13, %v2561_v0, %v5448_v27  ;;  %v2523_v47 = vsel %vm2520_vm14, %v2522_v52, %v2518_v8  ;;  %vm2505_vm7 = vcmp.eq.f32.partialorder %v2504_v57, 8.507059e+37  ;;  %v2622_v41 = vld [vmem:[%s4509_s28 + $0xf0] sm:$0xff]  ;;  %v2621_v52 = vld [vmem:[%s4509_s28 + $0x78] sm:$0xff]  ;;  %s3542_s28 = sshll.u32 %s4254_s16, 4 }
 0x5a7   : > { %v3909_v44 = vpop.eup %3908  ;;  %v2685_v8 = vunpack.c.l.bf16 %v2622_v41  ;;  %s2922_s22 = scalar_lea.hbm %s6031_s9, %s3542_s28  ;;  %s2939_s26 = scalar_lea.hbm %s6032_s30, %s3542_s28 }
 0x5a8   : > { %v3911_v7 = vpop.eup %3910  ;;  %v2533_v11 = vsel %vm2532_vm2, %v3903_v9, %v2529_v60  ;;  %v2560_v12 = vmul.f32 %v3909_v44, %v2523_v47  ;;  %v2686_v60 = vunpack.c.h.bf16 %v2622_v41  ;;  %v2683_v44 = vunpack.c.l.bf16 %v2621_v52  ;;  %s2925_s17 = sshll.u32 %s2922_s22, 4  ;;  %s2926_s17 = int_to_ptr.hbm [resolvable:$true] %s2925_s17 }
 0x5a9   : > { %v3913_v16 = vpop.eup %3912  ;;  %v2464_v20 = vadd.f32 1.0, %v3911_v7  ;;  %v2538_v21 = vsel %vm2535_vm1, %v2537_v22, %v2533_v11  ;;  %s4086_s3 = sshra.s32 %s2926_s17, 4  ;;  %s4087_s3 = int_to_ptr.hbm [resolvable:$true] %s4086_s3 }
 0x5aa   : > { %v2496_v32 = vmul.f32 %v3913_v16, %v2461_v18  ;;  %v2558_v36 = vmul.f32 %v2538_v21, %v5462_v40  ;;  %vm2501_vm5 = vweird.f32 %v3913_v16  ;;  %s4088_s18 = scalar_lea.hbm %s4087_s3, 16  ;;  %p4093_p3 = scmp.lt.s32.totalorder %s4087_s3, %s6031_s9 }
 0x5ab   : > { %3914 = vrcp.f32 %v2464_v20  ;;  %vm2502_vm3 = vmor %vm2500_vm6, %vm2501_vm5  ;;  %v2551_v6 = vand.u32 2147483648, %v2464_v20  ;;  %v2549_v14 = vand.u32 2147483647, %v2464_v20  ;;  %vm2545_vm10 = vweird.f32 %v2464_v20  ;;  %p4089_p2 = scmp.ne.s32.totalorder %s4087_s3, %s4088_s18 }
 0x5ac   : > { %v2497_v37 = vsub.f32 1.0, %v2496_v32  ;;  %v2562_v38 = vadd.f32 %v2560_v12, %v2558_v36  ;;  %3916 = vtanh.f32 %v2561_v0 }
 0x5ad   : > { %v2552_v35 = vor.u32 1.1754944e-38, %v2551_v6  ;;  %vm2550_vm12 = vcmp.eq.f32.partialorder %v2549_v14, 8.507059e+37  ;;  %p4090_p1 = pnand %p4089_p2, %p4485_p7 }
 0x5ae   : > { %v2498_v27 = vmul.f32 %v3913_v16, %v2497_v37  ;;  %v5573_v45 = vsel %vm2580_vm4, %v2562_v38, %v5462_v40  ;;  %3918 = vtanh.f32 %v2562_v38 }
 0x5af   : > { %p4091_p12 = pneg %p4090_p1 }
 0x5b0   : > { %v2499_v46 = vadd.f32 %v3913_v16, %v2498_v27 }
 0x5b1   : > { %v3915_v49 = vpop.eup %3914 }
 0x5b2   : > { %v2541_v58 = vmul.f32 %v3915_v49, %v2464_v20  ;;  %v2503_v62 = vsel %vm2502_vm3, %v3913_v16, %v2499_v46  ;;  %vm2546_vm8 = vweird.f32 %v3915_v49  ;;  %v3917_v30 = vpop.eup %3916 }
 0x5b3   : > { %v2508_v40 = vsel %vm2505_vm7, %v2507_v5, %v2503_v62  ;;  %vm2547_vm9 = vmor %vm2545_vm10, %vm2546_vm8 }
 0x5b4   : > { %v2542_v61 = vsub.f32 1.0, %v2541_v58  ;;  %v2565_v51 = vmul.f32 %v3917_v30, %v2508_v40  ;;  %v3919_v55 = vpop.eup %3918 }
 0x5b6   : > { %v2543_v13 = vmul.f32 %v3915_v49, %v2542_v61  ;;  %v5578_v33 = vsel %vm2579_vm13, %v2565_v51, %v5470_v53 }
 0x5b8   : > { %v2544_v29 = vadd.f32 %v3915_v49, %v2543_v13 }
 0x5ba   : > { %v2548_v39 = vsel %vm2547_vm9, %v3915_v49, %v2544_v29  ;;  %v2684_v49 = vunpack.c.h.bf16 %v2621_v52 }
 0x5bb   : > { %v2553_v56 = vsel %vm2550_vm12, %v2552_v35, %v2548_v39  ;;  %v2688_v35 = vunpack.c.h.bf16 %v2623_v25 }
 0x5bc   : > { %v2566_v9 = vmul.f32 %v3919_v55, %v2553_v56 }
 0x5be   : > { %v3461_v1 = vpack.c.bf16 %v2566_v9, %v2565_v51  ;;  %v5582_v31 = vsel %vm2580_vm4, %v2566_v9, %v5474_v42 }
 0x5bf   : > { %v2624_v23 = vpack.c.bf16 %v5582_v31, %v5578_v33 }
 0x5c0   : > { %3462 = vmatmul.msk.bf16.vlgmr.msra.gmra.mxu0 %vm3460_vm11, %v3461_v1  ;;  %3465 = vmatmul.msk.bf16.vlgmr.msra.gmra.mxu1 %vm3460_vm11, %v3461_v1  ;;  %v5606_v1 = vpop.permute.xlu2 %2830 }
 0x5c1   : > { %2633 = vmatmul.bf16.vlgmr.msra.gmra.mxu2 %v2624_v23  ;;  %2647 = vmatmul.bf16.vlgmr.msra.gmra.mxu3 %v2624_v23  ;;  %vm2835_vm0 = vcmp.eq.s32.totalorder %v5606_v1, 1 }
 0x5d0   : > { %2661 = vmatmul.bf16.vlgmr.msrb.gmra.mxu0 %v2624_v23  ;;  %2675 = vmatmul.bf16.vlgmr.msrb.gmra.mxu1 %v2624_v23 }
 0x63d   : > { %v2597_v53 = vpop.f32.mrf.mxu0  ;;  %v2611_v63 = vpop.f32.mrf.mxu1 }
 0x63e   : > { %v2598_v43 = vadd.f32 %v2597_v53, %v6027_v34  ;;  %v2612_v42 = vadd.f32 %v2611_v63, %v6028_v15 }
 0x640   : > { %2616 = vst [vmem:[%s4540_s4 + $0x60] sm:$0xff] %v2598_v43 }
 0x641   : > { %2617 = vst [vmem:[%s4540_s4 + $0x68] sm:$0xff] %v2612_v42 }
 0x644   : > { %v2634_v18 = vpop.f32.mrf.mxu2  ;;  %v2648_v19 = vpop.f32.mrf.mxu3 }
 0x645   : > { %v2689_v26 = vadd.f32 %v2681_v24, %v2634_v18  ;;  %v2690_v59 = vadd.f32 %v2682_v3, %v2648_v19  ;;  %v2599_v48 = vpop.f32.mrf.mxu0  ;;  %v2613_v10 = vpop.f32.mrf.mxu1 }
 0x646   : > { %v2600_v17 = vadd.f32 %v2599_v48, %v6027_v34  ;;  %v2614_v28 = vadd.f32 %v2613_v10, %v6028_v15 }
 0x647   : > { %v3466_v0 = vmul.f32 -1.442695, %v2689_v26  ;;  %v3467_v2 = vmul.f32 -1.442695, %v2690_v59 }
 0x648   : > { %2618 = vst [vmem:[%s4540_s4 + $0xe0] sm:$0xff] %v2600_v17 }
 0x649   : > { %3920 = vpow2.f32 %v3466_v0  ;;  %2619 = vst [vmem:[%s4540_s4 + $0xe8] sm:$0xff] %v2614_v28 }
 0x64a   : > { %3922 = vpow2.f32 %v3467_v2 }
 0x64c   : > { %v2636_v22 = vpop.f32.mrf.mxu2  ;;  %v2650_v47 = vpop.f32.mrf.mxu3 }
 0x64d   : > { %v2693_v7 = vadd.f32 %v2685_v8, %v2636_v22  ;;  %v2694_v11 = vadd.f32 %v2686_v60, %v2650_v47  ;;  %v2662_v12 = vpop.f32.mrf.mxu0  ;;  %v2676_v46 = vpop.f32.mrf.mxu1 }
 0x64e   : > { %v2691_v16 = vadd.f32 %v2683_v44, %v2662_v12  ;;  %v2692_v57 = vadd.f32 %v2684_v49, %v2676_v46 }
 0x64f   : > { %v3921_v20 = vpop.eup %3920  ;;  %v3469_v21 = vmul.f32 -1.442695, %v2693_v7  ;;  %v3470_v37 = vmul.f32 -1.442695, %v2694_v11 }
 0x650   : > { %v3923_v32 = vpop.eup %3922  ;;  %v2715_v36 = vadd.f32 1.0, %v3921_v20  ;;  %v3468_v27 = vmul.f32 -1.442695, %v2691_v16 }
 0x651   : > { %v2716_v38 = vadd.f32 1.0, %v3923_v32  ;;  %3924 = vpow2.f32 %v3469_v21 }
 0x652   : > { %3926 = vrcp.f32 %v2715_v36  ;;  %v2730_v56 = vand.u32 2147483647, %v2715_v36  ;;  %v2732_v43 = vand.u32 2147483648, %v2715_v36  ;;  %vm2726_vm14 = vweird.f32 %v2715_v36 }
 0x653   : > { %3928 = vrcp.f32 %v2716_v38  ;;  %v2747_v53 = vand.u32 2147483648, %v2716_v38  ;;  %v2745_v4 = vand.u32 2147483647, %v2716_v38  ;;  %vm2741_vm2 = vweird.f32 %v2716_v38 }
 0x654   : > { %3930 = vpow2.f32 %v3470_v37  ;;  %vm2731_vm4 = vcmp.eq.f32.partialorder %v2730_v56, 8.507059e+37  ;;  %v2733_v59 = vor.u32 1.1754944e-38, %v2732_v43 }
 0x655   : > { %3932 = vpow2.f32 %v3468_v27  ;;  %v2664_v58 = vpop.f32.mrf.mxu0  ;;  %v2678_v9 = vpop.f32.mrf.mxu1  ;;  %v2748_v17 = vor.u32 1.1754944e-38, %v2747_v53  ;;  %vm2746_vm6 = vcmp.eq.f32.partialorder %v2745_v4, 8.507059e+37 }
 0x656   : > { %v2695_v61 = vadd.f32 %v2687_v50, %v2664_v58  ;;  %3934 = vtanh.f32 %v2692_v57  ;;  %v2696_v3 = vadd.f32 %v2688_v35, %v2678_v9 }
 0x657   : > { %v3925_v62 = vpop.eup %3924 }
 0x658   : > { %v3927_v5 = vpop.eup %3926  ;;  %v5601_v6 = vadd.f32 1.0, %v3925_v62  ;;  %v3471_v13 = vmul.f32 -1.442695, %v2695_v61 }
 0x659   : > { %v3929_v14 = vpop.eup %3928  ;;  %v2722_v40 = vmul.f32 %v3927_v5, %v2715_v36  ;;  %vm2727_vm13 = vweird.f32 %v3927_v5 }
 0x65a   : > { %v3931_v29 = vpop.eup %3930  ;;  %v2737_v30 = vmul.f32 %v3929_v14, %v2716_v38  ;;  %3936 = vrcp.f32 %v5601_v6  ;;  %vm2742_vm15 = vweird.f32 %v3929_v14  ;;  %vm2728_vm1 = vmor %vm2726_vm14, %vm2727_vm13  ;;  %vm2771_vm3 = vweird.f32 %v5601_v6 }
 0x65b   : > { %v3933_v39 = vpop.eup %3932  ;;  %v2723_v51 = vsub.f32 1.0, %v2722_v40  ;;  %v5604_v55 = vadd.f32 1.0, %v3931_v29  ;;  %3938 = vpow2.f32 %v3471_v13  ;;  %vm2743_vm5 = vmor %vm2741_vm2, %vm2742_vm15  ;;  %v2775_v12 = vand.u32 2147483647, %v5601_v6 }
 0x65c   : > { %v2738_v23 = vsub.f32 1.0, %v2737_v30  ;;  %v5608_v63 = vadd.f32 1.0, %v3933_v39  ;;  %v3935_v18 = vpop.eup %3934  ;;  %v2777_v21 = vand.u32 2147483648, %v5601_v6 }
 0x65d   : > { %3940 = vrcp.f32 %v5604_v55  ;;  %v2724_v42 = vmul.f32 %v3927_v5, %v2723_v51  ;;  %vm2786_vm7 = vweird.f32 %v5604_v55  ;;  %v2792_v16 = vand.u32 2147483648, %v5604_v55 }
 0x65e   : > { %v2739_v24 = vmul.f32 %v3929_v14, %v2738_v23  ;;  %3942 = vrcp.f32 %v5608_v63  ;;  %v2760_v32 = vand.u32 2147483647, %v5608_v63  ;;  %v2762_v27 = vand.u32 2147483648, %v5608_v63  ;;  %v2834_v23 = vpop.permute.xlu0 %2833 }
 0x65f   : > { %v2725_v19 = vadd.f32 %v3927_v5, %v2724_v42  ;;  %3944 = vtanh.f32 %v2696_v3  ;;  %v2790_v46 = vand.u32 2147483647, %v5604_v55  ;;  %vm2756_vm9 = vweird.f32 %v5608_v63 }
 0x660   : > { %v5613_v26 = vpop.eup %3936  ;;  %v2740_v48 = vadd.f32 %v3929_v14, %v2739_v24  ;;  %vm2776_vm13 = vcmp.eq.f32.partialorder %v2775_v12, 8.507059e+37  ;;  %v2778_v13 = vor.u32 1.1754944e-38, %v2777_v21  ;;  %vm2761_vm14 = vcmp.eq.f32.partialorder %v2760_v32, 8.507059e+37 }
 0x661   : > { %v3939_v10 = vpop.eup %3938  ;;  %v2767_v28 = vmul.f32 %v5613_v26, %v5601_v6  ;;  %v2729_v41 = vsel %vm2728_vm1, %v3927_v5, %v2725_v19  ;;  %vm2772_vm8 = vweird.f32 %v5613_v26  ;;  %v2793_v5 = vor.u32 1.1754944e-38, %v2792_v16 }
 0x662   : > { %v2734_v0 = vsel %vm2731_vm4, %v2733_v59, %v2729_v41  ;;  %v2744_v2 = vsel %vm2743_vm5, %v3929_v14, %v2740_v48  ;;  %v5617_v52 = vadd.f32 1.0, %v3939_v10  ;;  %vm2773_vm11 = vmor %vm2771_vm3, %vm2772_vm8  ;;  %v2763_v30 = vor.u32 1.1754944e-38, %v2762_v27 }
 0x663   : > { %v3941_v8 = vpop.eup %3940  ;;  %v2768_v60 = vsub.f32 1.0, %v2767_v28  ;;  %v2749_v44 = vsel %vm2746_vm6, %v2748_v17, %v2744_v2  ;;  %v2815_v22 = vmul.f32 %v3935_v18, %v2734_v0  ;;  %vm2791_vm1 = vcmp.eq.f32.partialorder %v2790_v46, 8.507059e+37 }
 0x664   : > { %v3943_v47 = vpop.eup %3942  ;;  %v2782_v7 = vmul.f32 %v3941_v8, %v5604_v55  ;;  %v2813_v11 = vmul.f32 %v2749_v44, %v5568_v54  ;;  %3946 = vrcp.f32 %v5617_v52  ;;  %vm2787_vm10 = vweird.f32 %v3941_v8 }
 0x665   : > { %v2752_v20 = vmul.f32 %v3943_v47, %v5608_v63  ;;  %v2769_v37 = vmul.f32 %v5613_v26, %v2768_v60  ;;  %v3945_v49 = vpop.eup %3944  ;;  %vm2757_vm12 = vweird.f32 %v3943_v47  ;;  %vm2788_vm15 = vmor %vm2786_vm7, %vm2787_vm10  ;;  %vm2836_vm4 = vcmp.eq.s32.totalorder %v2834_v23, 1 }
 0x666   : > { %v2783_v25 = vsub.f32 1.0, %v2782_v7  ;;  %v2817_v36 = vadd.f32 %v2815_v22, %v2813_v11  ;;  %vm2758_vm2 = vmor %vm2756_vm9, %vm2757_vm12  ;;  %v2807_v18 = vand.u32 2147483648, %v5617_v52  ;;  %vm2801_vm6 = vweird.f32 %v5617_v52 }
 0x667   : > { %v2753_v38 = vsub.f32 1.0, %v2752_v20  ;;  %v2770_v61 = vadd.f32 %v5613_v26, %v2769_v37  ;;  %vm3472_vm8 = vmpackc.low %vm2836_vm4, %vm2835_vm0 }
 0x668   : > { %v2784_v50 = vmul.f32 %v3941_v8, %v2783_v25  ;;  %3948 = vtanh.f32 %v2817_v36  ;;  %v2839_v57 = vsel %vm2835_vm0, %v2817_v36, %v5568_v54  ;;  %v2808_v48 = vor.u32 1.1754944e-38, %v2807_v18 }
 0x669   : > { %v2754_v58 = vmul.f32 %v3943_v47, %v2753_v38  ;;  %2878 = vst [vmem:[%s4544_s12] sm:$0xff] %v2839_v57  ;;  %v2774_v29 = vsel %vm2773_vm11, %v5613_v26, %v2770_v61  ;;  %v2805_v26 = vand.u32 2147483647, %v5617_v52 }
 0x66a   : > { %v3947_v62 = vpop.eup %3946  ;;  %v2785_v14 = vadd.f32 %v3941_v8, %v2784_v50  ;;  %v2779_v35 = vsel %vm2776_vm13, %v2778_v13, %v2774_v29 }
 0x66b   : > { %v2755_v40 = vadd.f32 %v3943_v47, %v2754_v58  ;;  %v2797_v54 = vmul.f32 %v3947_v62, %v5617_v52  ;;  %v2816_v56 = vmul.f32 %v3945_v49, %v2779_v35  ;;  %vm2802_vm5 = vweird.f32 %v3947_v62 }
 0x66c   : > { %v2789_v39 = vsel %vm2788_vm15, %v3941_v8, %v2785_v14  ;;  %vm2803_vm3 = vmor %vm2801_vm6, %vm2802_vm5  ;;  %vm2806_vm7 = vcmp.eq.f32.partialorder %v2805_v26, 8.507059e+37 }
 0x66d   : > { %v2798_v6 = vsub.f32 1.0, %v2797_v54  ;;  %v2794_v51 = vsel %vm2791_vm1, %v2793_v5, %v2789_v39  ;;  %v2759_v9 = vsel %vm2758_vm2, %v3943_v47, %v2755_v40 }
 0x66e   : > { %v3949_v55 = vpop.eup %3948  ;;  %v2814_v53 = vmul.f32 %v2794_v51, %v5573_v45  ;;  %v2764_v43 = vsel %vm2761_vm14, %v2763_v30, %v2759_v9 }
 0x66f   : > { %v2799_v42 = vmul.f32 %v3947_v62, %v2798_v6  ;;  %v2821_v4 = vmul.f32 %v3949_v55, %v2764_v43 }
 0x670   : > { %v2818_v24 = vadd.f32 %v2816_v56, %v2814_v53 }
 0x671   : > { %v2800_v63 = vadd.f32 %v3947_v62, %v2799_v42  ;;  %v2837_v3 = vsel %vm2835_vm0, %v2821_v4, %v5578_v33 }
 0x672   : > { %3950 = vtanh.f32 %v2818_v24  ;;  %v2840_v19 = vsel %vm2836_vm4, %v2818_v24, %v5573_v45  ;;  %2876 = vst [vmem:[%s4542_s7] sm:$0xff] %v2837_v3 }
 0x673   : > { %2879 = vst [vmem:[%s4544_s12 + $0x8] sm:$0xff] %v2840_v19  ;;  %v2804_v59 = vsel %vm2803_vm3, %v3947_v62, %v2800_v63 }
 0x674   : > { %v2809_v10 = vsel %vm2806_vm7, %v2808_v48, %v2804_v59 }
 0x678   : > { %v3951_v33 = vpop.eup %3950 }
 0x679   : > { %v2822_v17 = vmul.f32 %v3951_v33, %v2809_v10 }
 0x67b   : > { %v3473_v28 = vpack.c.bf16 %v2822_v17, %v2821_v4  ;;  %v2838_v45 = vsel %vm2836_vm4, %v2822_v17, %v5582_v31 }
 0x67c   : > { %2877 = vst [vmem:[%s4542_s7 + $0x8] sm:$0xff] %v2838_v45  ;;  %s4092_s7 = scalar_lea.hbm %s6031_s9, 32 }
 0x67d   : > { %3474 = vmatmul.msk.bf16.vlgmr.msrb.gmra.mxu2 %vm3472_vm8, %v3473_v28  ;;  %3477 = vmatmul.msk.bf16.vlgmr.msrb.gmra.mxu3 %vm3472_vm8, %v3473_v28  ;;  %p4094_p11 = scmp.lt.s32.totalorder %s4092_s7, %s4088_s18 }
 0x67f   : > { %p4095_p4 = por %p4094_p11, %p4093_p3 }
 0x681   : > { %p4096_p5 = pnand %p4095_p4, %p4091_p12 }
 0x683   : > { %4099 = shalt.err (!%p4096_p5)
}
 0x684   : > { %s4277_s0 = smov 128   ;;  %s4278_s20 = smov 8  }
 0x685   : > { %3557 = dma.vmem_to_hbm [thread:$0]  (%p4485_p7), %s2924_s6, 256, %s2926_s17, %s5674_s2, %s4277_s0, %s4277_s0, %s4278_s20  }
 0x686   : > { %s2942_s28 = sshll.u32 %s2939_s26, 4  ;;  %s2940_s23 = sshll.u32 %s4544_s12, 4  ;;  %s2943_s28 = int_to_ptr.hbm [resolvable:$true] %s2942_s28  ;;  %s2941_s23 = int_to_ptr.vmem [resolvable:$true] %s2940_s23 }
 0x687   : > { %s4114_s24 = sshra.s32 %s2943_s28, 4  ;;  %s4120_s30 = scalar_lea.hbm %s6033_s5, 32  ;;  %s4115_s24 = int_to_ptr.hbm [resolvable:$true] %s4114_s24 }
 0x688   : > { %s4116_s3 = scalar_lea.hbm %s4115_s24, 16  ;;  %p4121_p2 = scmp.lt.s32.totalorder %s4115_s24, %s6033_s5 }
 0x689   : > { %p4117_p13 = scmp.ne.s32.totalorder %s4115_s24, %s4116_s3  ;;  %p4122_p1 = scmp.lt.s32.totalorder %s4120_s30, %s4116_s3 }
 0x68b   : > { %p4118_p0 = pnand %p4117_p13, %p4485_p7  ;;  %p4123_p12 = por %p4122_p1, %p4121_p2 }
 0x68d   : > { %p4119_p6 = pneg %p4118_p0 }
 0x68f   : > { %p4124_p3 = pnand %p4123_p12, %p4119_p6 }
 0x691   : > { %4127 = shalt.err (!%p4124_p3)
}
 0x692   : > { %3558 = dma.vmem_to_hbm [thread:$0]  (%p4485_p7), %s2941_s23, 256, %s2943_s28, %s5674_s2, %s4277_s0, %s4277_s0, %s4278_s20  }
 0x693   : > { %s3482_s12 = sshll.u32 %s5888_s1, 4  ;;  %s3541_s6 = sshll.u32 %s4254_s16, 6 }
 0x694   : > { %s2903_s17 = sadd.s32 %s3541_s6, %s3482_s12  ;;  %s6035_s22 = sld [smem:[#allocation57_spill]] }
 0x695   : > { %s3484_s26 = sshll.u32 %s2903_s17, 3  ;;  %s2906_s1 = sshll.u32 %s4540_s4, 4  ;;  %s2907_s1 = int_to_ptr.vmem [resolvable:$true] %s2906_s1 }
 0x696   : > { %s2881_s20 = scalar_lea.sflag [#allocation4], %s4505_s8 }
 0x69a   : > { %s2905_s24 = scalar_lea.hbm %s6035_s22, %s3484_s26  ;;  %s4148_s27 = scalar_lea.hbm %s6035_s22, 1024 }
 0x69b   : > { %s2908_s16 = sshll.u32 %s2905_s24, 4  ;;  %s2909_s16 = int_to_ptr.hbm [resolvable:$true] %s2908_s16 }
 0x69c   : > { %s4142_s28 = sshra.s32 %s2909_s16, 4  ;;  %s4143_s28 = int_to_ptr.hbm [resolvable:$true] %s4142_s28 }
 0x69d   : > { %s4144_s23 = scalar_lea.hbm %s4143_s28, 256  ;;  %p4149_p5 = scmp.lt.s32.totalorder %s4143_s28, %s6035_s22 }
 0x69e   : > { %p4145_p7 = scmp.ne.s32.totalorder %s4143_s28, %s4144_s23  ;;  %p4150_p13 = scmp.lt.s32.totalorder %s4148_s27, %s4144_s23 }
 0x6a0   : > { %p4146_p11 = pnand %p4145_p7, %p4447_p10  ;;  %p4151_p0 = por %p4150_p13, %p4149_p5 }
 0x6a2   : > { %p4147_p4 = pneg %p4146_p11 }
 0x6a4   : > { %p4152_p6 = pnand %p4151_p0, %p4147_p4 }
 0x700   : > { %v2853_v31 = vpop.f32.mrf.mxu2  ;;  %v2867_v1 = vpop.f32.mrf.mxu3 }
 0x701   : > { %v2854_v41 = vadd.f32 %v2853_v31, %v6027_v34  ;;  %v2868_v0 = vadd.f32 %v2867_v1, %v6028_v15 }
 0x703   : > { %2872 = vst [vmem:[%s4540_s4 + $0x70] sm:$0xff] %v2854_v41 }
 0x704   : > { %2873 = vst [vmem:[%s4540_s4 + $0x78] sm:$0xff] %v2868_v0 }
 0x708   : > { %v2855_v2 = vpop.f32.mrf.mxu2  ;;  %v2869_v52 = vpop.f32.mrf.mxu3 }
 0x709   : > { %v2856_v8 = vadd.f32 %v2855_v2, %v6027_v34  ;;  %v2870_v60 = vadd.f32 %v2869_v52, %v6028_v15 }
 0x70b   : > { %2874 = vst [vmem:[%s4540_s4 + $0xf0] sm:$0xff] %v2856_v8 }
 0x70c   : > { %2875 = vst [vmem:[%s4540_s4 + $0xf8] sm:$0xff] %v2870_v60 }
 0x70d   : > { %4155 = shalt.err (!%p4152_p6)
}
 0x70e   : > { %s4279_s8 = smov 2048   ;;  %s4280_s4 = smov 4096  }
 0x70f   : > { %3556 = dma.vmem_to_hbm [thread:$0]  (%p4447_p10), %s2907_s1, 4096, %s2909_s16, %s2881_s20, %s4279_s8, %s4280_s4, %s4277_s0  }
 0x710 PF: > { %s6037_s25 = sld [smem:[#allocation20_spill]]  ;;  %p3591_p2 = scmp.ge.s32.totalorder %s4266_s19, 2 }
 0x712   : > { %p3577_p1 = pnand %p3591_p2, %p4408_p8 }
 0x714   : > { %p3578_p12 = pneg %p3577_p1 }
 0x716   : > { %s2957_s6 = sand.u32 1, %s6037_s25  }
 0x717   : > { %s2958_s17 = scalar_lea.sflag [#allocation4], %s2957_s6 }
 0x718   : > { %4217 = dma.done.wait (%p3578_p12), %s2958_s17, 4096  }
 0x719   : > { %4219 = vsyncadd (%p3578_p12), %s2958_s17, 4294963200  ;;  %s6039_s26 = sadd.s32 4294967294, %s4266_s19   ;;  %p3580_p3 = pnand %p3591_p2, %p4412_p9 }
 0x71a   : > { %s2967_s7 = sand.u32 1, %s6039_s26  }
 0x71b   : > { %p3581_p7 = pneg %p3580_p3  ;;  %s2968_s0 = scalar_lea.sflag [#allocation12], %s2967_s7 }
 0x71d   : > { %4221 = dma.done.wait (%p3581_p7), %s2968_s0, 512  }
 0x71e   : > { %4223 = vsyncadd (%p3581_p7), %s2968_s0, 4294966784  ;;  %s33_s19 = sadd.s32 1, %s4266_s19   ;;  %s6041_s24 = sld [smem:[#allocation29_spill]] }
 0x71f   : > { %p30_p10 = scmp.ge.s32.totalorder %s33_s19, 6   ;;  %s6042_s15 = sld [smem:[#allocation22_spill]] }
 0x720   : > { %s6043_s16 = sld [smem:[#allocation23_spill]]  ;;  %s6046_s30 = smov %s4230_s10 }
 0x721   : > { %s6044_s17 = sld [smem:[#allocation26_spill]]  ;;  %s6047_s10 = smov %s4234_s11 }
 0x722   : > { %s6045_s18 = sld [smem:[#allocation28_spill]]  ;;  %s6048_s11 = smov %s4481_s21 }
 0x723   : > { %s6049_s12 = smov %s4242_s13  ;;  %s6050_s13 = smov %s4246_s14 }
 0x724   : > { %s6051_s14 = smov %s6041_s24  ;;  %32 = sbr.rel (!%p30_p10) target bundleno = 25 (0x19), region = 156 }
 0x729   :  { %2984 = vsyncpa [#allocation3], 1 }
 0x72a   :  { %2986 = vsyncpa [#allocation3 + $0x1], 1 }
 0x72b   :  { %2987 = vsyncpa [#allocation6], 1 }
 0x72c   :  { %2989 = vsyncpa [#allocation6 + $0x1], 1 }
 0x72d   :  { %2990 = vsyncpa [#allocation9], 1 }
 0x72e   :  { %2991 = vsyncpa [#allocation4], 1 }
 0x72f   :  { %2993 = vsyncpa [#allocation4 + $0x1], 1 }
 0x730   :  { %2994 = vsyncpa [#allocation12], 1 }
 0x731   :  { %2996 = vsyncpa [#allocation12 + $0x1], 1 }

</bundles_post_ra>
